<compile_context>
chip_gen: v7x
topology: tpu7x:2x2x1
jax: 0.10.0
libtpu: 0.0.40
codegen_flags: <defaults>
</compile_context>

<pallas_src>
import functools

import jax
import jax.numpy as jnp
from jax import lax
from jax.experimental import pallas as pl
from jax.experimental.pallas import tpu as pltpu

_LANE = 128
_MIN_TILE = 128
_MIB = 1024 * 1024
_LOG2E = 1.4426950408889634
_MASK_VALUE = -1e30  # large-negative instead of -inf: exp2 underflows to 0, no inf math


def _attend_kernel(q_ref, k_ref, v_ref, o_ref, m_ref, l_ref, acc_ref, *,
                   scale, kv_len, kv_tile, mask_kv, bf16_exp):
    # Block shapes:
    #   q_ref:   (bh_blk, tq,  d)
    #   k_ref:   (bh_blk, tkv, d)
    #   v_ref:   (bh_blk, tkv, d)
    #   o_ref:   (bh_blk, tq,  d)
    #   scratch: m/l (bh_blk, tq, 1) f32, acc (bh_blk, tq, d) f32
    ki = pl.program_id(2)

    @pl.when(ki == 0)
    def _init():
        m_ref[...] = jnp.full_like(m_ref, _MASK_VALUE)
        l_ref[...] = jnp.zeros_like(l_ref)
        acc_ref[...] = jnp.zeros_like(acc_ref)

    # Fold the softmax scale AND log2(e) into q (O(tq*d) elementwise): the
    # softmax is then computed with exp2, saving one VPU multiply per score.
    q = q_ref[...] * jnp.asarray(scale * _LOG2E, dtype=q_ref.dtype)
    k = k_ref[...]
    v = v_ref[...]

    # s[b, i, j] = sum_d q[b, i, d] * k[b, j, d]
    # Contract the last dim of both operands (no explicit k.T), f32 accumulate.
    s = lax.dot_general(
        q, k,
        dimension_numbers=(((2,), (2,)), ((0,), (0,))),
        preferred_element_type=jnp.float32,
    )

    if mask_kv:
        # Mask padded KV columns (wrapper zero-pads k/v up to a tile multiple).
        col = ki * kv_tile + lax.broadcasted_iota(jnp.int32, s.shape, 2)
        s = jnp.where(col < kv_len, s, jnp.float32(_MASK_VALUE))

    # Online (flash-style) softmax update in the log2 domain.
    m_prev = m_ref[...]
    m_new = jnp.maximum(m_prev, jnp.max(s, axis=-1, keepdims=True))
    alpha = jnp.exp2(m_prev - m_new)

    if bf16_exp:
        # bf16 inputs (v6e/v7x EUP has bf16): exp2 in bf16 doubles transcendental
        # throughput and p is already in the matmul dtype.
        p = jnp.exp2((s - m_new).astype(jnp.bfloat16))
        l_new = jnp.sum(p.astype(jnp.float32), axis=-1, keepdims=True)
    else:
        p = jnp.exp2(s - m_new)
        l_new = jnp.sum(p, axis=-1, keepdims=True)

    l_ref[...] = alpha * l_ref[...] + l_new

    # PV matmul with probabilities in the value dtype, f32 accumulation.
    pv = lax.dot_general(
        p.astype(v_ref.dtype), v,
        dimension_numbers=(((2,), (1,)), ((0,), (0,))),
        preferred_element_type=jnp.float32,
    )
    acc_ref[...] = alpha * acc_ref[...] + pv
    m_ref[...] = m_new

    @pl.when(ki == pl.num_programs(2) - 1)
    def _finalize():
        # Deferred normalization on the (tq, d) accumulator; approx reciprocal
        # runs on the otherwise-idle EUP slot.
        inv_l = pl.reciprocal(l_ref[...], approx=True)
        o_ref[...] = (acc_ref[...] * inv_l).astype(o_ref.dtype)


def _round_up(x, m):
    return ((x + m - 1) // m) * m


def _per_slice_bytes(tq, tkv, d, itemsize):
    """VMEM bytes per (batch*head) slice of one grid step.

    Accounts for (8,128) lane padding (blocks with last dim d<128 pad the lane
    dim to 128; the (..,tq,1) m/l scratch occupies full 128-lane tiles) and for
    the in-kernel temporaries: the f32 score matrix and the value-dtype
    probability matrix (the dominant consumers).
    """
    d_pad = _round_up(max(d, 1), _LANE)
    io = 2 * (2 * tq * d_pad + 2 * tkv * d_pad) * itemsize   # double-buffered q,o + k,v blocks
    scratch = (2 * tq * _LANE + tq * d_pad) * 4              # m, l (lane-padded) + f32 acc
    temps = tq * tkv * 4 + tq * tkv * itemsize               # f32 scores + value-dtype p
    return io + scratch + temps


def _vmem_budget_bytes():
    """Generation-aware scoped-VMEM budget."""
    cap = None
    get_info = getattr(pltpu, "get_tpu_info", None)
    if get_info is not None:
        try:
            info = get_info()
            for name in ("vmem_capacity_bytes", "vmem_size_bytes", "vmem_bytes"):
                val = getattr(info, name, None)
                if val:
                    cap = int(val)
                    break
        except Exception:
            cap = None
    if cap is not None and cap > 64 * _MIB:
        return 96 * _MIB   # v5e / v6e: 128 MiB physical VMEM per TensorCore
    return 48 * _MIB       # v7x (64 MiB per TC) or unknown: stay conservative


def _choose_tiles(q_len, k_len, d, itemsize, usable_bytes, max_q_tile, max_kv_tile):
    """MXU-aligned (multiple-of-128) tiles; keep tq large, shrink tkv first."""
    tq = max(_MIN_TILE, min(_round_up(max_q_tile, _MIN_TILE), _round_up(q_len, _MIN_TILE)))
    tkv = max(_MIN_TILE, min(_round_up(max_kv_tile, _MIN_TILE), _round_up(k_len, _MIN_TILE)))
    # Aim to leave room for bh_blk ~ 4 slices per grid step.
    target = max(usable_bytes // 4, _per_slice_bytes(_MIN_TILE, _MIN_TILE, d, itemsize))
    while tkv > _MIN_TILE and _per_slice_bytes(tq, tkv, d, itemsize) > target:
        tkv -= _MIN_TILE
    while tq > _MIN_TILE and _per_slice_bytes(tq, tkv, d, itemsize) > target:
        tq -= _MIN_TILE
    return tq, tkv


def _pick_bh_block(bh, per_slice, usable_bytes, q_tiles, cap=8):
    best = 1
    for cand in range(1, min(bh, cap) + 1):
        if bh % cand == 0 and cand * per_slice <= usable_bytes:
            best = cand
    # v7x megacore: keep >= 2 parallel grid steps when the problem allows it
    # (don't collapse the whole bh axis when q_tiles == 1).
    while best > 1 and (bh // best) * q_tiles < 2:
        nxt = best - 1
        while nxt > 1 and bh % nxt != 0:
            nxt -= 1
        best = nxt
    return best


def attend(q, k, v, scale=None, *, max_q_tile=512, max_kv_tile=512):
    """Pallas equivalent of Attend.forward (flash=False, dropout=0.0, eval mode)."""
    b, h, q_len, d = q.shape
    k_len = k.shape[-2]
    assert k.shape == (b, h, k_len, d) and v.shape == (b, h, k_len, d)

    if scale is None:
        scale = d ** (-0.5)

    bh = b * h
    itemsize = jnp.dtype(q.dtype).itemsize

    budget = _vmem_budget_bytes()
    usable = budget - 4 * _MIB  # headroom for compiler-internal scratch

    tq, tkv = _choose_tiles(q_len, k_len, d, itemsize, usable, max_q_tile, max_kv_tile)

    # Pad sequence lengths to tile multiples (pad + mask instead of full-extent
    # fallback tiles, which would blow up the (tq, tkv) score temp in VMEM).
    q_pad = _round_up(q_len, tq)
    k_pad = _round_up(k_len, tkv)

    qr = q.reshape(bh, q_len, d)
    kr = k.reshape(bh, k_len, d)
    vr = v.reshape(bh, k_len, d)
    if q_pad != q_len:
        qr = jnp.pad(qr, ((0, 0), (0, q_pad - q_len), (0, 0)))
    if k_pad != k_len:
        kr = jnp.pad(kr, ((0, 0), (0, k_pad - k_len), (0, 0)))
        vr = jnp.pad(vr, ((0, 0), (0, k_pad - k_len), (0, 0)))

    per_slice = _per_slice_bytes(tq, tkv, d, itemsize)
    q_tiles = q_pad // tq
    bh_blk = _pick_bh_block(bh, per_slice, usable, q_tiles)

    grid = (bh // bh_blk, q_tiles, k_pad // tkv)

    bf16_exp = (jnp.dtype(q.dtype) == jnp.bfloat16 and jnp.dtype(v.dtype) == jnp.bfloat16)

    kernel = functools.partial(
        _attend_kernel,
        scale=float(scale),
        kv_len=int(k_len),
        kv_tile=int(tkv),
        mask_kv=bool(k_pad != k_len),
        bf16_exp=bf16_exp,
    )

    q_spec = pl.BlockSpec((bh_blk, tq, d), lambda bi, qi, ki: (bi, qi, 0))
    kv_spec = pl.BlockSpec((bh_blk, tkv, d), lambda bi, qi, ki: (bi, ki, 0))
    o_spec = pl.BlockSpec((bh_blk, tq, d), lambda bi, qi, ki: (bi, qi, 0))

    out = pl.pallas_call(
        kernel,
        out_shape=jax.ShapeDtypeStruct((bh, q_pad, d), q.dtype),
        grid_spec=pltpu.PrefetchScalarGridSpec(
            num_scalar_prefetch=0,
            grid=grid,
            in_specs=[q_spec, kv_spec, kv_spec],
            out_specs=o_spec,
            scratch_shapes=[
                pltpu.VMEM((bh_blk, tq, 1), jnp.float32),   # running max (log2 domain)
                pltpu.VMEM((bh_blk, tq, 1), jnp.float32),   # running denominator
                pltpu.VMEM((bh_blk, tq, d), jnp.float32),   # output accumulator
            ],
        ),
        compiler_params=pltpu.CompilerParams(
            dimension_semantics=("parallel", "parallel", "arbitrary"),
            vmem_limit_bytes=int(budget),
        ),
    )(qr, kr, vr)

    if q_pad != q_len:
        out = out[:, :q_len, :]
    return out.reshape(b, h, q_len, d)


def _attend_ref(q, k, v, scale=None):
    """Pure-JAX reference mirroring the PyTorch forward."""
    d = q.shape[-1]
    if scale is None:
        scale = d ** (-0.5)
    sim = jnp.einsum("bhid,bhjd->bhij", q, k) * scale
    attn = jax.nn.softmax(sim, axis=-1)
    return jnp.einsum("bhij,bhjd->bhid", attn, v)


if __name__ == "__main__":
    key = jax.random.PRNGKey(0)
    kq, kk, kv_ = jax.random.split(key, 3)

    b, h, n, d = 2, 4, 8, 32  # batch, heads, seq, head_dim
    q = jax.random.normal(kq, (b, h, n, d), dtype=jnp.float32)
    k = jax.random.normal(kk, (b, h, n, d), dtype=jnp.float32)
    v = jax.random.normal(kv_, (b, h, n, d), dtype=jnp.float32)

    out = attend(q, k, v)
    out = jax.block_until_ready(out)

    ref = _attend_ref(q, k, v)
    assert out.shape == (b, h, n, d)
    # approx=True reciprocal + online softmax -> ~1e-3-level differences
    assert jnp.allclose(out, ref, atol=2e-3, rtol=2e-3), (
        float(jnp.max(jnp.abs(out - ref)))
    )

    print("KERNEL_OK")
</pallas_src>

<mosaic_0001>
module attributes {stable_mosaic.version = 11 : i64} {
  func.func @_attend_kernel(%arg0: i32, %arg1: i32, %arg2: i32, %arg3: memref<4x128x32xf32, #tpu.memory_space<vmem>>, %arg4: memref<4x128x32xf32, #tpu.memory_space<vmem>>, %arg5: memref<4x128x32xf32, #tpu.memory_space<vmem>>, %arg6: memref<4x128x32xf32, #tpu.memory_space<vmem>>, %arg7: memref<4x128x1xf32, #tpu.memory_space<vmem>>, %arg8: memref<4x128x1xf32, #tpu.memory_space<vmem>>, %arg9: memref<4x128x32xf32, #tpu.memory_space<vmem>>) attributes {dimension_semantics = [#tpu.dimension_semantics<parallel>, #tpu.dimension_semantics<parallel>, #tpu.dimension_semantics<arbitrary>], iteration_bounds = array<i64: 2, 1, 1>, scalar_prefetch = 0 : i64, scratch_operands = 3 : i64, tpu.core_type = #tpu.core_type<tc>, window_params = [{transform_indices = @transform_0, window_bounds = array<i64: 4, 128, 32>}, {transform_indices = @transform_1, window_bounds = array<i64: 4, 128, 32>}, {transform_indices = @transform_2, window_bounds = array<i64: 4, 128, 32>}, {transform_indices = @transform_3, window_bounds = array<i64: 4, 128, 32>}]} {
    %c0_i32 = arith.constant 0 : i32
    %0 = arith.cmpi eq, %arg2, %c0_i32 : i32
    %1 = arith.extui %0 : i1 to i32
    %c0_i32_0 = arith.constant 0 : i32
    %2 = arith.cmpi ne, %1, %c0_i32_0 : i32
    scf.if %2 {
      %cst_34 = arith.constant -1.000000e+30 : f32
      %42 = vector.broadcast %cst_34 : f32 to vector<4x128x1xf32>
      %c0_35 = arith.constant 0 : index
      %c0_36 = arith.constant 0 : index
      %c0_37 = arith.constant 0 : index
      %43 = vector.load %arg7[%c0_35, %c0_36, %c0_37] : memref<4x128x1xf32, #tpu.memory_space<vmem>>, vector<4x128x1xf32>
      tpu.vector_store %arg7[%c0_35, %c0_36, %c0_37], %42 {strides = array<i32>} : memref<4x128x1xf32, #tpu.memory_space<vmem>>, vector<4x128x1xf32>,
      %cst_38 = arith.constant 0.000000e+00 : f32
      %44 = vector.broadcast %cst_38 : f32 to vector<4x128x1xf32>
      %c0_39 = arith.constant 0 : index
      %c0_40 = arith.constant 0 : index
      %c0_41 = arith.constant 0 : index
      %45 = vector.load %arg8[%c0_39, %c0_40, %c0_41] : memref<4x128x1xf32, #tpu.memory_space<vmem>>, vector<4x128x1xf32>
      tpu.vector_store %arg8[%c0_39, %c0_40, %c0_41], %44 {strides = array<i32>} : memref<4x128x1xf32, #tpu.memory_space<vmem>>, vector<4x128x1xf32>,
      %cst_42 = arith.constant 0.000000e+00 : f32
      %46 = vector.broadcast %cst_42 : f32 to vector<4x128x32xf32>
      %c0_43 = arith.constant 0 : index
      %c0_44 = arith.constant 0 : index
      %c0_45 = arith.constant 0 : index
      %47 = vector.load %arg9[%c0_43, %c0_44, %c0_45] : memref<4x128x32xf32, #tpu.memory_space<vmem>>, vector<4x128x32xf32>
      tpu.vector_store %arg9[%c0_43, %c0_44, %c0_45], %46 {strides = array<i32>} : memref<4x128x32xf32, #tpu.memory_space<vmem>>, vector<4x128x32xf32>,
    } else {
    }
    %c0 = arith.constant 0 : index
    %c0_1 = arith.constant 0 : index
    %c0_2 = arith.constant 0 : index
    %3 = vector.load %arg3[%c0, %c0_1, %c0_2] : memref<4x128x32xf32, #tpu.memory_space<vmem>>, vector<4x128x32xf32>
    %cst = arith.constant 0.255034864 : f32
    %4 = vector.broadcast %cst : f32 to vector<4x128x32xf32>
    %5 = arith.mulf %3, %4 : vector<4x128x32xf32>
    %c0_3 = arith.constant 0 : index
    %c0_4 = arith.constant 0 : index
    %c0_5 = arith.constant 0 : index
    %6 = vector.load %arg4[%c0_3, %c0_4, %c0_5] : memref<4x128x32xf32, #tpu.memory_space<vmem>>, vector<4x128x32xf32>
    %c0_6 = arith.constant 0 : index
    %c0_7 = arith.constant 0 : index
    %c0_8 = arith.constant 0 : index
    %7 = vector.load %arg5[%c0_6, %c0_7, %c0_8] : memref<4x128x32xf32, #tpu.memory_space<vmem>>, vector<4x128x32xf32>
    %cst_9 = arith.constant dense<0.000000e+00> : vector<4x128x128xf32>
    %8 = tpu.matmul %5, %6, %cst_9 {dimension_numbers = #tpu.dot_dimension_numbers<[2], [2], [1], [1], [0, 0, 0, 1, 1, 1], [0], [0]>} : vector<4x128x32xf32>, vector<4x128x32xf32>, vector<4x128x128xf32> -> vector<4x128x128xf32>
    %c128_i32 = arith.constant 128 : i32
    %9 = arith.muli %arg2, %c128_i32 : i32
    %10 = tpu.iota {dimensions = array<i32: 2>} : vector<4x128x128xi32>
    %11 = vector.broadcast %9 : i32 to vector<4x128x128xi32>
    %12 = arith.addi %11, %10 : vector<4x128x128xi32>
    %c8_i32 = arith.constant 8 : i32
    %13 = vector.broadcast %c8_i32 : i32 to vector<4x128x128xi32>
    %14 = arith.cmpi slt, %12, %13 : vector<4x128x128xi32>
    %cst_10 = arith.constant -1.000000e+30 : f32
    %15 = vector.broadcast %cst_10 : f32 to vector<4x128x128xf32>
    %16 = arith.select %14, %8, %15 : vector<4x128x128xi1>, vector<4x128x128xf32>
    %c0_11 = arith.constant 0 : index
    %c0_12 = arith.constant 0 : index
    %c0_13 = arith.constant 0 : index
    %17 = vector.load %arg7[%c0_11, %c0_12, %c0_13] : memref<4x128x1xf32, #tpu.memory_space<vmem>>, vector<4x128x1xf32>
    %cst_14 = arith.constant dense<0xFF800000> : vector<4x128xf32>
    %18 = vector.multi_reduction <maximumf>, %16, %cst_14 [2] : vector<4x128x128xf32> to vector<4x128xf32>
    %19 = vector.shape_cast %18 : vector<4x128xf32> to vector<4x128x1xf32>
    %20 = arith.maximumf %17, %19 : vector<4x128x1xf32>
    %21 = arith.subf %17, %20 : vector<4x128x1xf32>
    %22 = math.exp2 %21 : vector<4x128x1xf32>
    %23 = vector.broadcast %20 : vector<4x128x1xf32> to vector<4x128x128xf32>
    %24 = arith.subf %16, %23 : vector<4x128x128xf32>
    %25 = math.exp2 %24 : vector<4x128x128xf32>
    %cst_15 = arith.constant dense<0.000000e+00> : vector<4x128xf32>
    %26 = vector.multi_reduction <add>, %25, %cst_15 [2] : vector<4x128x128xf32> to vector<4x128xf32>
    %27 = vector.shape_cast %26 : vector<4x128xf32> to vector<4x128x1xf32>
    %c0_16 = arith.constant 0 : index
    %c0_17 = arith.constant 0 : index
    %c0_18 = arith.constant 0 : index
    %28 = vector.load %arg8[%c0_16, %c0_17, %c0_18] : memref<4x128x1xf32, #tpu.memory_space<vmem>>, vector<4x128x1xf32>
    %29 = arith.mulf %22, %28 : vector<4x128x1xf32>
    %30 = arith.addf %29, %27 : vector<4x128x1xf32>
    %c0_19 = arith.constant 0 : index
    %c0_20 = arith.constant 0 : index
    %c0_21 = arith.constant 0 : index
    %31 = vector.load %arg8[%c0_19, %c0_20, %c0_21] : memref<4x128x1xf32, #tpu.memory_space<vmem>>, vector<4x128x1xf32>
    tpu.vector_store %arg8[%c0_19, %c0_20, %c0_21], %30 {strides = array<i32>} : memref<4x128x1xf32, #tpu.memory_space<vmem>>, vector<4x128x1xf32>,
    %cst_22 = arith.constant dense<0.000000e+00> : vector<4x128x32xf32>
    %32 = tpu.matmul %25, %7, %cst_22 {dimension_numbers = #tpu.dot_dimension_numbers<[2], [1], [1], [2], [0, 0, 0, 1, 1, 2], [0], [0]>} : vector<4x128x128xf32>, vector<4x128x32xf32>, vector<4x128x32xf32> -> vector<4x128x32xf32>
    %c0_23 = arith.constant 0 : index
    %c0_24 = arith.constant 0 : index
    %c0_25 = arith.constant 0 : index
    %33 = vector.load %arg9[%c0_23, %c0_24, %c0_25] : memref<4x128x32xf32, #tpu.memory_space<vmem>>, vector<4x128x32xf32>
    %34 = vector.broadcast %22 : vector<4x128x1xf32> to vector<4x128x32xf32>
    %35 = arith.mulf %34, %33 : vector<4x128x32xf32>
    %36 = arith.addf %35, %32 : vector<4x128x32xf32>
    %c0_26 = arith.constant 0 : index
    %c0_27 = arith.constant 0 : index
    %c0_28 = arith.constant 0 : index
    %37 = vector.load %arg9[%c0_26, %c0_27, %c0_28] : memref<4x128x32xf32, #tpu.memory_space<vmem>>, vector<4x128x32xf32>
    tpu.vector_store %arg9[%c0_26, %c0_27, %c0_28], %36 {strides = array<i32>} : memref<4x128x32xf32, #tpu.memory_space<vmem>>, vector<4x128x32xf32>,
    %c0_29 = arith.constant 0 : index
    %c0_30 = arith.constant 0 : index
    %c0_31 = arith.constant 0 : index
    %38 = vector.load %arg7[%c0_29, %c0_30, %c0_31] : memref<4x128x1xf32, #tpu.memory_space<vmem>>, vector<4x128x1xf32>
    tpu.vector_store %arg7[%c0_29, %c0_30, %c0_31], %20 {strides = array<i32>} : memref<4x128x1xf32, #tpu.memory_space<vmem>>, vector<4x128x1xf32>,
    %c0_i32_32 = arith.constant 0 : i32
    %39 = arith.cmpi eq, %arg2, %c0_i32_32 : i32
    %40 = arith.extui %39 : i1 to i32
    %c0_i32_33 = arith.constant 0 : i32
    %41 = arith.cmpi ne, %40, %c0_i32_33 : i32
    scf.if %41 {
      %c0_34 = arith.constant 0 : index
      %c0_35 = arith.constant 0 : index
      %c0_36 = arith.constant 0 : index
      %42 = vector.load %arg8[%c0_34, %c0_35, %c0_36] : memref<4x128x1xf32, #tpu.memory_space<vmem>>, vector<4x128x1xf32>
      %43 = tpu.reciprocal %42 {approx = true} : vector<4x128x1xf32> -> vector<4x128x1xf32>
      %c0_37 = arith.constant 0 : index
      %c0_38 = arith.constant 0 : index
      %c0_39 = arith.constant 0 : index
      %44 = vector.load %arg9[%c0_37, %c0_38, %c0_39] : memref<4x128x32xf32, #tpu.memory_space<vmem>>, vector<4x128x32xf32>
      %45 = vector.broadcast %43 : vector<4x128x1xf32> to vector<4x128x32xf32>
      %46 = arith.mulf %44, %45 : vector<4x128x32xf32>
      %c0_40 = arith.constant 0 : index
      %c0_41 = arith.constant 0 : index
      %c0_42 = arith.constant 0 : index
      %47 = vector.load %arg6[%c0_40, %c0_41, %c0_42] : memref<4x128x32xf32, #tpu.memory_space<vmem>>, vector<4x128x32xf32>
      tpu.vector_store %arg6[%c0_40, %c0_41, %c0_42], %46 {strides = array<i32>} : memref<4x128x32xf32, #tpu.memory_space<vmem>>, vector<4x128x32xf32>,
    } else {
    }
    return
  }
  func.func @transform_0(%arg0: i32, %arg1: i32, %arg2: i32) -> (i32, i32, i32) {
    %c0_i32 = arith.constant 0 : i32
    %c0_i32_0 = arith.constant 0 : i32
    return %arg0, %arg1, %c0_i32 : i32, i32, i32
  }
  func.func @transform_1(%arg0: i32, %arg1: i32, %arg2: i32) -> (i32, i32, i32) {
    %c0_i32 = arith.constant 0 : i32
    %c0_i32_0 = arith.constant 0 : i32
    return %arg0, %arg2, %c0_i32 : i32, i32, i32
  }
  func.func @transform_2(%arg0: i32, %arg1: i32, %arg2: i32) -> (i32, i32, i32) {
    %c0_i32 = arith.constant 0 : i32
    %c0_i32_0 = arith.constant 0 : i32
    return %arg0, %arg2, %c0_i32 : i32, i32, i32
  }
  func.func @transform_3(%arg0: i32, %arg1: i32, %arg2: i32) -> (i32, i32, i32) {
    %c0_i32 = arith.constant 0 : i32
    %c0_i32_0 = arith.constant 0 : i32
    return %arg0, %arg1, %c0_i32 : i32, i32, i32
  }
}

</mosaic_0001>

<bundles_post_ra>
// kernel: tpu_custom_call.1
= control target key start
LH: loop header
LB: loop body
LE: loop exit
PB: predicated region body
PF: predicated region fallthrough
CT: control target
= control target key end

     0   :  { %s6640_s12 = smov 0   ;;  %s6642_s13 = smov 0   ;;  %s9547_s0 = inlined_call_operand.vmem [shape: f32[8,128,32], index: 0, kind: input, shape index: {}]   ;;  %s9548_s1 = inlined_call_operand.vmem [shape: f32[8,128,32], index: 1, kind: input, shape index: {}]   ;;  %s9549_s2 = inlined_call_operand.vmem [shape: f32[8,128,32], index: 2, kind: input, shape index: {}]   ;;  %s9550_s3 = inlined_call_operand.vmem [shape: f32[8,128,32], index: 3, kind: output, shape index: {}]  }
   0x1   :  { %s6644_s14 = smov 0  }
   0x2 LB: > { %s32_s15 = sadd.s32 1, %s6611_s13  ;;  %p5009_p0 = scmp.ge.s32.totalorder %s6615_s14, 1  ;;  %s6615_s14 = sphi %s6644_s14, %s13_s14   ;;  %s6611_s13 = sphi %s6642_s13, %s10065_s13   ;;  %s6607_s12 = sphi %s6640_s12, %s10064_s12  }
   0x3   : > { %p34_p1 = scmp.ge.s32.totalorder %s32_s15, 2  ;;  %p205_p2 = scmp.lt.s32.totalorder %s6615_s14, 3 }
   0x5   : > { %s10067_s15 = smov (%p34_p1, %s32_s15), 0  ;;  %p206_p3 = pnand %p5009_p0, %p205_p2 }
   0x7   : > { %209 = sbr.rel (%p206_p3) target bundleno = 1172 (0x494), region = 32 }
   0xe   : > { %s5010_s16 = sshll.u32 %s6607_s12, 2  ;;  %vm440_vm0 = vcmask 261120   ;;  %vm311_vm3 = vcmask 7168  }
   0xf   : > { %p261_p4 = scmp.lt.s32.totalorder %s5010_s16, 7  ;;  %vm6668_vm1 = vmpackc.low %vm440_vm0, %vm440_vm0 }
  0x11   : > { %s10069_s16 = smov (!%p261_p4, %s5010_s16), 7 }
  0x12   : > { %s6658_s17 = sshll.u32 %s10069_s16, 7 }
  0x13   : > { %s6664_s20 = scalar_lea.vmem %s9548_s1, %s6658_s17  ;;  %s6700_s23 = scalar_lea.vmem %s9547_s0, %s6658_s17 }
  0x14   : > { %v633_v1 = vld [vmem:[%s6664_s20] sm:$0xff]  ;;  %v634_v2 = vld [vmem:[%s6664_s20 + $0x8] sm:$0xff]  ;;  %v635_v6 = vld [vmem:[%s6664_s20 + $0x10] sm:$0xff]  ;;  %s7745_s26 = scalar_lea.vmem %s9549_s2, %s6658_s17  ;;  %s9398_s29 = scalar_lea.vmem %s9550_s3, %s6658_s17 }
  0x15   : > { %v649_v3 = vld [vmem:[%s6664_s20 + $0x80] sm:$0xff]  ;;  %v5860_v4 = vpack.c.bf16 %v634_v2, %v633_v1  ;;  %v650_v5 = vld [vmem:[%s6664_s20 + $0x88] sm:$0xff]  ;;  %v636_v7 = vld [vmem:[%s6664_s20 + $0x18] sm:$0xff] }
  0x16   : > { %v5908_v8 = vpack.c.bf16 %v650_v5, %v649_v3  ;;  %v5866_v9 = vpack.c.bf16 %v636_v7, %v635_v6  ;;  %v651_v10 = vld [vmem:[%s6664_s20 + $0x90] sm:$0xff]  ;;  %v652_v11 = vld [vmem:[%s6664_s20 + $0x98] sm:$0xff]  ;;  %v637_v13 = vld [vmem:[%s6664_s20 + $0x20] sm:$0xff] }
  0x17   : > { %5862 = vmatprep.subr.msk.bf16.mxu0 %vm6668_vm1, %v5860_v4  ;;  %v5914_v12 = vpack.c.bf16 %v652_v11, %v651_v10  ;;  %v638_v14 = vld [vmem:[%s6664_s20 + $0x28] sm:$0xff]  ;;  %v653_v15 = vld [vmem:[%s6664_s20 + $0xa0] sm:$0xff]  ;;  %v639_v23 = vld [vmem:[%s6664_s20 + $0x30] sm:$0xff] }
  0x18   : > { %5910 = vmatprep.subr.msk.bf16.mxu1 %vm6668_vm1, %v5908_v8  ;;  %5865 = vmatpush3.bf16.xpose.msk.msra.mxu0 %vm6668_vm1, %v5860_v4  ;;  %v654_v16 = vld [vmem:[%s6664_s20 + $0xa8] sm:$0xff]  ;;  %v5872_v17 = vpack.c.bf16 %v638_v14, %v637_v13  ;;  %v505_v19 = vld [vmem:[%s6700_s23] sm:$0xff]  ;;  %v640_v24 = vld [vmem:[%s6664_s20 + $0x38] sm:$0xff] }
  0x19   : > { %5913 = vmatpush3.bf16.xpose.msk.msra.mxu1 %vm6668_vm1, %v5908_v8  ;;  %5868 = vmatprep.subr.msk.bf16.mxu0 %vm6668_vm1, %v5866_v9  ;;  %v5920_v18 = vpack.c.bf16 %v654_v16, %v653_v15  ;;  %v569_v20 = vmul.f32 0.25503486, %v505_v19  ;;  %v521_v21 = vld [vmem:[%s6700_s23 + $0x80] sm:$0xff]  ;;  %v655_v25 = vld [vmem:[%s6664_s20 + $0xb0] sm:$0xff]  ;;  %v656_v26 = vld [vmem:[%s6664_s20 + $0xb8] sm:$0xff]  ;;  %v5878_v27 = vpack.c.bf16 %v640_v24, %v639_v23 }
  0x1a   : > { %5916 = vmatprep.subr.msk.bf16.mxu1 %vm6668_vm1, %v5914_v12  ;;  %v585_v22 = vmul.f32 0.25503486, %v521_v21  ;;  %v5926_v28 = vpack.c.bf16 %v656_v26, %v655_v25  ;;  %v641_v29 = vld [vmem:[%s6664_s20 + $0x40] sm:$0xff]  ;;  %v642_v30 = vld [vmem:[%s6664_s20 + $0x48] sm:$0xff]  ;;  %v643_v35 = vld [vmem:[%s6664_s20 + $0x50] sm:$0xff] }
  0x1b   : > { %5444 = vmatprep.mubr.msk.f32.mxu0 %vm440_vm0, %v569_v20  ;;  %v657_v31 = vld [vmem:[%s6664_s20 + $0xc0] sm:$0xff]  ;;  %v658_v32 = vld [vmem:[%s6664_s20 + $0xc8] sm:$0xff]  ;;  %v5884_v33 = vpack.c.bf16 %v642_v30, %v641_v29  ;;  %v644_v36 = vld [vmem:[%s6664_s20 + $0x58] sm:$0xff] }
  0x1c   : > { %5500 = vmatprep.mubr.msk.f32.mxu1 %vm440_vm0, %v585_v22  ;;  %v5932_v34 = vpack.c.bf16 %v658_v32, %v657_v31  ;;  %v659_v37 = vld [vmem:[%s6664_s20 + $0xd0] sm:$0xff]  ;;  %v660_v38 = vld [vmem:[%s6664_s20 + $0xd8] sm:$0xff]  ;;  %v5890_v39 = vpack.c.bf16 %v644_v36, %v643_v35  ;;  %v645_v41 = vld [vmem:[%s6664_s20 + $0x60] sm:$0xff] }
  0x1d   : > { %v5938_v40 = vpack.c.bf16 %v660_v38, %v659_v37  ;;  %v646_v42 = vld [vmem:[%s6664_s20 + $0x68] sm:$0xff]  ;;  %v661_v43 = vld [vmem:[%s6664_s20 + $0xe0] sm:$0xff]  ;;  %v647_v47 = vld [vmem:[%s6664_s20 + $0x70] sm:$0xff] }
  0x1e   : > { %v662_v44 = vld [vmem:[%s6664_s20 + $0xe8] sm:$0xff]  ;;  %v5896_v45 = vpack.c.bf16 %v646_v42, %v645_v41  ;;  %v648_v48 = vld [vmem:[%s6664_s20 + $0x78] sm:$0xff]  ;;  %v663_v49 = vld [vmem:[%s6664_s20 + $0xf0] sm:$0xff] }
  0x1f   : > { %v5944_v46 = vpack.c.bf16 %v662_v44, %v661_v43  ;;  %v664_v50 = vld [vmem:[%s6664_s20 + $0xf8] sm:$0xff]  ;;  %v5902_v51 = vpack.c.bf16 %v648_v48, %v647_v47  ;;  %v665_v53 = vld [vmem:[%s6664_s20 + $0x100] sm:$0xff]  ;;  %v666_v54 = vld [vmem:[%s6664_s20 + $0x108] sm:$0xff] }
  0x20   : > { %5871 = vmatpush3.bf16.xpose.msk.msra.mxu0 %vm6668_vm1, %v5866_v9  ;;  %v5950_v52 = vpack.c.bf16 %v664_v50, %v663_v49  ;;  %v681_v55 = vld [vmem:[%s6664_s20 + $0x180] sm:$0xff]  ;;  %v682_v56 = vld [vmem:[%s6664_s20 + $0x188] sm:$0xff]  ;;  %v5956_v57 = vpack.c.bf16 %v666_v54, %v665_v53  ;;  %v507_v61 = vld [vmem:[%s6700_s23 + $0x10] sm:$0xff] }
  0x21   : > { %5919 = vmatpush3.bf16.xpose.msk.msra.mxu1 %vm6668_vm1, %v5914_v12  ;;  %5874 = vmatprep.subr.msk.bf16.mxu0 %vm6668_vm1, %v5872_v17  ;;  %v6004_v58 = vpack.c.bf16 %v682_v56, %v681_v55  ;;  %v506_v59 = vld [vmem:[%s6700_s23 + $0x8] sm:$0xff]  ;;  %v523_v63 = vld [vmem:[%s6700_s23 + $0x90] sm:$0xff]  ;;  %v668_v2 = vld [vmem:[%s6664_s20 + $0x118] sm:$0xff]  ;;  %v571_v7 = vmul.f32 0.25503486, %v507_v61 }
  0x22   : > { %5922 = vmatprep.subr.msk.bf16.mxu1 %vm6668_vm1, %v5920_v18  ;;  %v522_v60 = vld [vmem:[%s6700_s23 + $0x88] sm:$0xff]  ;;  %v570_v62 = vmul.f32 0.25503486, %v506_v59  ;;  %v667_v1 = vld [vmem:[%s6664_s20 + $0x110] sm:$0xff]  ;;  %v508_v4 = vld [vmem:[%s6700_s23 + $0x18] sm:$0xff] }
  0x23   : > { %v586_v3 = vmul.f32 0.25503486, %v522_v60  ;;  %v683_v5 = vld [vmem:[%s6664_s20 + $0x190] sm:$0xff]  ;;  %v684_v6 = vld [vmem:[%s6664_s20 + $0x198] sm:$0xff]  ;;  %v509_v9 = vld [vmem:[%s6700_s23 + $0x20] sm:$0xff]  ;;  %v5962_v11 = vpack.c.bf16 %v668_v2, %v667_v1 }
  0x24   : > { %v524_v8 = vld [vmem:[%s6700_s23 + $0x98] sm:$0xff]  ;;  %v587_v10 = vmul.f32 0.25503486, %v523_v63  ;;  %v525_v12 = vld [vmem:[%s6700_s23 + $0xa0] sm:$0xff]  ;;  %v572_v13 = vmul.f32 0.25503486, %v508_v4  ;;  %v6010_v14 = vpack.c.bf16 %v684_v6, %v683_v5 }
  0x25   : > { %v588_v15 = vmul.f32 0.25503486, %v524_v8  ;;  %v573_v16 = vmul.f32 0.25503486, %v509_v9  ;;  %v526_v19 = vld [vmem:[%s6700_s23 + $0xa8] sm:$0xff]  ;;  %v669_v20 = vld [vmem:[%s6664_s20 + $0x120] sm:$0xff] }
  0x26   : > { %v670_v21 = vld [vmem:[%s6664_s20 + $0x128] sm:$0xff]  ;;  %v685_v23 = vld [vmem:[%s6664_s20 + $0x1a0] sm:$0xff]  ;;  %v511_v25 = vld [vmem:[%s6700_s23 + $0x30] sm:$0xff]  ;;  %v590_v26 = vmul.f32 0.25503486, %v526_v19 }
  0x27   : > { %v686_v24 = vld [vmem:[%s6664_s20 + $0x1a8] sm:$0xff]  ;;  %v5968_v29 = vpack.c.bf16 %v670_v21, %v669_v20  ;;  %v528_v30 = vld [vmem:[%s6700_s23 + $0xb8] sm:$0xff]  ;;  %v513_v31 = vld [vmem:[%s6700_s23 + $0x40] sm:$0xff] }
  0x28   : > { %5877 = vmatpush3.bf16.xpose.msk.msra.mxu0 %vm6668_vm1, %v5872_v17  ;;  %v510_v17 = vld [vmem:[%s6700_s23 + $0x28] sm:$0xff]  ;;  %v6016_v32 = vpack.c.bf16 %v686_v24, %v685_v23  ;;  %v592_v37 = vmul.f32 0.25503486, %v528_v30  ;;  %v577_v38 = vmul.f32 0.25503486, %v513_v31  ;;  %v671_v42 = vld [vmem:[%s6664_s20 + $0x130] sm:$0xff] }
  0x29   : > { %5925 = vmatpush3.bf16.xpose.msk.msra.mxu1 %vm6668_vm1, %v5920_v18  ;;  %5880 = vmatprep.subr.msk.bf16.mxu0 %vm6668_vm1, %v5878_v27  ;;  %v589_v18 = vmul.f32 0.25503486, %v525_v12  ;;  %v574_v22 = vmul.f32 0.25503486, %v510_v17  ;;  %v530_v41 = vld [vmem:[%s6700_s23 + $0xc8] sm:$0xff]  ;;  %v672_v43 = vld [vmem:[%s6664_s20 + $0x138] sm:$0xff] }
  0x2a   : > { %5928 = vmatprep.subr.msk.bf16.mxu1 %vm6668_vm1, %v5926_v28  ;;  %v687_v44 = vld [vmem:[%s6664_s20 + $0x1b0] sm:$0xff]  ;;  %v594_v48 = vmul.f32 0.25503486, %v530_v41  ;;  %v516_v49 = vld [vmem:[%s6700_s23 + $0x58] sm:$0xff]  ;;  %v517_v53 = vld [vmem:[%s6700_s23 + $0x60] sm:$0xff] }
  0x2b   : > { %v515_v47 = vld [vmem:[%s6700_s23 + $0x50] sm:$0xff]  ;;  %v533_v56 = vld [vmem:[%s6700_s23 + $0xe0] sm:$0xff]  ;;  %v581_v60 = vmul.f32 0.25503486, %v517_v53  ;;  %v518_v61 = vld [vmem:[%s6700_s23 + $0x68] sm:$0xff] }
  0x2c   : > { %v531_v50 = vld [vmem:[%s6700_s23 + $0xd0] sm:$0xff]  ;;  %v579_v55 = vmul.f32 0.25503486, %v515_v47  ;;  %v534_v63 = vld [vmem:[%s6700_s23 + $0xe8] sm:$0xff]  ;;  %v673_v1 = vld [vmem:[%s6664_s20 + $0x140] sm:$0xff] }
  0x2d   : > { %v674_v2 = vld [vmem:[%s6664_s20 + $0x148] sm:$0xff]  ;;  %v582_v5 = vmul.f32 0.25503486, %v518_v61  ;;  %v519_v6 = vld [vmem:[%s6700_s23 + $0x70] sm:$0xff]  ;;  %v520_v8 = vld [vmem:[%s6700_s23 + $0x78] sm:$0xff] }
  0x2e   : > { %v690_v4 = vld [vmem:[%s6664_s20 + $0x1c8] sm:$0xff]  ;;  %v535_v9 = vld [vmem:[%s6700_s23 + $0xf0] sm:$0xff]  ;;  %v537_v12 = vld [vmem:[%s6700_s23 + $0x100] sm:$0xff] }
  0x2f   : > { %v599_v17 = vmul.f32 0.25503486, %v535_v9  ;;  %v601_v19 = vmul.f32 0.25503486, %v537_v12  ;;  %v675_v21 = vld [vmem:[%s6664_s20 + $0x150] sm:$0xff]  ;;  %v692_v24 = vld [vmem:[%s6664_s20 + $0x1d8] sm:$0xff] }
  0x30   : > { %5883 = vmatpush3.bf16.xpose.msk.msra.mxu0 %vm6668_vm1, %v5878_v27  ;;  %v512_v27 = vld [vmem:[%s6700_s23 + $0x38] sm:$0xff]  ;;  %v691_v23 = vld [vmem:[%s6664_s20 + $0x1d0] sm:$0xff]  ;;  %v694_v30 = vld [vmem:[%s6664_s20 + $0x1e8] sm:$0xff] }
  0x31   : > { %5931 = vmatpush3.bf16.xpose.msk.msra.mxu1 %vm6668_vm1, %v5926_v28  ;;  %5886 = vmatprep.subr.msk.bf16.mxu0 %vm6668_vm1, %v5884_v33  ;;  %v527_v28 = vld [vmem:[%s6700_s23 + $0xb0] sm:$0xff]  ;;  %v576_v35 = vmul.f32 0.25503486, %v512_v27  ;;  %v677_v27 = vld [vmem:[%s6664_s20 + $0x160] sm:$0xff]  ;;  %v542_v53 = vld [vmem:[%s6700_s23 + $0x128] sm:$0xff] }
  0x32   : > { %5934 = vmatprep.subr.msk.bf16.mxu1 %vm6668_vm1, %v5932_v34  ;;  %v591_v36 = vmul.f32 0.25503486, %v527_v28  ;;  %v678_v28 = vld [vmem:[%s6664_s20 + $0x168] sm:$0xff]  ;;  %v539_v41 = vld [vmem:[%s6700_s23 + $0x110] sm:$0xff]  ;;  %v544_v61 = vld [vmem:[%s6700_s23 + $0x138] sm:$0xff] }
  0x33   : > { %v5992_v31 = vpack.c.bf16 %v678_v28, %v677_v27  ;;  %v547_v9 = vld [vmem:[%s6700_s23 + $0x150] sm:$0xff] }
  0x38   : > { %5889 = vmatpush3.bf16.xpose.msk.msra.mxu0 %vm6668_vm1, %v5884_v33  ;;  %v575_v33 = vmul.f32 0.25503486, %v511_v25 }
  0x39   : > { %5937 = vmatpush3.bf16.xpose.msk.msra.mxu1 %vm6668_vm1, %v5932_v34  ;;  %5892 = vmatprep.subr.msk.bf16.mxu0 %vm6668_vm1, %v5890_v39  ;;  %v529_v34 = vld [vmem:[%s6700_s23 + $0xc0] sm:$0xff] }
  0x3a   : > { %5940 = vmatprep.subr.msk.bf16.mxu1 %vm6668_vm1, %v5938_v40 }
  0x40   : > { %5895 = vmatpush3.bf16.xpose.msk.msra.mxu0 %vm6668_vm1, %v5890_v39  ;;  %v514_v39 = vld [vmem:[%s6700_s23 + $0x48] sm:$0xff] }
  0x41   : > { %5943 = vmatpush3.bf16.xpose.msk.msra.mxu1 %vm6668_vm1, %v5938_v40  ;;  %5898 = vmatprep.subr.msk.bf16.mxu0 %vm6668_vm1, %v5896_v45  ;;  %v593_v40 = vmul.f32 0.25503486, %v529_v34  ;;  %v680_v34 = vld [vmem:[%s6664_s20 + $0x178] sm:$0xff] }
  0x42   : > { %5946 = vmatprep.subr.msk.bf16.mxu1 %vm6668_vm1, %v5944_v46 }
  0x48   : > { %5901 = vmatpush3.bf16.xpose.msk.msra.mxu0 %vm6668_vm1, %v5896_v45  ;;  %v688_v45 = vld [vmem:[%s6664_s20 + $0x1b8] sm:$0xff] }
  0x49   : > { %5949 = vmatpush3.bf16.xpose.msk.msra.mxu1 %vm6668_vm1, %v5944_v46  ;;  %5904 = vmatprep.subr.msk.bf16.mxu0 %vm6668_vm1, %v5902_v51  ;;  %v578_v46 = vmul.f32 0.25503486, %v514_v39  ;;  %v6022_v54 = vpack.c.bf16 %v688_v45, %v687_v44  ;;  %v538_v39 = vld [vmem:[%s6700_s23 + $0x108] sm:$0xff]  ;;  %v603_v45 = vmul.f32 0.25503486, %v539_v41 }
  0x4a   : > { %5952 = vmatprep.subr.msk.bf16.mxu1 %vm6668_vm1, %v5950_v52 }
  0x50   : > { %5907 = vmatpush3.bf16.xpose.msk.msra.mxu0 %vm6668_vm1, %v5902_v51  ;;  %v5974_v51 = vpack.c.bf16 %v672_v43, %v671_v42  ;;  %v555_v42 = vld [vmem:[%s6700_s23 + $0x190] sm:$0xff]  ;;  %v602_v43 = vmul.f32 0.25503486, %v538_v39 }
  0x51   : > { %5955 = vmatpush3.bf16.xpose.msk.msra.mxu1 %vm6668_vm1, %v5950_v52  ;;  %5958 = vmatprep.subr.msk.bf16.mxu0 %vm6668_vm1, %v5956_v57  ;;  %v532_v52 = vld [vmem:[%s6700_s23 + $0xd8] sm:$0xff]  ;;  %v619_v47 = vmul.f32 0.25503486, %v555_v42 }
  0x52   : > { %6006 = vmatprep.subr.msk.bf16.mxu1 %vm6668_vm1, %v6004_v58  ;;  %v596_v59 = vmul.f32 0.25503486, %v532_v52 }
  0x57   : > { %5445 = vmatmul.mubr.msk.f32.vlgmr.msra.gmra.mrb[0].mxu0 %vm440_vm0, %v570_v62  ;;  %v597_v62 = vmul.f32 0.25503486, %v533_v56  ;;  %v543_v56 = vld [vmem:[%s6700_s23 + $0x130] sm:$0xff] }
  0x58   : > { %5501 = vmatmul.mubr.msk.f32.vlgmr.msra.gmra.mrb[0].mxu1 %vm440_vm0, %v586_v3  ;;  %5961 = vmatpush3.bf16.xpose.msk.msra.mxu0 %vm6668_vm1, %v5956_v57  ;;  %v580_v57 = vmul.f32 0.25503486, %v516_v49  ;;  %v689_v3 = vld [vmem:[%s6664_s20 + $0x1c0] sm:$0xff] }
  0x59   : > { %5447 = vmatprep.mubr.msk.f32.mxu0 %vm440_vm0, %v571_v7  ;;  %6009 = vmatpush3.bf16.xpose.msk.msra.mxu1 %vm6668_vm1, %v6004_v58  ;;  %v595_v58 = vmul.f32 0.25503486, %v531_v50  ;;  %v598_v7 = vmul.f32 0.25503486, %v534_v63  ;;  %v541_v49 = vld [vmem:[%s6700_s23 + $0x120] sm:$0xff]  ;;  %v560_v63 = vld [vmem:[%s6700_s23 + $0x1b8] sm:$0xff] }
  0x5a   : > { %5503 = vmatprep.mubr.msk.f32.mxu1 %vm440_vm0, %v587_v10  ;;  %5964 = vmatprep.subr.msk.bf16.mxu0 %vm6668_vm1, %v5962_v11  ;;  %v5980_v10 = vpack.c.bf16 %v674_v2, %v673_v1  ;;  %v557_v50 = vld [vmem:[%s6700_s23 + $0x1a0] sm:$0xff]  ;;  %v605_v52 = vmul.f32 0.25503486, %v541_v49 }
  0x5b   : > { %5448 = vmatmul.mubr.msk.f32.gmra.mrb[2].mxu0 %vm440_vm0, %v572_v13  ;;  %6012 = vmatprep.subr.msk.bf16.mxu1 %vm6668_vm1, %v6010_v14  ;;  %v6028_v13 = vpack.c.bf16 %v690_v4, %v689_v3  ;;  %v545_v1 = vld [vmem:[%s6700_s23 + $0x140] sm:$0xff]  ;;  %v608_v3 = vmul.f32 0.25503486, %v544_v61  ;;  %v624_v4 = vmul.f32 0.25503486, %v560_v63 }
  0x5c   : > { %5504 = vmatmul.mubr.msk.f32.gmra.mrb[2].mxu1 %vm440_vm0, %v588_v15  ;;  %5450 = vmatprep.mubr.msk.f32.mxu0 %vm440_vm0, %v573_v16  ;;  %v553_v15 = vld [vmem:[%s6700_s23 + $0x180] sm:$0xff]  ;;  %v584_v16 = vmul.f32 0.25503486, %v520_v8  ;;  %v562_v8 = vld [vmem:[%s6700_s23 + $0x1c8] sm:$0xff] }
  0x5d   : > { %5506 = vmatprep.mubr.msk.f32.mxu1 %vm440_vm0, %v589_v18  ;;  %v617_v20 = vmul.f32 0.25503486, %v553_v15  ;;  %v561_v2 = vld [vmem:[%s6700_s23 + $0x1c0] sm:$0xff]  ;;  %v626_v12 = vmul.f32 0.25503486, %v562_v8 }
  0x5f   : > { %5451 = vmatmul.mubr.msk.f32.gmra.mrb[4].mxu0 %vm440_vm0, %v574_v22  ;;  %v676_v22 = vld [vmem:[%s6664_s20 + $0x158] sm:$0xff] }
  0x60   : > { %5967 = vmatpush3.bf16.xpose.msk.msra.mxu0 %vm6668_vm1, %v5962_v11  ;;  %5507 = vmatmul.mubr.msk.f32.gmra.mrb[4].mxu1 %vm440_vm0, %v590_v26  ;;  %v536_v11 = vld [vmem:[%s6700_s23 + $0xf8] sm:$0xff]  ;;  %v5986_v25 = vpack.c.bf16 %v676_v22, %v675_v21  ;;  %v6034_v26 = vpack.c.bf16 %v692_v24, %v691_v23  ;;  %v550_v22 = vld [vmem:[%s6700_s23 + $0x168] sm:$0xff] }
  0x61   : > { %6015 = vmatpush3.bf16.xpose.msk.msra.mxu1 %vm6668_vm1, %v6010_v14  ;;  %5970 = vmatprep.subr.msk.bf16.mxu0 %vm6668_vm1, %v5968_v29  ;;  %v583_v14 = vmul.f32 0.25503486, %v519_v6  ;;  %v600_v18 = vmul.f32 0.25503486, %v536_v11  ;;  %v546_v6 = vld [vmem:[%s6700_s23 + $0x148] sm:$0xff] }
  0x62   : > { %6018 = vmatprep.subr.msk.bf16.mxu1 %vm6668_vm1, %v6016_v32  ;;  %5453 = vmatprep.mubr.msk.f32.mxu0 %vm440_vm0, %v575_v33  ;;  %v679_v33 = vld [vmem:[%s6664_s20 + $0x170] sm:$0xff]  ;;  %v610_v11 = vmul.f32 0.25503486, %v546_v6  ;;  %v566_v24 = vld [vmem:[%s6700_s23 + $0x1e8] sm:$0xff]  ;;  %v614_v27 = vmul.f32 0.25503486, %v550_v22 }
  0x63   : > { %5454 = vmatmul.mubr.msk.f32.gmra.mrb[6].mxu0 %vm440_vm0, %v576_v35  ;;  %5509 = vmatprep.mubr.msk.f32.mxu1 %vm440_vm0, %v591_v36  ;;  %v695_v35 = vld [vmem:[%s6664_s20 + $0x1f0] sm:$0xff]  ;;  %v696_v36 = vld [vmem:[%s6664_s20 + $0x1f8] sm:$0xff]  ;;  %v630_v28 = vmul.f32 0.25503486, %v566_v24 }
  0x64   : > { %5510 = vmatmul.mubr.msk.f32.gmra.mrb[6].mxu1 %vm440_vm0, %v592_v37  ;;  %5456 = vmatprep.mubr.msk.f32.mxu0 %vm440_vm0, %v577_v38  ;;  %v5998_v37 = vpack.c.bf16 %v680_v34, %v679_v33  ;;  %v6046_v38 = vpack.c.bf16 %v696_v36, %v695_v35  ;;  %v1727_v35 = vlaneseq }
  0x65   : > { %5512 = vmatprep.mubr.msk.f32.mxu1 %vm440_vm0, %v593_v40  ;;  %v554_v40 = vld [vmem:[%s6700_s23 + $0x188] sm:$0xff] }
  0x66   : > { %v618_v44 = vmul.f32 0.25503486, %v554_v40  ;;  %v6998_v36 = vand.u32 127, %v1727_v35 }
  0x67   : > { %5457 = vmatmul.mubr.msk.f32.gmra.mrb[8].mxu0 %vm440_vm0, %v578_v46  ;;  %v540_v46 = vld [vmem:[%s6700_s23 + $0x118] sm:$0xff] }
  0x68   : > { %5973 = vmatpush3.bf16.xpose.msk.msra.mxu0 %vm6668_vm1, %v5968_v29  ;;  %5513 = vmatmul.mubr.msk.f32.gmra.mrb[8].mxu1 %vm440_vm0, %v594_v48  ;;  %v693_v29 = vld [vmem:[%s6664_s20 + $0x1e0] sm:$0xff]  ;;  %v556_v48 = vld [vmem:[%s6700_s23 + $0x198] sm:$0xff]  ;;  %vm1731_vm2 = vcmp.lt.s32.totalorder %v6998_v36, 8 }
  0x69   : > { %6021 = vmatpush3.bf16.xpose.msk.msra.mxu1 %vm6668_vm1, %v6016_v32  ;;  %5976 = vmatprep.subr.msk.bf16.mxu0 %vm6668_vm1, %v5974_v51  ;;  %v6040_v32 = vpack.c.bf16 %v694_v30, %v693_v29  ;;  %v620_v0 = vmul.f32 0.25503486, %v556_v48  ;;  %v552_v30 = vld [vmem:[%s6700_s23 + $0x178] sm:$0xff]  ;;  %v697_v36 = vld [vmem:[%s7745_s26] sm:$0xff] }
  0x6a   : > { %6024 = vmatprep.subr.msk.bf16.mxu1 %vm6668_vm1, %v6022_v54  ;;  %5459 = vmatprep.mubr.msk.f32.mxu0 %vm440_vm0, %v579_v55  ;;  %v558_v55 = vld [vmem:[%s6700_s23 + $0x1a8] sm:$0xff]  ;;  %v616_v33 = vmul.f32 0.25503486, %v552_v30 }
  0x6b   : > { %5460 = vmatmul.mubr.msk.f32.gmra.mrb[10].mxu0 %vm440_vm0, %v580_v57  ;;  %5515 = vmatprep.mubr.msk.f32.mxu1 %vm440_vm0, %v595_v58  ;;  %v559_v57 = vld [vmem:[%s6700_s23 + $0x1b0] sm:$0xff]  ;;  %v606_v58 = vmul.f32 0.25503486, %v542_v53 }
  0x6c   : > { %5516 = vmatmul.mubr.msk.f32.gmra.mrb[10].mxu1 %vm440_vm0, %v596_v59  ;;  %5462 = vmatprep.mubr.msk.f32.mxu0 %vm440_vm0, %v581_v60  ;;  %v622_v59 = vmul.f32 0.25503486, %v558_v55  ;;  %v607_v60 = vmul.f32 0.25503486, %v543_v56 }
  0x6d   : > { %5518 = vmatprep.mubr.msk.f32.mxu1 %vm440_vm0, %v597_v62  ;;  %v623_v62 = vmul.f32 0.25503486, %v559_v57 }
  0x6f   : > { %5463 = vmatmul.mubr.msk.f32.gmra.mrb[12].mxu0 %vm440_vm0, %v582_v5  ;;  %v609_v5 = vmul.f32 0.25503486, %v545_v1 }
  0x70   : > { %5979 = vmatpush3.bf16.xpose.msk.msra.mxu0 %vm6668_vm1, %v5974_v51  ;;  %5519 = vmatmul.mubr.msk.f32.gmra.mrb[12].mxu1 %vm440_vm0, %v598_v7  ;;  %v604_v51 = vmul.f32 0.25503486, %v540_v46  ;;  %v625_v7 = vmul.f32 0.25503486, %v561_v2 }
  0x71   : > { %6027 = vmatpush3.bf16.xpose.msk.msra.mxu1 %vm6668_vm1, %v6022_v54  ;;  %5982 = vmatprep.subr.msk.bf16.mxu0 %vm6668_vm1, %v5980_v10  ;;  %v621_v54 = vmul.f32 0.25503486, %v557_v50 }
  0x72   : > { %6030 = vmatprep.subr.msk.bf16.mxu1 %vm6668_vm1, %v6028_v13  ;;  %5465 = vmatprep.mubr.msk.f32.mxu0 %vm440_vm0, %v583_v14  ;;  %v548_v14 = vld [vmem:[%s6700_s23 + $0x158] sm:$0xff] }
  0x73   : > { %5466 = vmatmul.mubr.msk.f32.gmra.mrb[14].mxu0 %vm440_vm0, %v584_v16  ;;  %5521 = vmatprep.mubr.msk.f32.mxu1 %vm440_vm0, %v599_v17  ;;  %v564_v16 = vld [vmem:[%s6700_s23 + $0x1d8] sm:$0xff]  ;;  %v549_v17 = vld [vmem:[%s6700_s23 + $0x160] sm:$0xff] }
  0x74   : > { %5522 = vmatmul.mubr.msk.f32.gmra.mrb[14].mxu1 %vm440_vm0, %v600_v18  ;;  %5556 = vmatprep.mubr.msk.f32.mxu0 %vm440_vm0, %v601_v19  ;;  %v565_v18 = vld [vmem:[%s6700_s23 + $0x1e0] sm:$0xff]  ;;  %v612_v19 = vmul.f32 0.25503486, %v548_v14  ;;  %v613_v21 = vmul.f32 0.25503486, %v549_v17  ;;  %v6619_v14 = vmov 0.0  }
  0x75   : > { %5612 = vmatprep.mubr.msk.f32.mxu1 %vm440_vm0, %v617_v20  ;;  %v628_v20 = vmul.f32 0.25503486, %v564_v16  ;;  %v629_v23 = vmul.f32 0.25503486, %v565_v18  ;;  %458 = vst.msk [vmem:[#allocation4 + $0x88] sm:$0xff] %vm440_vm0, %v6619_v14  ;;  %441 = vst.msk [vmem:[#allocation4] sm:$0xff] %vm440_vm0, %v6619_v14 }
  0x76   : > { %376 = vst.msk [vmem:[#allocation3] sm:$0xff] %vm311_vm3, %v6619_v14  ;;  %377 = vst.msk [vmem:[#allocation3 + $0x8] sm:$0xff] %vm311_vm3, %v6619_v14 }
  0x77   : > { %378 = vst.msk [vmem:[#allocation3 + $0x10] sm:$0xff] %vm311_vm3, %v6619_v14  ;;  %379 = vst.msk [vmem:[#allocation3 + $0x18] sm:$0xff] %vm311_vm3, %v6619_v14 }
  0x78   : > { %5985 = vmatpush3.bf16.xpose.msk.msra.mxu0 %vm6668_vm1, %v5980_v10  ;;  %v563_v10 = vld [vmem:[%s6700_s23 + $0x1d0] sm:$0xff]  ;;  %380 = vst.msk [vmem:[#allocation3 + $0x20] sm:$0xff] %vm311_vm3, %v6619_v14  ;;  %381 = vst.msk [vmem:[#allocation3 + $0x28] sm:$0xff] %vm311_vm3, %v6619_v14 }
  0x79   : > { %6033 = vmatpush3.bf16.xpose.msk.msra.mxu1 %vm6668_vm1, %v6028_v13  ;;  %5988 = vmatprep.subr.msk.bf16.mxu0 %vm6668_vm1, %v5986_v25  ;;  %v611_v13 = vmul.f32 0.25503486, %v547_v9  ;;  %v627_v15 = vmul.f32 0.25503486, %v563_v10  ;;  %382 = vst.msk [vmem:[#allocation3 + $0x30] sm:$0xff] %vm311_vm3, %v6619_v14  ;;  %383 = vst.msk [vmem:[#allocation3 + $0x38] sm:$0xff] %vm311_vm3, %v6619_v14 }
  0x7a   : > { %6036 = vmatprep.subr.msk.bf16.mxu1 %vm6668_vm1, %v6034_v26  ;;  %384 = vst.msk [vmem:[#allocation3 + $0x40] sm:$0xff] %vm311_vm3, %v6619_v14  ;;  %385 = vst.msk [vmem:[#allocation3 + $0x48] sm:$0xff] %vm311_vm3, %v6619_v14 }
  0x7b   : > { %386 = vst.msk [vmem:[#allocation3 + $0x50] sm:$0xff] %vm311_vm3, %v6619_v14  ;;  %387 = vst.msk [vmem:[#allocation3 + $0x58] sm:$0xff] %vm311_vm3, %v6619_v14 }
  0x7c   : > { %388 = vst.msk [vmem:[#allocation3 + $0x60] sm:$0xff] %vm311_vm3, %v6619_v14  ;;  %389 = vst.msk [vmem:[#allocation3 + $0x68] sm:$0xff] %vm311_vm3, %v6619_v14 }
  0x7d   : > { %390 = vst.msk [vmem:[#allocation3 + $0x70] sm:$0xff] %vm311_vm3, %v6619_v14  ;;  %391 = vst.msk [vmem:[#allocation3 + $0x78] sm:$0xff] %vm311_vm3, %v6619_v14 }
  0x7e   : > { %392 = vst.msk [vmem:[#allocation3 + $0x80] sm:$0xff] %vm311_vm3, %v6619_v14  ;;  %393 = vst.msk [vmem:[#allocation3 + $0x88] sm:$0xff] %vm311_vm3, %v6619_v14 }
  0x7f   : > { %394 = vst.msk [vmem:[#allocation3 + $0x90] sm:$0xff] %vm311_vm3, %v6619_v14  ;;  %395 = vst.msk [vmem:[#allocation3 + $0x98] sm:$0xff] %vm311_vm3, %v6619_v14 }
  0x80   : > { %5991 = vmatpush3.bf16.xpose.msk.msra.mxu0 %vm6668_vm1, %v5986_v25  ;;  %v551_v25 = vld [vmem:[%s6700_s23 + $0x170] sm:$0xff]  ;;  %396 = vst.msk [vmem:[#allocation3 + $0xa0] sm:$0xff] %vm311_vm3, %v6619_v14  ;;  %397 = vst.msk [vmem:[#allocation3 + $0xa8] sm:$0xff] %vm311_vm3, %v6619_v14 }
  0x81   : > { %6039 = vmatpush3.bf16.xpose.msk.msra.mxu1 %vm6668_vm1, %v6034_v26  ;;  %5994 = vmatprep.subr.msk.bf16.mxu0 %vm6668_vm1, %v5992_v31  ;;  %v567_v26 = vld [vmem:[%s6700_s23 + $0x1f0] sm:$0xff]  ;;  %v615_v29 = vmul.f32 0.25503486, %v551_v25  ;;  %398 = vst.msk [vmem:[#allocation3 + $0xb0] sm:$0xff] %vm311_vm3, %v6619_v14  ;;  %399 = vst.msk [vmem:[#allocation3 + $0xb8] sm:$0xff] %vm311_vm3, %v6619_v14 }
  0x82   : > { %6042 = vmatprep.subr.msk.bf16.mxu1 %vm6668_vm1, %v6040_v32  ;;  %400 = vst.msk [vmem:[#allocation3 + $0xc0] sm:$0xff] %vm311_vm3, %v6619_v14  ;;  %401 = vst.msk [vmem:[#allocation3 + $0xc8] sm:$0xff] %vm311_vm3, %v6619_v14 }
  0x83   : > { %402 = vst.msk [vmem:[#allocation3 + $0xd0] sm:$0xff] %vm311_vm3, %v6619_v14  ;;  %403 = vst.msk [vmem:[#allocation3 + $0xd8] sm:$0xff] %vm311_vm3, %v6619_v14 }
  0x84   : > { %404 = vst.msk [vmem:[#allocation3 + $0xe0] sm:$0xff] %vm311_vm3, %v6619_v14  ;;  %405 = vst.msk [vmem:[#allocation3 + $0xe8] sm:$0xff] %vm311_vm3, %v6619_v14 }
  0x85   : > { %406 = vst.msk [vmem:[#allocation3 + $0xf0] sm:$0xff] %vm311_vm3, %v6619_v14  ;;  %407 = vst.msk [vmem:[#allocation3 + $0xf8] sm:$0xff] %vm311_vm3, %v6619_v14 }
  0x86   : > { %408 = vst.msk [vmem:[#allocation3 + $0x100] sm:$0xff] %vm311_vm3, %v6619_v14  ;;  %409 = vst.msk [vmem:[#allocation3 + $0x108] sm:$0xff] %vm311_vm3, %v6619_v14 }
  0x87   : > { %410 = vst.msk [vmem:[#allocation3 + $0x110] sm:$0xff] %vm311_vm3, %v6619_v14  ;;  %411 = vst.msk [vmem:[#allocation3 + $0x118] sm:$0xff] %vm311_vm3, %v6619_v14 }
  0x88   : > { %5997 = vmatpush3.bf16.xpose.msk.msra.mxu0 %vm6668_vm1, %v5992_v31  ;;  %v631_v31 = vmul.f32 0.25503486, %v567_v26  ;;  %412 = vst.msk [vmem:[#allocation3 + $0x120] sm:$0xff] %vm311_vm3, %v6619_v14  ;;  %413 = vst.msk [vmem:[#allocation3 + $0x128] sm:$0xff] %vm311_vm3, %v6619_v14 }
  0x89   : > { %6045 = vmatpush3.bf16.xpose.msk.msra.mxu1 %vm6668_vm1, %v6040_v32  ;;  %6000 = vmatprep.subr.msk.bf16.mxu0 %vm6668_vm1, %v5998_v37  ;;  %v568_v32 = vld [vmem:[%s6700_s23 + $0x1f8] sm:$0xff]  ;;  %414 = vst.msk [vmem:[#allocation3 + $0x130] sm:$0xff] %vm311_vm3, %v6619_v14  ;;  %415 = vst.msk [vmem:[#allocation3 + $0x138] sm:$0xff] %vm311_vm3, %v6619_v14 }
  0x8a   : > { %6048 = vmatprep.subr.msk.bf16.mxu1 %vm6668_vm1, %v6046_v38  ;;  %v632_v34 = vmul.f32 0.25503486, %v568_v32  ;;  %416 = vst.msk [vmem:[#allocation3 + $0x140] sm:$0xff] %vm311_vm3, %v6619_v14  ;;  %417 = vst.msk [vmem:[#allocation3 + $0x148] sm:$0xff] %vm311_vm3, %v6619_v14 }
  0x8b   : > { %418 = vst.msk [vmem:[#allocation3 + $0x150] sm:$0xff] %vm311_vm3, %v6619_v14  ;;  %419 = vst.msk [vmem:[#allocation3 + $0x158] sm:$0xff] %vm311_vm3, %v6619_v14 }
  0x8c   : > { %420 = vst.msk [vmem:[#allocation3 + $0x160] sm:$0xff] %vm311_vm3, %v6619_v14  ;;  %421 = vst.msk [vmem:[#allocation3 + $0x168] sm:$0xff] %vm311_vm3, %v6619_v14 }
  0x8d   : > { %422 = vst.msk [vmem:[#allocation3 + $0x170] sm:$0xff] %vm311_vm3, %v6619_v14  ;;  %423 = vst.msk [vmem:[#allocation3 + $0x178] sm:$0xff] %vm311_vm3, %v6619_v14 }
  0x8e   : > { %424 = vst.msk [vmem:[#allocation3 + $0x180] sm:$0xff] %vm311_vm3, %v6619_v14  ;;  %425 = vst.msk [vmem:[#allocation3 + $0x188] sm:$0xff] %vm311_vm3, %v6619_v14 }
  0x8f   : > { %426 = vst.msk [vmem:[#allocation3 + $0x190] sm:$0xff] %vm311_vm3, %v6619_v14  ;;  %427 = vst.msk [vmem:[#allocation3 + $0x198] sm:$0xff] %vm311_vm3, %v6619_v14 }
  0x90   : > { %6003 = vmatpush3.bf16.xpose.msk.msra.mxu0 %vm6668_vm1, %v5998_v37  ;;  %428 = vst.msk [vmem:[#allocation3 + $0x1a0] sm:$0xff] %vm311_vm3, %v6619_v14  ;;  %429 = vst.msk [vmem:[#allocation3 + $0x1a8] sm:$0xff] %vm311_vm3, %v6619_v14 }
  0x91   : > { %6051 = vmatpush3.bf16.xpose.msk.msra.mxu1 %vm6668_vm1, %v6046_v38  ;;  %v6617_v38 = vmov -1e+30   ;;  %430 = vst.msk [vmem:[#allocation3 + $0x1b0] sm:$0xff] %vm311_vm3, %v6619_v14  ;;  %431 = vst.msk [vmem:[#allocation3 + $0x1b8] sm:$0xff] %vm311_vm3, %v6619_v14 }
  0x92   : > { %329 = vst.msk [vmem:[#allocation2 + $0x88] sm:$0xff] %vm311_vm3, %v6617_v38  ;;  %312 = vst.msk [vmem:[#allocation2] sm:$0xff] %vm311_vm3, %v6617_v38 }
  0x93   : > { %313 = vst.msk [vmem:[#allocation2 + $0x8] sm:$0xff] %vm311_vm3, %v6617_v38  ;;  %314 = vst.msk [vmem:[#allocation2 + $0x10] sm:$0xff] %vm311_vm3, %v6617_v38 }
  0x94   : > { %315 = vst.msk [vmem:[#allocation2 + $0x18] sm:$0xff] %vm311_vm3, %v6617_v38  ;;  %316 = vst.msk [vmem:[#allocation2 + $0x20] sm:$0xff] %vm311_vm3, %v6617_v38 }
  0x95   : > { %317 = vst.msk [vmem:[#allocation2 + $0x28] sm:$0xff] %vm311_vm3, %v6617_v38  ;;  %318 = vst.msk [vmem:[#allocation2 + $0x30] sm:$0xff] %vm311_vm3, %v6617_v38 }
  0x96   : > { %319 = vst.msk [vmem:[#allocation2 + $0x38] sm:$0xff] %vm311_vm3, %v6617_v38  ;;  %320 = vst.msk [vmem:[#allocation2 + $0x40] sm:$0xff] %vm311_vm3, %v6617_v38 }
  0x97   : > { %5557 = vmatmul.mubr.msk.f32.vlgmr.msra.gmra.mrb[16].mxu0 %vm440_vm0, %v602_v43  ;;  %321 = vst.msk [vmem:[#allocation2 + $0x48] sm:$0xff] %vm311_vm3, %v6617_v38  ;;  %322 = vst.msk [vmem:[#allocation2 + $0x50] sm:$0xff] %vm311_vm3, %v6617_v38 }
  0x98   : > { %5613 = vmatmul.mubr.msk.f32.vlgmr.msra.gmra.mrb[16].mxu1 %vm440_vm0, %v618_v44  ;;  %5559 = vmatprep.mubr.msk.f32.mxu0 %vm440_vm0, %v603_v45  ;;  %323 = vst.msk [vmem:[#allocation2 + $0x58] sm:$0xff] %vm311_vm3, %v6617_v38  ;;  %324 = vst.msk [vmem:[#allocation2 + $0x60] sm:$0xff] %vm311_vm3, %v6617_v38 }
  0x99   : > { %5615 = vmatprep.mubr.msk.f32.mxu1 %vm440_vm0, %v619_v47  ;;  %325 = vst.msk [vmem:[#allocation2 + $0x68] sm:$0xff] %vm311_vm3, %v6617_v38  ;;  %326 = vst.msk [vmem:[#allocation2 + $0x70] sm:$0xff] %vm311_vm3, %v6617_v38 }
  0x9a   : > { %327 = vst.msk [vmem:[#allocation2 + $0x78] sm:$0xff] %vm311_vm3, %v6617_v38  ;;  %328 = vst.msk [vmem:[#allocation2 + $0x80] sm:$0xff] %vm311_vm3, %v6617_v38 }
  0x9b   : > { %5560 = vmatmul.mubr.msk.f32.gmra.mrb[18].mxu0 %vm440_vm0, %v604_v51  ;;  %330 = vst.msk [vmem:[#allocation2 + $0x90] sm:$0xff] %vm311_vm3, %v6617_v38  ;;  %331 = vst.msk [vmem:[#allocation2 + $0x98] sm:$0xff] %vm311_vm3, %v6617_v38 }
  0x9c   : > { %5616 = vmatmul.mubr.msk.f32.gmra.mrb[18].mxu1 %vm440_vm0, %v620_v0  ;;  %5562 = vmatprep.mubr.msk.f32.mxu0 %vm440_vm0, %v605_v52  ;;  %332 = vst.msk [vmem:[#allocation2 + $0xa0] sm:$0xff] %vm311_vm3, %v6617_v38  ;;  %333 = vst.msk [vmem:[#allocation2 + $0xa8] sm:$0xff] %vm311_vm3, %v6617_v38 }
  0x9d   : > { %5618 = vmatprep.mubr.msk.f32.mxu1 %vm440_vm0, %v621_v54  ;;  %334 = vst.msk [vmem:[#allocation2 + $0xb0] sm:$0xff] %vm311_vm3, %v6617_v38  ;;  %335 = vst.msk [vmem:[#allocation2 + $0xb8] sm:$0xff] %vm311_vm3, %v6617_v38 }
  0x9e   : > { %336 = vst.msk [vmem:[#allocation2 + $0xc0] sm:$0xff] %vm311_vm3, %v6617_v38  ;;  %337 = vst.msk [vmem:[#allocation2 + $0xc8] sm:$0xff] %vm311_vm3, %v6617_v38 }
  0x9f   : > { %5563 = vmatmul.mubr.msk.f32.gmra.mrb[20].mxu0 %vm440_vm0, %v606_v58  ;;  %338 = vst.msk [vmem:[#allocation2 + $0xd0] sm:$0xff] %vm311_vm3, %v6617_v38  ;;  %339 = vst.msk [vmem:[#allocation2 + $0xd8] sm:$0xff] %vm311_vm3, %v6617_v38 }
  0xa0   : > { %5619 = vmatmul.mubr.msk.f32.gmra.mrb[20].mxu1 %vm440_vm0, %v622_v59  ;;  %5565 = vmatprep.mubr.msk.f32.mxu0 %vm440_vm0, %v607_v60  ;;  %340 = vst.msk [vmem:[#allocation2 + $0xe0] sm:$0xff] %vm311_vm3, %v6617_v38  ;;  %341 = vst.msk [vmem:[#allocation2 + $0xe8] sm:$0xff] %vm311_vm3, %v6617_v38 }
  0xa1   : > { %5621 = vmatprep.mubr.msk.f32.mxu1 %vm440_vm0, %v623_v62  ;;  %342 = vst.msk [vmem:[#allocation2 + $0xf0] sm:$0xff] %vm311_vm3, %v6617_v38  ;;  %343 = vst.msk [vmem:[#allocation2 + $0xf8] sm:$0xff] %vm311_vm3, %v6617_v38 }
  0xa2   : > { %344 = vst.msk [vmem:[#allocation2 + $0x100] sm:$0xff] %vm311_vm3, %v6617_v38  ;;  %345 = vst.msk [vmem:[#allocation2 + $0x108] sm:$0xff] %vm311_vm3, %v6617_v38 }
  0xa3   : > { %5566 = vmatmul.mubr.msk.f32.gmra.mrb[22].mxu0 %vm440_vm0, %v608_v3  ;;  %346 = vst.msk [vmem:[#allocation2 + $0x110] sm:$0xff] %vm311_vm3, %v6617_v38  ;;  %347 = vst.msk [vmem:[#allocation2 + $0x118] sm:$0xff] %vm311_vm3, %v6617_v38 }
  0xa4   : > { %5622 = vmatmul.mubr.msk.f32.gmra.mrb[22].mxu1 %vm440_vm0, %v624_v4  ;;  %5568 = vmatprep.mubr.msk.f32.mxu0 %vm440_vm0, %v609_v5  ;;  %348 = vst.msk [vmem:[#allocation2 + $0x120] sm:$0xff] %vm311_vm3, %v6617_v38  ;;  %349 = vst.msk [vmem:[#allocation2 + $0x128] sm:$0xff] %vm311_vm3, %v6617_v38  ;;  %v6618_v4 = vmov 0  }
  0xa5   : > { %5624 = vmatprep.mubr.msk.f32.mxu1 %vm440_vm0, %v625_v7  ;;  %350 = vst.msk [vmem:[#allocation2 + $0x130] sm:$0xff] %vm311_vm3, %v6617_v38  ;;  %351 = vst.msk [vmem:[#allocation2 + $0x138] sm:$0xff] %vm311_vm3, %v6617_v38  ;;  %6207 = vset.pattern.permute.xlu1 %v6618_v4 }
  0xa6   : > { %352 = vst.msk [vmem:[#allocation2 + $0x140] sm:$0xff] %vm311_vm3, %v6617_v38  ;;  %353 = vst.msk [vmem:[#allocation2 + $0x148] sm:$0xff] %vm311_vm3, %v6617_v38  ;;  %6208 = vset.pattern.permute.xlu0 %v6618_v4 }
  0xa7   : > { %5569 = vmatmul.mubr.msk.f32.gmra.mrb[24].mxu0 %vm440_vm0, %v610_v11  ;;  %354 = vst.msk [vmem:[#allocation2 + $0x150] sm:$0xff] %vm311_vm3, %v6617_v38  ;;  %355 = vst.msk [vmem:[#allocation2 + $0x158] sm:$0xff] %vm311_vm3, %v6617_v38 }
  0xa8   : > { %5625 = vmatmul.mubr.msk.f32.gmra.mrb[24].mxu1 %vm440_vm0, %v626_v12  ;;  %5571 = vmatprep.mubr.msk.f32.mxu0 %vm440_vm0, %v611_v13  ;;  %356 = vst.msk [vmem:[#allocation2 + $0x160] sm:$0xff] %vm311_vm3, %v6617_v38  ;;  %357 = vst.msk [vmem:[#allocation2 + $0x168] sm:$0xff] %vm311_vm3, %v6617_v38 }
  0xa9   : > { %5627 = vmatprep.mubr.msk.f32.mxu1 %vm440_vm0, %v627_v15  ;;  %358 = vst.msk [vmem:[#allocation2 + $0x170] sm:$0xff] %vm311_vm3, %v6617_v38  ;;  %359 = vst.msk [vmem:[#allocation2 + $0x178] sm:$0xff] %vm311_vm3, %v6617_v38 }
  0xaa   : > { %360 = vst.msk [vmem:[#allocation2 + $0x180] sm:$0xff] %vm311_vm3, %v6617_v38  ;;  %361 = vst.msk [vmem:[#allocation2 + $0x188] sm:$0xff] %vm311_vm3, %v6617_v38 }
  0xab   : > { %5572 = vmatmul.mubr.msk.f32.gmra.mrb[26].mxu0 %vm440_vm0, %v612_v19  ;;  %362 = vst.msk [vmem:[#allocation2 + $0x190] sm:$0xff] %vm311_vm3, %v6617_v38  ;;  %363 = vst.msk [vmem:[#allocation2 + $0x198] sm:$0xff] %vm311_vm3, %v6617_v38 }
  0xac   : > { %5628 = vmatmul.mubr.msk.f32.gmra.mrb[26].mxu1 %vm440_vm0, %v628_v20  ;;  %5574 = vmatprep.mubr.msk.f32.mxu0 %vm440_vm0, %v613_v21  ;;  %364 = vst.msk [vmem:[#allocation2 + $0x1a0] sm:$0xff] %vm311_vm3, %v6617_v38  ;;  %365 = vst.msk [vmem:[#allocation2 + $0x1a8] sm:$0xff] %vm311_vm3, %v6617_v38 }
  0xad   : > { %5630 = vmatprep.mubr.msk.f32.mxu1 %vm440_vm0, %v629_v23  ;;  %366 = vst.msk [vmem:[#allocation2 + $0x1b0] sm:$0xff] %vm311_vm3, %v6617_v38  ;;  %367 = vst.msk [vmem:[#allocation2 + $0x1b8] sm:$0xff] %vm311_vm3, %v6617_v38 }
  0xae   : > { %368 = vst.msk [vmem:[#allocation2 + $0x1c0] sm:$0xff] %vm311_vm3, %v6617_v38  ;;  %369 = vst.msk [vmem:[#allocation2 + $0x1c8] sm:$0xff] %vm311_vm3, %v6617_v38 }
  0xaf   : > { %5575 = vmatmul.mubr.msk.f32.gmra.mrb[28].mxu0 %vm440_vm0, %v614_v27  ;;  %370 = vst.msk [vmem:[#allocation2 + $0x1d0] sm:$0xff] %vm311_vm3, %v6617_v38  ;;  %371 = vst.msk [vmem:[#allocation2 + $0x1d8] sm:$0xff] %vm311_vm3, %v6617_v38 }
  0xb0   : > { %5631 = vmatmul.mubr.msk.f32.gmra.mrb[28].mxu1 %vm440_vm0, %v630_v28  ;;  %5577 = vmatprep.mubr.msk.f32.mxu0 %vm440_vm0, %v615_v29  ;;  %372 = vst.msk [vmem:[#allocation2 + $0x1e0] sm:$0xff] %vm311_vm3, %v6617_v38  ;;  %373 = vst.msk [vmem:[#allocation2 + $0x1e8] sm:$0xff] %vm311_vm3, %v6617_v38 }
  0xb1   : > { %5633 = vmatprep.mubr.msk.f32.mxu1 %vm440_vm0, %v631_v31  ;;  %374 = vst.msk [vmem:[#allocation2 + $0x1f0] sm:$0xff] %vm311_vm3, %v6617_v38  ;;  %375 = vst.msk [vmem:[#allocation2 + $0x1f8] sm:$0xff] %vm311_vm3, %v6617_v38 }
  0xb2   : > { %432 = vst.msk [vmem:[#allocation3 + $0x1c0] sm:$0xff] %vm311_vm3, %v6619_v14  ;;  %433 = vst.msk [vmem:[#allocation3 + $0x1c8] sm:$0xff] %vm311_vm3, %v6619_v14 }
  0xb3   : > { %5578 = vmatmul.mubr.msk.f32.gmra.mrb[30].mxu0 %vm440_vm0, %v616_v33  ;;  %434 = vst.msk [vmem:[#allocation3 + $0x1d0] sm:$0xff] %vm311_vm3, %v6619_v14  ;;  %435 = vst.msk [vmem:[#allocation3 + $0x1d8] sm:$0xff] %vm311_vm3, %v6619_v14 }
  0xb4   : > { %5634 = vmatmul.mubr.msk.f32.gmra.mrb[30].mxu1 %vm440_vm0, %v632_v34  ;;  %436 = vst.msk [vmem:[#allocation3 + $0x1e0] sm:$0xff] %vm311_vm3, %v6619_v14  ;;  %437 = vst.msk [vmem:[#allocation3 + $0x1e8] sm:$0xff] %vm311_vm3, %v6619_v14 }
  0xb5   : > { %438 = vst.msk [vmem:[#allocation3 + $0x1f0] sm:$0xff] %vm311_vm3, %v6619_v14  ;;  %439 = vst.msk [vmem:[#allocation3 + $0x1f8] sm:$0xff] %vm311_vm3, %v6619_v14 }
  0xb6   : > { %442 = vst.msk [vmem:[#allocation4 + $0x8] sm:$0xff] %vm440_vm0, %v6619_v14  ;;  %443 = vst.msk [vmem:[#allocation4 + $0x10] sm:$0xff] %vm440_vm0, %v6619_v14 }
  0xb7   : > { %444 = vst.msk [vmem:[#allocation4 + $0x18] sm:$0xff] %vm440_vm0, %v6619_v14  ;;  %445 = vst.msk [vmem:[#allocation4 + $0x20] sm:$0xff] %vm440_vm0, %v6619_v14 }
  0xb8   : > { %446 = vst.msk [vmem:[#allocation4 + $0x28] sm:$0xff] %vm440_vm0, %v6619_v14  ;;  %447 = vst.msk [vmem:[#allocation4 + $0x30] sm:$0xff] %vm440_vm0, %v6619_v14 }
  0xb9   : > { %448 = vst.msk [vmem:[#allocation4 + $0x38] sm:$0xff] %vm440_vm0, %v6619_v14  ;;  %449 = vst.msk [vmem:[#allocation4 + $0x40] sm:$0xff] %vm440_vm0, %v6619_v14 }
  0xba   : > { %450 = vst.msk [vmem:[#allocation4 + $0x48] sm:$0xff] %vm440_vm0, %v6619_v14  ;;  %451 = vst.msk [vmem:[#allocation4 + $0x50] sm:$0xff] %vm440_vm0, %v6619_v14 }
  0xbb   : > { %452 = vst.msk [vmem:[#allocation4 + $0x58] sm:$0xff] %vm440_vm0, %v6619_v14  ;;  %453 = vst.msk [vmem:[#allocation4 + $0x60] sm:$0xff] %vm440_vm0, %v6619_v14 }
  0xbc   : > { %454 = vst.msk [vmem:[#allocation4 + $0x68] sm:$0xff] %vm440_vm0, %v6619_v14  ;;  %455 = vst.msk [vmem:[#allocation4 + $0x70] sm:$0xff] %vm440_vm0, %v6619_v14 }
  0xbd   : > { %456 = vst.msk [vmem:[#allocation4 + $0x78] sm:$0xff] %vm440_vm0, %v6619_v14  ;;  %457 = vst.msk [vmem:[#allocation4 + $0x80] sm:$0xff] %vm440_vm0, %v6619_v14 }
  0xbe   : > { %459 = vst.msk [vmem:[#allocation4 + $0x90] sm:$0xff] %vm440_vm0, %v6619_v14  ;;  %460 = vst.msk [vmem:[#allocation4 + $0x98] sm:$0xff] %vm440_vm0, %v6619_v14 }
  0xbf   : > { %461 = vst.msk [vmem:[#allocation4 + $0xa0] sm:$0xff] %vm440_vm0, %v6619_v14  ;;  %462 = vst.msk [vmem:[#allocation4 + $0xa8] sm:$0xff] %vm440_vm0, %v6619_v14 }
  0xc0   : > { %463 = vst.msk [vmem:[#allocation4 + $0xb0] sm:$0xff] %vm440_vm0, %v6619_v14  ;;  %464 = vst.msk [vmem:[#allocation4 + $0xb8] sm:$0xff] %vm440_vm0, %v6619_v14 }
  0xc1   : > { %465 = vst.msk [vmem:[#allocation4 + $0xc0] sm:$0xff] %vm440_vm0, %v6619_v14  ;;  %466 = vst.msk [vmem:[#allocation4 + $0xc8] sm:$0xff] %vm440_vm0, %v6619_v14 }
  0xc2   : > { %467 = vst.msk [vmem:[#allocation4 + $0xd0] sm:$0xff] %vm440_vm0, %v6619_v14  ;;  %468 = vst.msk [vmem:[#allocation4 + $0xd8] sm:$0xff] %vm440_vm0, %v6619_v14 }
  0xc3   : > { %469 = vst.msk [vmem:[#allocation4 + $0xe0] sm:$0xff] %vm440_vm0, %v6619_v14  ;;  %470 = vst.msk [vmem:[#allocation4 + $0xe8] sm:$0xff] %vm440_vm0, %v6619_v14 }
  0xc4   : > { %471 = vst.msk [vmem:[#allocation4 + $0xf0] sm:$0xff] %vm440_vm0, %v6619_v14  ;;  %472 = vst.msk [vmem:[#allocation4 + $0xf8] sm:$0xff] %vm440_vm0, %v6619_v14 }
  0xc5   : > { %473 = vst.msk [vmem:[#allocation4 + $0x100] sm:$0xff] %vm440_vm0, %v6619_v14  ;;  %474 = vst.msk [vmem:[#allocation4 + $0x108] sm:$0xff] %vm440_vm0, %v6619_v14 }
  0xc6   : > { %475 = vst.msk [vmem:[#allocation4 + $0x110] sm:$0xff] %vm440_vm0, %v6619_v14  ;;  %476 = vst.msk [vmem:[#allocation4 + $0x118] sm:$0xff] %vm440_vm0, %v6619_v14 }
  0xc7   : > { %477 = vst.msk [vmem:[#allocation4 + $0x120] sm:$0xff] %vm440_vm0, %v6619_v14  ;;  %478 = vst.msk [vmem:[#allocation4 + $0x128] sm:$0xff] %vm440_vm0, %v6619_v14 }
  0xc8   : > { %479 = vst.msk [vmem:[#allocation4 + $0x130] sm:$0xff] %vm440_vm0, %v6619_v14  ;;  %480 = vst.msk [vmem:[#allocation4 + $0x138] sm:$0xff] %vm440_vm0, %v6619_v14 }
  0xc9   : > { %481 = vst.msk [vmem:[#allocation4 + $0x140] sm:$0xff] %vm440_vm0, %v6619_v14  ;;  %482 = vst.msk [vmem:[#allocation4 + $0x148] sm:$0xff] %vm440_vm0, %v6619_v14 }
  0xca   : > { %483 = vst.msk [vmem:[#allocation4 + $0x150] sm:$0xff] %vm440_vm0, %v6619_v14  ;;  %484 = vst.msk [vmem:[#allocation4 + $0x158] sm:$0xff] %vm440_vm0, %v6619_v14 }
  0xcb   : > { %485 = vst.msk [vmem:[#allocation4 + $0x160] sm:$0xff] %vm440_vm0, %v6619_v14  ;;  %486 = vst.msk [vmem:[#allocation4 + $0x168] sm:$0xff] %vm440_vm0, %v6619_v14 }
  0xcc   : > { %487 = vst.msk [vmem:[#allocation4 + $0x170] sm:$0xff] %vm440_vm0, %v6619_v14  ;;  %488 = vst.msk [vmem:[#allocation4 + $0x178] sm:$0xff] %vm440_vm0, %v6619_v14 }
  0xcd   : > { %489 = vst.msk [vmem:[#allocation4 + $0x180] sm:$0xff] %vm440_vm0, %v6619_v14  ;;  %490 = vst.msk [vmem:[#allocation4 + $0x188] sm:$0xff] %vm440_vm0, %v6619_v14 }
  0xce   : > { %491 = vst.msk [vmem:[#allocation4 + $0x190] sm:$0xff] %vm440_vm0, %v6619_v14  ;;  %492 = vst.msk [vmem:[#allocation4 + $0x198] sm:$0xff] %vm440_vm0, %v6619_v14 }
  0xcf   : > { %493 = vst.msk [vmem:[#allocation4 + $0x1a0] sm:$0xff] %vm440_vm0, %v6619_v14  ;;  %494 = vst.msk [vmem:[#allocation4 + $0x1a8] sm:$0xff] %vm440_vm0, %v6619_v14 }
  0xd0   : > { %495 = vst.msk [vmem:[#allocation4 + $0x1b0] sm:$0xff] %vm440_vm0, %v6619_v14  ;;  %496 = vst.msk [vmem:[#allocation4 + $0x1b8] sm:$0xff] %vm440_vm0, %v6619_v14 }
  0xd1   : > { %497 = vst.msk [vmem:[#allocation4 + $0x1c0] sm:$0xff] %vm440_vm0, %v6619_v14  ;;  %498 = vst.msk [vmem:[#allocation4 + $0x1c8] sm:$0xff] %vm440_vm0, %v6619_v14 }
  0xd2   : > { %499 = vst.msk [vmem:[#allocation4 + $0x1d0] sm:$0xff] %vm440_vm0, %v6619_v14  ;;  %500 = vst.msk [vmem:[#allocation4 + $0x1d8] sm:$0xff] %vm440_vm0, %v6619_v14 }
  0xd3   : > { %501 = vst.msk [vmem:[#allocation4 + $0x1e0] sm:$0xff] %vm440_vm0, %v6619_v14  ;;  %502 = vst.msk [vmem:[#allocation4 + $0x1e8] sm:$0xff] %vm440_vm0, %v6619_v14 }
  0xd4   : > { %503 = vst.msk [vmem:[#allocation4 + $0x1f0] sm:$0xff] %vm440_vm0, %v6619_v14  ;;  %504 = vst.msk [vmem:[#allocation4 + $0x1f8] sm:$0xff] %vm440_vm0, %v6619_v14 }
 0x12a   : > { %v7001_v37 = vpop.f32.mrb[0].mxu0 }
 0x12b   : > { %v5502_v39 = vpop.f32.mrb[0].mxu1  ;;  %v924_v40 = vpop.f32.mrb[1].mxu0  ;;  %v7134_v41 = vsel %vm1731_vm2, %v7001_v37, -1e+30 }
 0x12c   : > { %v7138_v42 = vsel %vm1731_vm2, %v5502_v39, -1e+30  ;;  %1862 = vmax.xlane.f32.xlu0 %v7134_v41  ;;  %v1165_v43 = vpop.f32.mrb[1].mxu1  ;;  %v7144_v45 = vsel %vm1731_vm2, %v924_v40, -1e+30 }
 0x12d   : > { %1894 = vmax.xlane.f32.xlu1 %v7138_v42  ;;  %v7158_v0 = vsel %vm1731_vm2, %v1165_v43, -1e+30 }
 0x12e   : > { %v5449_v44 = vpop.f32.mrb[2].mxu0 }
 0x12f   : > { %v7148_v46 = vsel %vm1731_vm2, %v5449_v44, -1e+30  ;;  %v934_v47 = vpop.f32.mrb[3].mxu0  ;;  %v5505_v48 = vpop.f32.mrb[2].mxu1 }
 0x130   : > { %1860 = vmax.xlane.f32.xlu0 %v7144_v45  ;;  %v1175_v49 = vpop.f32.mrb[3].mxu1  ;;  %v7154_v50 = vsel %vm1731_vm2, %v5505_v48, -1e+30  ;;  %v7171_v59 = vsel %vm1731_vm2, %v934_v47, -1e+30 }
 0x131   : > { %1866 = vmax.xlane.f32.xlu1 %v7148_v46  ;;  %v7164_v55 = vsel %vm1731_vm2, %v1175_v49, -1e+30 }
 0x132   : > { %v5452_v51 = vpop.f32.mrb[4].mxu0 }
 0x133   : > { %v944_v52 = vpop.f32.mrb[5].mxu0  ;;  %v5508_v53 = vpop.f32.mrb[4].mxu1  ;;  %v7182_v62 = vsel %vm1731_vm2, %v5452_v51, -1e+30 }
 0x134   : > { %1892 = vmax.xlane.f32.xlu0 %v7158_v0  ;;  %v1185_v54 = vpop.f32.mrb[5].mxu1  ;;  %v7178_v61 = vsel %vm1731_vm2, %v944_v52, -1e+30  ;;  %9701 = vst [vmem:[#allocation6_spill] sm:$0xff] %v7182_v62  ;;  %v7200_v6 = vsel %vm1731_vm2, %v5508_v53, -1e+30 }
 0x135   : > { %1898 = vmax.xlane.f32.xlu1 %v7154_v50  ;;  %9700 = vst [vmem:[#allocation5_spill] sm:$0xff] %v7178_v61  ;;  %v7196_v5 = vsel %vm1731_vm2, %v1185_v54, -1e+30  ;;  %9703 = vst [vmem:[#allocation8_spill] sm:$0xff] %v7200_v6 }
 0x136   : > { %v5455_v56 = vpop.f32.mrb[6].mxu0  ;;  %9702 = vst [vmem:[#allocation7_spill] sm:$0xff] %v7196_v5 }
 0x137   : > { %v954_v57 = vpop.f32.mrb[7].mxu0  ;;  %v7166_v58 = vpop.f32.mrb[6].mxu1  ;;  %v7218_v12 = vsel %vm1731_vm2, %v5455_v56, -1e+30 }
 0x138   : > { %1896 = vmax.xlane.f32.xlu0 %v7164_v55  ;;  %v7173_v60 = vpop.f32.mrb[7].mxu1  ;;  %v7214_v11 = vsel %vm1731_vm2, %v954_v57, -1e+30  ;;  %9705 = vst [vmem:[#allocation10_spill] sm:$0xff] %v7218_v12  ;;  %v7488_v19 = vsel %vm1731_vm2, %v7166_v58, -1e+30 }
 0x139   : > { %1864 = vmax.xlane.f32.xlu1 %v7171_v59  ;;  %9704 = vst [vmem:[#allocation9_spill] sm:$0xff] %v7214_v11  ;;  %v7483_v18 = vsel %vm1731_vm2, %v7173_v60, -1e+30  ;;  %9707 = vst [vmem:[#allocation12_spill] sm:$0xff] %v7488_v19 }
 0x13a   : > { %v7184_v63 = vpop.f32.mrb[8].mxu0  ;;  %9706 = vst [vmem:[#allocation11_spill] sm:$0xff] %v7483_v18 }
 0x13b   : > { %v7186_v1 = vpop.f32.mrb[9].mxu0  ;;  %v7188_v2 = vpop.f32.mrb[8].mxu1  ;;  %v7500_v25 = vsel %vm1731_vm2, %v7184_v63, -1e+30 }
 0x13c   : > { %1868 = vmax.xlane.f32.xlu0 %v7178_v61  ;;  %v7191_v3 = vpop.f32.mrb[9].mxu1  ;;  %v7495_v24 = vsel %vm1731_vm2, %v7186_v1, -1e+30  ;;  %9709 = vst [vmem:[#allocation14_spill] sm:$0xff] %v7500_v25  ;;  %v7512_v27 = vsel %vm1731_vm2, %v7188_v2, -1e+30 }
 0x13d   : > { %1870 = vmax.xlane.f32.xlu1 %v7182_v62  ;;  %9708 = vst [vmem:[#allocation13_spill] sm:$0xff] %v7495_v24  ;;  %v7507_v26 = vsel %vm1731_vm2, %v7191_v3, -1e+30  ;;  %9711 = vst [vmem:[#allocation16_spill] sm:$0xff] %v7512_v27 }
 0x13e   : > { %v7202_v7 = vpop.f32.mrb[10].mxu0  ;;  %9710 = vst [vmem:[#allocation15_spill] sm:$0xff] %v7507_v26 }
 0x13f   : > { %v7204_v8 = vpop.f32.mrb[11].mxu0  ;;  %v7206_v9 = vpop.f32.mrb[10].mxu1  ;;  %v7524_v29 = vsel %vm1731_vm2, %v7202_v7, -1e+30 }
 0x140   : > { %1900 = vmax.xlane.f32.xlu0 %v7196_v5  ;;  %v7209_v10 = vpop.f32.mrb[11].mxu1  ;;  %v7519_v28 = vsel %vm1731_vm2, %v7204_v8, -1e+30  ;;  %9713 = vst [vmem:[#allocation18_spill] sm:$0xff] %v7524_v29  ;;  %v7536_v31 = vsel %vm1731_vm2, %v7206_v9, -1e+30 }
 0x141   : > { %1902 = vmax.xlane.f32.xlu1 %v7200_v6  ;;  %9712 = vst [vmem:[#allocation17_spill] sm:$0xff] %v7519_v28  ;;  %v7531_v30 = vsel %vm1731_vm2, %v7209_v10, -1e+30  ;;  %9715 = vst [vmem:[#allocation20_spill] sm:$0xff] %v7536_v31  ;;  %v8094_v5 = vld [vmem:[#allocation2 + $0x188] sm:$0xff]  ;;  %v8096_v6 = vld [vmem:[#allocation2 + $0x180] sm:$0xff] }
 0x142   : > { %v7220_v13 = vpop.f32.mrb[12].mxu0  ;;  %9714 = vst [vmem:[#allocation19_spill] sm:$0xff] %v7531_v30  ;;  %9766 = vst [vmem:[#allocation71_spill] sm:$0xff] %v8096_v6 }
 0x143   : > { %v984_v15 = vpop.f32.mrb[13].mxu0  ;;  %v5520_v16 = vpop.f32.mrb[12].mxu1  ;;  %v7547_v33 = vsel %vm1731_vm2, %v7220_v13, -1e+30 }
 0x144   : > { %1872 = vmax.xlane.f32.xlu0 %v7214_v11  ;;  %v1225_v17 = vpop.f32.mrb[13].mxu1  ;;  %v7542_v32 = vsel %vm1731_vm2, %v984_v15, -1e+30  ;;  %9717 = vst [vmem:[#allocation22_spill] sm:$0xff] %v7547_v33  ;;  %v7557_v35 = vsel %vm1731_vm2, %v5520_v16, -1e+30 }
 0x145   : > { %1874 = vmax.xlane.f32.xlu1 %v7218_v12  ;;  %9716 = vst [vmem:[#allocation21_spill] sm:$0xff] %v7542_v32  ;;  %v7553_v34 = vsel %vm1731_vm2, %v1225_v17, -1e+30  ;;  %9719 = vst [vmem:[#allocation24_spill] sm:$0xff] %v7557_v35  ;;  %v8029_v11 = vld [vmem:[#allocation2 + $0x70] sm:$0xff] }
 0x146   : > { %v5467_v20 = vpop.f32.mrb[14].mxu0  ;;  %9718 = vst [vmem:[#allocation23_spill] sm:$0xff] %v7553_v34  ;;  %v8053_v12 = vld [vmem:[#allocation2 + $0xf0] sm:$0xff] }
 0x147   : > { %v994_v21 = vpop.f32.mrb[15].mxu0  ;;  %v5523_v22 = vpop.f32.mrb[14].mxu1  ;;  %v7567_v38 = vsel %vm1731_vm2, %v5467_v20, -1e+30 }
 0x148   : > { %1904 = vmax.xlane.f32.xlu0 %v7483_v18  ;;  %v1235_v23 = vpop.f32.mrb[15].mxu1  ;;  %v7563_v37 = vsel %vm1731_vm2, %v994_v21, -1e+30  ;;  %9721 = vst [vmem:[#allocation26_spill] sm:$0xff] %v7567_v38  ;;  %v7577_v40 = vsel %vm1731_vm2, %v5523_v22, -1e+30 }
 0x149   : > { %1906 = vmax.xlane.f32.xlu1 %v7488_v19  ;;  %9720 = vst [vmem:[#allocation25_spill] sm:$0xff] %v7563_v37  ;;  %v7573_v39 = vsel %vm1731_vm2, %v1235_v23, -1e+30  ;;  %9723 = vst [vmem:[#allocation28_spill] sm:$0xff] %v7577_v40 }
 0x14a   : > { %9722 = vst [vmem:[#allocation27_spill] sm:$0xff] %v7573_v39 }
 0x14c   : > { %1876 = vmax.xlane.f32.xlu0 %v7495_v24  ;;  %v8012_v24 = vld [vmem:[#allocation2 + $0xe8] sm:$0xff] }
 0x14d   : > { %1878 = vmax.xlane.f32.xlu1 %v7500_v25 }
 0x150   : > { %1908 = vmax.xlane.f32.xlu0 %v7507_v26 }
 0x151   : > { %1910 = vmax.xlane.f32.xlu1 %v7512_v27 }
 0x154   : > { %1880 = vmax.xlane.f32.xlu0 %v7519_v28 }
 0x155   : > { %1882 = vmax.xlane.f32.xlu1 %v7524_v29 }
 0x158   : > { %1912 = vmax.xlane.f32.xlu0 %v7531_v30 }
 0x159   : > { %1914 = vmax.xlane.f32.xlu1 %v7536_v31  ;;  %v7941_v31 = vld [vmem:[#allocation2 + $0x50] sm:$0xff] }
 0x15c   : > { %1884 = vmax.xlane.f32.xlu0 %v7542_v32 }
 0x15d   : > { %1886 = vmax.xlane.f32.xlu1 %v7547_v33 }
 0x160   : > { %1916 = vmax.xlane.f32.xlu0 %v7553_v34 }
 0x161   : > { %1918 = vmax.xlane.f32.xlu1 %v7557_v35  ;;  %v7926_v35 = vld [vmem:[#allocation2 + $0xc8] sm:$0xff] }
 0x164   : > { %1888 = vmax.xlane.f32.xlu0 %v7563_v37  ;;  %v7917_v37 = vld [vmem:[#allocation2 + $0xc0] sm:$0xff] }
 0x165   : > { %1890 = vmax.xlane.f32.xlu1 %v7567_v38 }
 0x168   : > { %1920 = vmax.xlane.f32.xlu0 %v7573_v39 }
 0x169   : > { %1922 = vmax.xlane.f32.xlu1 %v7577_v40 }
 0x16a   : > { %v5558_v43 = vpop.f32.mrb[16].mxu0 }
 0x16b   : > { %v1406_v44 = vpop.f32.mrb[17].mxu0  ;;  %v5614_v47 = vpop.f32.mrb[16].mxu1  ;;  %v7583_v48 = vsel %vm1731_vm2, %v5558_v43, -1e+30 }
 0x16c   : > { %9724 = vst [vmem:[#allocation29_spill] sm:$0xff] %v7583_v48  ;;  %v7587_v49 = vsel %vm1731_vm2, %v1406_v44, -1e+30  ;;  %v1647_v51 = vpop.f32.mrb[17].mxu1  ;;  %v7597_v53 = vsel %vm1731_vm2, %v5614_v47, -1e+30 }
 0x16d   : > { %9725 = vst [vmem:[#allocation30_spill] sm:$0xff] %v7587_v49  ;;  %1924 = vmax.xlane.f32.xlu0 %v7587_v49  ;;  %1926 = vmax.xlane.f32.xlu1 %v7583_v48  ;;  %v7593_v52 = vsel %vm1731_vm2, %v1647_v51, -1e+30  ;;  %9727 = vst [vmem:[#allocation32_spill] sm:$0xff] %v7597_v53  ;;  %v7852_v49 = vld [vmem:[#allocation2 + $0xa8] sm:$0xff] }
 0x16e   : > { %9726 = vst [vmem:[#allocation31_spill] sm:$0xff] %v7593_v52  ;;  %v5561_v54 = vpop.f32.mrb[18].mxu0 }
 0x16f   : > { %v1416_v56 = vpop.f32.mrb[19].mxu0  ;;  %v5617_v57 = vpop.f32.mrb[18].mxu1  ;;  %v7607_v63 = vsel %vm1731_vm2, %v5561_v54, -1e+30 }
 0x170   : > { %v1657_v58 = vpop.f32.mrb[19].mxu1  ;;  %v7603_v60 = vsel %vm1731_vm2, %v1416_v56, -1e+30  ;;  %9729 = vst [vmem:[#allocation34_spill] sm:$0xff] %v7607_v63  ;;  %v7617_v8 = vsel %vm1731_vm2, %v5617_v57, -1e+30 }
 0x171   : > { %1956 = vmax.xlane.f32.xlu0 %v7593_v52  ;;  %1958 = vmax.xlane.f32.xlu1 %v7597_v53  ;;  %9728 = vst [vmem:[#allocation33_spill] sm:$0xff] %v7603_v60  ;;  %v7613_v7 = vsel %vm1731_vm2, %v1657_v58, -1e+30  ;;  %9731 = vst [vmem:[#allocation36_spill] sm:$0xff] %v7617_v8  ;;  %v7847_v53 = vld [vmem:[#allocation2 + $0xa0] sm:$0xff] }
 0x172   : > { %v5564_v1 = vpop.f32.mrb[20].mxu0  ;;  %9730 = vst [vmem:[#allocation35_spill] sm:$0xff] %v7613_v7 }
 0x173   : > { %v1426_v2 = vpop.f32.mrb[21].mxu0  ;;  %v5620_v3 = vpop.f32.mrb[20].mxu1  ;;  %v7627_v16 = vsel %vm1731_vm2, %v5564_v1, -1e+30 }
 0x174   : > { %v1667_v4 = vpop.f32.mrb[21].mxu1  ;;  %v7623_v15 = vsel %vm1731_vm2, %v1426_v2, -1e+30  ;;  %9733 = vst [vmem:[#allocation38_spill] sm:$0xff] %v7627_v16  ;;  %v7637_v43 = vsel %vm1731_vm2, %v5620_v3, -1e+30 }
 0x175   : > { %1928 = vmax.xlane.f32.xlu0 %v7603_v60  ;;  %1930 = vmax.xlane.f32.xlu1 %v7607_v63  ;;  %9732 = vst [vmem:[#allocation37_spill] sm:$0xff] %v7623_v15  ;;  %v7633_v23 = vsel %vm1731_vm2, %v1667_v4, -1e+30  ;;  %9735 = vst [vmem:[#allocation40_spill] sm:$0xff] %v7637_v43 }
 0x176   : > { %v5567_v9 = vpop.f32.mrb[22].mxu0  ;;  %9734 = vst [vmem:[#allocation39_spill] sm:$0xff] %v7633_v23 }
 0x177   : > { %v1436_v10 = vpop.f32.mrb[23].mxu0  ;;  %v5623_v13 = vpop.f32.mrb[22].mxu1  ;;  %v7647_v57 = vsel %vm1731_vm2, %v5567_v9, -1e+30 }
 0x178   : > { %v1677_v14 = vpop.f32.mrb[23].mxu1  ;;  %v7643_v56 = vsel %vm1731_vm2, %v1436_v10, -1e+30  ;;  %9737 = vst [vmem:[#allocation42_spill] sm:$0xff] %v7647_v57  ;;  %v7657_v10 = vsel %vm1731_vm2, %v5623_v13, -1e+30 }
 0x179   : > { %1960 = vmax.xlane.f32.xlu0 %v7613_v7  ;;  %1962 = vmax.xlane.f32.xlu1 %v7617_v8  ;;  %9736 = vst [vmem:[#allocation41_spill] sm:$0xff] %v7643_v56  ;;  %v7653_v4 = vsel %vm1731_vm2, %v1677_v14, -1e+30  ;;  %9739 = vst [vmem:[#allocation44_spill] sm:$0xff] %v7657_v10  ;;  %v710_v8 = vld [vmem:[%s7745_s26 + $0x68] sm:$0xff] }
 0x17a   : > { %v5570_v17 = vpop.f32.mrb[24].mxu0  ;;  %9738 = vst [vmem:[#allocation43_spill] sm:$0xff] %v7653_v4 }
 0x17b   : > { %v1446_v20 = vpop.f32.mrb[25].mxu0  ;;  %v5626_v21 = vpop.f32.mrb[24].mxu1  ;;  %v7667_v14 = vsel %vm1731_vm2, %v5570_v17, -1e+30 }
 0x17c   : > { %v1687_v22 = vpop.f32.mrb[25].mxu1  ;;  %9741 = vst [vmem:[#allocation46_spill] sm:$0xff] %v7667_v14 }
 0x17d   : > { %1932 = vmax.xlane.f32.xlu0 %v7623_v15  ;;  %1934 = vmax.xlane.f32.xlu1 %v7627_v16  ;;  %v7673_v13 = vsel %vm1731_vm2, %v1687_v22, -1e+30 }
 0x17e   : > { %v5573_v44 = vpop.f32.mrb[26].mxu0  ;;  %9742 = vst [vmem:[#allocation47_spill] sm:$0xff] %v7673_v13 }
 0x17f   : > { %v1456_v47 = vpop.f32.mrb[27].mxu0  ;;  %v5629_v51 = vpop.f32.mrb[26].mxu1 }
 0x180   : > { %v1697_v54 = vpop.f32.mrb[27].mxu1  ;;  %v7683_v17 = vsel %vm1731_vm2, %v1456_v47, -1e+30  ;;  %v7697_v22 = vsel %vm1731_vm2, %v5629_v51, -1e+30 }
 0x181   : > { %1964 = vmax.xlane.f32.xlu0 %v7633_v23  ;;  %1966 = vmax.xlane.f32.xlu1 %v7637_v43  ;;  %9744 = vst [vmem:[#allocation49_spill] sm:$0xff] %v7683_v17  ;;  %9747 = vst [vmem:[#allocation52_spill] sm:$0xff] %v7697_v22 }
 0x182   : > { %v5576_v58 = vpop.f32.mrb[28].mxu0 }
 0x183   : > { %v1466_v1 = vpop.f32.mrb[29].mxu0  ;;  %v5632_v2 = vpop.f32.mrb[28].mxu1  ;;  %v7707_v47 = vsel %vm1731_vm2, %v5576_v58, -1e+30 }
 0x184   : > { %v1707_v3 = vpop.f32.mrb[29].mxu1  ;;  %9749 = vst [vmem:[#allocation54_spill] sm:$0xff] %v7707_v47 }
 0x185   : > { %1936 = vmax.xlane.f32.xlu0 %v7643_v56  ;;  %1938 = vmax.xlane.f32.xlu1 %v7647_v57  ;;  %v7663_v56 = vsel %vm1731_vm2, %v1446_v20, -1e+30  ;;  %v7687_v20 = vsel %vm1731_vm2, %v5573_v44, -1e+30  ;;  %v7703_v44 = vsel %vm1731_vm2, %v1466_v1, -1e+30 }
 0x186   : > { %v5579_v23 = vpop.f32.mrb[30].mxu0  ;;  %9740 = vst [vmem:[#allocation45_spill] sm:$0xff] %v7663_v56  ;;  %9745 = vst [vmem:[#allocation50_spill] sm:$0xff] %v7687_v20  ;;  %v7713_v51 = vsel %vm1731_vm2, %v1707_v3, -1e+30 }
 0x187   : > { %v1476_v43 = vpop.f32.mrb[31].mxu0  ;;  %v5635_v9 = vpop.f32.mrb[30].mxu1  ;;  %9748 = vst [vmem:[#allocation53_spill] sm:$0xff] %v7703_v44  ;;  %9750 = vst [vmem:[#allocation55_spill] sm:$0xff] %v7713_v51  ;;  %v7727_v1 = vsel %vm1731_vm2, %v5579_v23, -1e+30 }
 0x188   : > { %v1717_v15 = vpop.f32.mrb[31].mxu1  ;;  %v7723_v58 = vsel %vm1731_vm2, %v1476_v43, -1e+30  ;;  %9753 = vst [vmem:[#allocation58_spill] sm:$0xff] %v7727_v1  ;;  %v7737_v3 = vsel %vm1731_vm2, %v5635_v9, -1e+30 }
 0x189   : > { %1968 = vmax.xlane.f32.xlu0 %v7653_v4  ;;  %1970 = vmax.xlane.f32.xlu1 %v7657_v10  ;;  %v7677_v4 = vsel %vm1731_vm2, %v5626_v21, -1e+30  ;;  %v7693_v21 = vsel %vm1731_vm2, %v1697_v54, -1e+30  ;;  %v7717_v54 = vsel %vm1731_vm2, %v5632_v2, -1e+30 }
 0x18a   : > { %9743 = vst [vmem:[#allocation48_spill] sm:$0xff] %v7677_v4  ;;  %9746 = vst [vmem:[#allocation51_spill] sm:$0xff] %v7693_v21  ;;  %v7733_v2 = vsel %vm1731_vm2, %v1717_v15, -1e+30  ;;  %v698_v15 = vld [vmem:[%s7745_s26 + $0x8] sm:$0xff]  ;;  %v713_v43 = vld [vmem:[%s7745_s26 + $0x80] sm:$0xff] }
 0x18b   : > { %9751 = vst [vmem:[#allocation56_spill] sm:$0xff] %v7717_v54  ;;  %9752 = vst [vmem:[#allocation57_spill] sm:$0xff] %v7723_v58  ;;  %v6052_v23 = vpack.c.bf16 %v698_v15, %v697_v36  ;;  %v714_v9 = vld [vmem:[%s7745_s26 + $0x88] sm:$0xff]  ;;  %v701_v36 = vld [vmem:[%s7745_s26 + $0x20] sm:$0xff] }
 0x18c   : > { %9754 = vst [vmem:[#allocation59_spill] sm:$0xff] %v7733_v2  ;;  %9755 = vst [vmem:[#allocation60_spill] sm:$0xff] %v7737_v3  ;;  %v702_v15 = vld [vmem:[%s7745_s26 + $0x28] sm:$0xff]  ;;  %v708_v10 = vld [vmem:[%s7745_s26 + $0x58] sm:$0xff] }
 0x18d   : > { %1940 = vmax.xlane.f32.xlu0 %v7663_v56  ;;  %1942 = vmax.xlane.f32.xlu1 %v7667_v14 }
 0x18e   : > { %6053 = vmatprep.subr.bf16.mxu0 %v6052_v23 }
 0x18f   : > { %6055 = vmatpush3.bf16.msra.mxu0 %v6052_v23  ;;  %v7759_v23 = vld [vmem:[#allocation2 + $0x88] sm:$0xff] }
 0x191   : > { %1972 = vmax.xlane.f32.xlu0 %v7673_v13  ;;  %1974 = vmax.xlane.f32.xlu1 %v7677_v4  ;;  %v7795_v13 = vld [vmem:[#allocation2 + $0x98] sm:$0xff] }
 0x195   : > { %1944 = vmax.xlane.f32.xlu0 %v7683_v17  ;;  %1946 = vmax.xlane.f32.xlu1 %v7687_v20 }
 0x199   : > { %1976 = vmax.xlane.f32.xlu0 %v7693_v21  ;;  %1978 = vmax.xlane.f32.xlu1 %v7697_v22  ;;  %v718_v21 = vld [vmem:[%s7745_s26 + $0xa8] sm:$0xff] }
 0x19d   : > { %1948 = vmax.xlane.f32.xlu0 %v7703_v44  ;;  %1950 = vmax.xlane.f32.xlu1 %v7707_v47  ;;  %v7755_v47 = vld [vmem:[#allocation2 + $0x8] sm:$0xff] }
 0x1a1   : > { %1980 = vmax.xlane.f32.xlu0 %v7713_v51  ;;  %1982 = vmax.xlane.f32.xlu1 %v7717_v54  ;;  %v715_v51 = vld [vmem:[%s7745_s26 + $0x90] sm:$0xff]  ;;  %v716_v54 = vld [vmem:[%s7745_s26 + $0x98] sm:$0xff] }
 0x1a2   : > { %v6088_v44 = vpack.c.bf16 %v716_v54, %v715_v51 }
 0x1a5   : > { %1952 = vmax.xlane.f32.xlu0 %v7723_v58  ;;  %1954 = vmax.xlane.f32.xlu1 %v7727_v1  ;;  %v700_v58 = vld [vmem:[%s7745_s26 + $0x18] sm:$0xff] }
 0x1a9   : > { %1984 = vmax.xlane.f32.xlu0 %v7733_v2  ;;  %1986 = vmax.xlane.f32.xlu1 %v7737_v3  ;;  %v6084_v2 = vpack.c.bf16 %v714_v9, %v713_v43  ;;  %v699_v3 = vld [vmem:[%s7745_s26 + $0x10] sm:$0xff]  ;;  %v6060_v43 = vpack.c.bf16 %v702_v15, %v701_v36  ;;  %v717_v9 = vld [vmem:[%s7745_s26 + $0xa0] sm:$0xff]  ;;  %v704_v36 = vld [vmem:[%s7745_s26 + $0x38] sm:$0xff] }
 0x1aa   : > { %v6056_v1 = vpack.c.bf16 %v700_v58, %v699_v3  ;;  %v6092_v58 = vpack.c.bf16 %v718_v21, %v717_v9  ;;  %v7769_v3 = vld [vmem:[#allocation2] sm:$0xff]  ;;  %v7776_v21 = vld [vmem:[#allocation2 + $0x18] sm:$0xff]  ;;  %v719_v9 = vld [vmem:[%s7745_s26 + $0xb0] sm:$0xff] }
 0x1ab   : > { %6085 = vmatprep.subr.bf16.mxu1 %v6084_v2 }
 0x1ac   : > { %6087 = vmatpush3.bf16.msra.mxu1 %v6084_v2  ;;  %6057 = vmatprep.subr.bf16.mxu0 %v6056_v1 }
 0x1ad   : > { %6059 = vmatpush3.bf16.msra.mxu0 %v6056_v1  ;;  %6089 = vmatprep.subr.bf16.mxu1 %v6088_v44 }
 0x1ae   : > { %6061 = vmatprep.subr.bf16.mxu0 %v6060_v43 }
 0x1b0   : > { %6091 = vmatpush3.bf16.msra.mxu1 %v6088_v44  ;;  %v703_v44 = vld [vmem:[%s7745_s26 + $0x30] sm:$0xff] }
 0x1b1   : > { %6063 = vmatpush3.bf16.msra.mxu0 %v6060_v43  ;;  %6093 = vmatprep.subr.bf16.mxu1 %v6092_v58  ;;  %v6064_v15 = vpack.c.bf16 %v704_v36, %v703_v44  ;;  %v705_v44 = vld [vmem:[%s7745_s26 + $0x40] sm:$0xff]  ;;  %v706_v36 = vld [vmem:[%s7745_s26 + $0x48] sm:$0xff] }
 0x1b3   : > { %6065 = vmatprep.subr.bf16.mxu0 %v6064_v15 }
 0x1b4   : > { %6095 = vmatpush3.bf16.msra.mxu1 %v6092_v58  ;;  %v7789_v58 = vld [vmem:[#allocation2 + $0x80] sm:$0xff] }
 0x1b5   : > { %6067 = vmatpush3.bf16.msra.mxu0 %v6064_v15 }
 0x1b9   : > { %v1863_v2 = vpop.xlane.xlu0 %1862 }
 0x1ba   : > { %v1895_v51 = vpop.xlane.xlu1 %1894  ;;  %v7764_v54 = vmax.f32 %v7755_v47, %v1863_v2  ;;  %v720_v2 = vld [vmem:[%s7745_s26 + $0xb8] sm:$0xff] }
 0x1bb   : > { %v7767_v1 = vmax.f32 %v7759_v23, %v1895_v51  ;;  %v6096_v51 = vpack.c.bf16 %v720_v2, %v719_v9  ;;  %v6068_v9 = vpack.c.bf16 %v706_v36, %v705_v44  ;;  %v721_v2 = vld [vmem:[%s7745_s26 + $0xc0] sm:$0xff]  ;;  %v7808_v44 = vld [vmem:[#allocation2 + $0x90] sm:$0xff] }
 0x1bc   : > { %4170 = vst.msk [vmem:[#allocation2 + $0x8] sm:$0xff] %vm311_vm3, %v7764_v54  ;;  %2187 = vperm.xlu1 %6207, %v7764_v54   ;;  %v707_v36 = vld [vmem:[%s7745_s26 + $0x50] sm:$0xff] }
 0x1bd   : > { %4186 = vst.msk [vmem:[#allocation2 + $0x88] sm:$0xff] %vm311_vm3, %v7767_v1  ;;  %v1861_v43 = vpop.xlane.xlu0 %1860  ;;  %6097 = vmatprep.subr.bf16.mxu1 %v6096_v51  ;;  %6069 = vmatprep.subr.bf16.mxu0 %v6068_v9 }
 0x1be   : > { %v7783_v22 = vmax.f32 %v7769_v3, %v1861_v43  ;;  %v1867_v17 = vpop.xlane.xlu1 %1866  ;;  %v722_v43 = vld [vmem:[%s7745_s26 + $0xc8] sm:$0xff]  ;;  %6099 = vmatpush3.bf16.msra.mxu1 %v6096_v51  ;;  %6071 = vmatpush3.bf16.msra.mxu0 %v6068_v9  ;;  %v7815_v51 = vld [vmem:[#allocation2 + $0x10] sm:$0xff] }
 0x1bf   : > { %v7786_v20 = vmax.f32 %v7776_v21, %v1867_v17  ;;  %2267 = vperm.xlu0 %6208, %v7767_v1   ;;  %v6100_v15 = vpack.c.bf16 %v722_v43, %v721_v2  ;;  %v6072_v2 = vpack.c.bf16 %v708_v10, %v707_v36  ;;  %v724_v43 = vld [vmem:[%s7745_s26 + $0xd8] sm:$0xff]  ;;  %v7828_v10 = vld [vmem:[#allocation2 + $0x20] sm:$0xff] }
 0x1c0   : > { %4169 = vst.msk [vmem:[#allocation2] sm:$0xff] %vm311_vm3, %v7783_v22  ;;  %v709_v36 = vld [vmem:[%s7745_s26 + $0x60] sm:$0xff] }
 0x1c1   : > { %4172 = vst.msk [vmem:[#allocation2 + $0x18] sm:$0xff] %vm311_vm3, %v7786_v20  ;;  %v1893_v17 = vpop.xlane.xlu0 %1892  ;;  %6101 = vmatprep.subr.bf16.mxu1 %v6100_v15  ;;  %6073 = vmatprep.subr.bf16.mxu0 %v6072_v2  ;;  %v2055_v32 = vsub.f32 %v7776_v21, %v7786_v20 }
 0x1c2   : > { %v7802_v4 = vmax.f32 %v7789_v58, %v1893_v17  ;;  %v1899_v56 = vpop.xlane.xlu1 %1898  ;;  %6103 = vmatpush3.bf16.msra.mxu1 %v6100_v15  ;;  %6075 = vmatpush3.bf16.msra.mxu0 %v6072_v2  ;;  %v7835_v15 = vld [vmem:[#allocation2 + $0x28] sm:$0xff] }
 0x1c3   : > { %v7805_v14 = vmax.f32 %v7795_v13, %v1899_v56  ;;  %2182 = vperm.xlu0 %6208, %v7783_v22   ;;  %v723_v56 = vld [vmem:[%s7745_s26 + $0xd0] sm:$0xff] }
 0x1c4   : > { %4185 = vst.msk [vmem:[#allocation2 + $0x80] sm:$0xff] %vm311_vm3, %v7802_v4  ;;  %2262 = vperm.xlu1 %6207, %v7802_v4   ;;  %v6104_v9 = vpack.c.bf16 %v724_v43, %v723_v56  ;;  %v6076_v56 = vpack.c.bf16 %v710_v8, %v709_v36  ;;  %v726_v43 = vld [vmem:[%s7745_s26 + $0xe8] sm:$0xff]  ;;  %v711_v8 = vld [vmem:[%s7745_s26 + $0x70] sm:$0xff]  ;;  %v712_v36 = vld [vmem:[%s7745_s26 + $0x78] sm:$0xff] }
 0x1c5   : > { %4188 = vst.msk [vmem:[#allocation2 + $0x98] sm:$0xff] %vm311_vm3, %v7805_v14  ;;  %v1897_v17 = vpop.xlane.xlu0 %1896  ;;  %v2071_v21 = vsub.f32 %v7795_v13, %v7805_v14 }
 0x1c6   : > { %v7822_v57 = vmax.f32 %v7808_v44, %v1897_v17  ;;  %v1865_v16 = vpop.xlane.xlu1 %1864  ;;  %6105 = vmatprep.subr.bf16.mxu1 %v6104_v9  ;;  %6077 = vmatprep.subr.bf16.mxu0 %v6076_v56 }
 0x1c7   : > { %v7825_v7 = vmax.f32 %v7815_v51, %v1865_v16  ;;  %2277 = vperm.xlu0 %6208, %v7805_v14   ;;  %v725_v16 = vld [vmem:[%s7745_s26 + $0xe0] sm:$0xff]  ;;  %6107 = vmatpush3.bf16.msra.mxu1 %v6104_v9  ;;  %v6080_v9 = vpack.c.bf16 %v712_v36, %v711_v8  ;;  %v7868_v8 = vld [vmem:[#allocation2 + $0x30] sm:$0xff]  ;;  %v7871_v36 = vld [vmem:[#allocation2 + $0x38] sm:$0xff] }
 0x1c8   : > { %4187 = vst.msk [vmem:[#allocation2 + $0x90] sm:$0xff] %vm311_vm3, %v7822_v57  ;;  %2197 = vperm.xlu1 %6207, %v7786_v20   ;;  %v6108_v2 = vpack.c.bf16 %v726_v43, %v725_v16  ;;  %6079 = vmatpush3.bf16.msra.mxu0 %v6076_v56  ;;  %v727_v16 = vld [vmem:[%s7745_s26 + $0xf0] sm:$0xff]  ;;  %v728_v43 = vld [vmem:[%s7745_s26 + $0xf8] sm:$0xff]  ;;  %v2069_v56 = vsub.f32 %v7759_v23, %v7767_v1 }
 0x1c9   : > { %4171 = vst.msk [vmem:[#allocation2 + $0x10] sm:$0xff] %vm311_vm3, %v7825_v7  ;;  %v1869_v17 = vpop.xlane.xlu0 %1868  ;;  %6081 = vmatprep.subr.bf16.mxu0 %v6080_v9  ;;  %v7950_v20 = vld [vmem:[#allocation2 + $0x58] sm:$0xff] }
 0x1ca   : > { %v1871_v60 = vpop.xlane.xlu1 %1870  ;;  %v7842_v63 = vmax.f32 %v7828_v10, %v1869_v17  ;;  %6109 = vmatprep.subr.bf16.mxu1 %v6108_v2  ;;  %v6112_v17 = vpack.c.bf16 %v728_v43, %v727_v16  ;;  %6209 = vpow2.f32 %v2069_v56  ;;  %v7886_v16 = vld [vmem:[#allocation2 + $0xb0] sm:$0xff]  ;;  %v7889_v43 = vld [vmem:[#allocation2 + $0xb8] sm:$0xff]  ;;  %v7901_v56 = vld [vmem:[#allocation2 + $0x40] sm:$0xff] }
 0x1cb   : > { %v7845_v52 = vmax.f32 %v7835_v15, %v1871_v60  ;;  %6111 = vmatpush3.bf16.msra.mxu1 %v6108_v2 }
 0x1cc   : > { %2192 = vperm.xlu1 %6207, %v7825_v7   ;;  %4173 = vst.msk [vmem:[#allocation2 + $0x20] sm:$0xff] %vm311_vm3, %v7842_v63  ;;  %6083 = vmatpush3.bf16.msra.mxu0 %v6080_v9  ;;  %v2056_v61 = vsub.f32 %v7828_v10, %v7842_v63 }
 0x1cd   : > { %4174 = vst.msk [vmem:[#allocation2 + $0x28] sm:$0xff] %vm311_vm3, %v7845_v52  ;;  %v1901_v60 = vpop.xlane.xlu0 %1900  ;;  %6113 = vmatprep.subr.bf16.mxu1 %v6112_v17 }
 0x1ce   : > { %v1903_v48 = vpop.xlane.xlu1 %1902  ;;  %v7863_v39 = vmax.f32 %v7847_v53, %v1901_v60 }
 0x1cf   : > { %v7866_v40 = vmax.f32 %v7852_v49, %v1903_v48  ;;  %6115 = vmatpush3.bf16.msra.mxu1 %v6112_v17  ;;  %v2052_v48 = vsub.f32 %v7769_v3, %v7783_v22 }
 0x1d0   : > { %2272 = vperm.xlu1 %6207, %v7822_v57   ;;  %4189 = vst.msk [vmem:[#allocation2 + $0xa0] sm:$0xff] %vm311_vm3, %v7863_v39 }
 0x1d1   : > { %4190 = vst.msk [vmem:[#allocation2 + $0xa8] sm:$0xff] %vm311_vm3, %v7866_v40  ;;  %2287 = vperm.xlu0 %6208, %v7866_v40   ;;  %v1873_v23 = vpop.xlane.xlu0 %1872  ;;  %6211 = vpow2.f32 %v2052_v48 }
 0x1d2   : > { %v1875_v1 = vpop.xlane.xlu1 %1874  ;;  %v7881_v2 = vmax.f32 %v7868_v8, %v1873_v23  ;;  %v7906_v23 = vld [vmem:[#allocation2 + $0x48] sm:$0xff] }
 0x1d3   : > { %v7884_v9 = vmax.f32 %v7871_v36, %v1875_v1 }
 0x1d4   : > { %2207 = vperm.xlu1 %6207, %v7845_v52   ;;  %4175 = vst.msk [vmem:[#allocation2 + $0x30] sm:$0xff] %vm311_vm3, %v7881_v2  ;;  %v7919_v38 = vpop.eup %6209 }
 0x1d5   : > { %4176 = vst.msk [vmem:[#allocation2 + $0x38] sm:$0xff] %vm311_vm3, %v7884_v9  ;;  %v1905_v22 = vpop.xlane.xlu0 %1904  ;;  %9756 = vst [vmem:[#allocation61_spill] sm:$0xff] %v7919_v38 }
 0x1d6   : > { %v1907_v3 = vpop.xlane.xlu1 %1906  ;;  %v7896_v60 = vmax.f32 %v7886_v16, %v1905_v22 }
 0x1d7   : > { %v7899_v17 = vmax.f32 %v7889_v43, %v1907_v3 }
 0x1d8   : > { %2202 = vperm.xlu1 %6207, %v7842_v63   ;;  %4191 = vst.msk [vmem:[#allocation2 + $0xb0] sm:$0xff] %vm311_vm3, %v7896_v60 }
 0x1d9   : > { %4192 = vst.msk [vmem:[#allocation2 + $0xb8] sm:$0xff] %vm311_vm3, %v7899_v17  ;;  %2297 = vperm.xlu0 %6208, %v7899_v17   ;;  %v1877_v48 = vpop.xlane.xlu0 %1876 }
 0x1da   : > { %v1879_v1 = vpop.xlane.xlu1 %1878  ;;  %v7912_v22 = vmax.f32 %v7901_v56, %v1877_v48  ;;  %v2053_v48 = vsub.f32 %v7755_v47, %v7764_v54  ;;  %v2068_v54 = vsub.f32 %v7789_v58, %v7802_v4  ;;  %v7990_v4 = vld [vmem:[#allocation2 + $0x68] sm:$0xff] }
 0x1db   : > { %v7915_v3 = vmax.f32 %v7906_v23, %v1879_v1  ;;  %v7943_v28 = vpop.eup %6211 }
 0x1dc   : > { %2282 = vperm.xlu1 %6207, %v7863_v39   ;;  %4177 = vst.msk [vmem:[#allocation2 + $0x40] sm:$0xff] %vm311_vm3, %v7912_v22  ;;  %9757 = vst [vmem:[#allocation62_spill] sm:$0xff] %v7943_v28  ;;  %6213 = vpow2.f32 %v2053_v48  ;;  %v7965_v48 = vld [vmem:[#allocation2 + $0xd0] sm:$0xff] }
 0x1dd   : > { %4178 = vst.msk [vmem:[#allocation2 + $0x48] sm:$0xff] %vm311_vm3, %v7915_v3  ;;  %3744 = vperm.xlu0 %6208, %v7919_v38   ;;  %v1909_v1 = vpop.xlane.xlu0 %1908  ;;  %6215 = vpow2.f32 %v2055_v32  ;;  %v7972_v32 = vld [vmem:[#allocation2 + $0xd8] sm:$0xff] }
 0x1de   : > { %v1911_v33 = vpop.xlane.xlu1 %1910  ;;  %v7936_v34 = vmax.f32 %v7917_v37, %v1909_v1  ;;  %6217 = vpow2.f32 %v2068_v54  ;;  %v8003_v54 = vld [vmem:[#allocation2 + $0xe0] sm:$0xff] }
 0x1df   : > { %v7939_v30 = vmax.f32 %v7926_v35, %v1911_v33  ;;  %6219 = vpow2.f32 %v2071_v21 }
 0x1e0   : > { %2217 = vperm.xlu1 %6207, %v7884_v9   ;;  %4193 = vst.msk [vmem:[#allocation2 + $0xc0] sm:$0xff] %vm311_vm3, %v7936_v34 }
 0x1e1   : > { %4194 = vst.msk [vmem:[#allocation2 + $0xc8] sm:$0xff] %vm311_vm3, %v7939_v30  ;;  %3659 = vperm.xlu0 %6208, %v7943_v28   ;;  %v1881_v33 = vpop.xlane.xlu0 %1880 }
 0x1e2   : > { %v1883_v1 = vpop.xlane.xlu1 %1882  ;;  %v7960_v47 = vmax.f32 %v7941_v31, %v1881_v33 }
 0x1e3   : > { %v7963_v38 = vmax.f32 %v7950_v20, %v1883_v1  ;;  %v7983_v1 = vld [vmem:[#allocation2 + $0x60] sm:$0xff] }
 0x1e4   : > { %2212 = vperm.xlu1 %6207, %v7881_v2   ;;  %4179 = vst.msk [vmem:[#allocation2 + $0x50] sm:$0xff] %vm311_vm3, %v7960_v47 }
 0x1e5   : > { %4180 = vst.msk [vmem:[#allocation2 + $0x58] sm:$0xff] %vm311_vm3, %v7963_v38  ;;  %2227 = vperm.xlu0 %6208, %v7915_v3   ;;  %v1913_v14 = vpop.xlane.xlu0 %1912 }
 0x1e6   : > { %v1915_v13 = vpop.xlane.xlu1 %1914  ;;  %v7978_v58 = vmax.f32 %v7965_v48, %v1913_v14  ;;  %v7998_v28 = vpop.eup %6213 }
 0x1e7   : > { %v7981_v33 = vmax.f32 %v7972_v32, %v1915_v13  ;;  %9758 = vst [vmem:[#allocation63_spill] sm:$0xff] %v7998_v28  ;;  %v8005_v26 = vpop.eup %6215 }
 0x1e8   : > { %2292 = vperm.xlu1 %6207, %v7896_v60   ;;  %4195 = vst.msk [vmem:[#allocation2 + $0xd0] sm:$0xff] %vm311_vm3, %v7978_v58  ;;  %9759 = vst [vmem:[#allocation64_spill] sm:$0xff] %v8005_v26  ;;  %v8024_v18 = vpop.eup %6217 }
 0x1e9   : > { %4196 = vst.msk [vmem:[#allocation2 + $0xd8] sm:$0xff] %vm311_vm3, %v7981_v33  ;;  %2307 = vperm.xlu0 %6208, %v7939_v30   ;;  %v1885_v21 = vpop.xlane.xlu0 %1884  ;;  %9760 = vst [vmem:[#allocation65_spill] sm:$0xff] %v8024_v18 }
 0x1ea   : > { %v1887_v14 = vpop.xlane.xlu1 %1886  ;;  %v7996_v13 = vmax.f32 %v7983_v1, %v1885_v21  ;;  %v2054_v21 = vsub.f32 %v7815_v51, %v7825_v7  ;;  %v8031_v7 = vpop.eup %6219 }
 0x1eb   : > { %v8001_v29 = vmax.f32 %v7990_v4, %v1887_v14  ;;  %9761 = vst [vmem:[#allocation66_spill] sm:$0xff] %v8031_v7 }
 0x1ec   : > { %3664 = vperm.xlu1 %6207, %v7998_v28   ;;  %4181 = vst.msk [vmem:[#allocation2 + $0x60] sm:$0xff] %vm311_vm3, %v7996_v13  ;;  %v2057_v28 = vsub.f32 %v7835_v15, %v7845_v52  ;;  %v8038_v52 = vld [vmem:[#allocation2 + $0x78] sm:$0xff]  ;;  %v2070_v15 = vsub.f32 %v7808_v44, %v7822_v57  ;;  %6221 = vpow2.f32 %v2054_v21 }
 0x1ed   : > { %4182 = vst.msk [vmem:[#allocation2 + $0x68] sm:$0xff] %vm311_vm3, %v8001_v29  ;;  %3674 = vperm.xlu0 %6208, %v8005_v26   ;;  %v1917_v14 = vpop.xlane.xlu0 %1916 }
 0x1ee   : > { %v1919_v25 = vpop.xlane.xlu1 %1918  ;;  %v8022_v27 = vmax.f32 %v8003_v54, %v1917_v14  ;;  %6223 = vpow2.f32 %v2057_v28  ;;  %v2073_v14 = vsub.f32 %v7852_v49, %v7866_v40  ;;  %v8060_v28 = vld [vmem:[#allocation2 + $0xf8] sm:$0xff] }
 0x1ef   : > { %v8027_v19 = vmax.f32 %v8012_v24, %v1919_v25  ;;  %6225 = vpow2.f32 %v2070_v15  ;;  %v8076_v15 = vld [vmem:[#allocation2 + $0x108] sm:$0xff] }
 0x1f0   : > { %3739 = vperm.xlu1 %6207, %v8024_v18   ;;  %4197 = vst.msk [vmem:[#allocation2 + $0xe0] sm:$0xff] %vm311_vm3, %v8022_v27  ;;  %6227 = vpow2.f32 %v2073_v14  ;;  %9762 = vst [vmem:[#allocation67_spill] sm:$0xff] %v8076_v15 }
 0x1f1   : > { %4198 = vst.msk [vmem:[#allocation2 + $0xe8] sm:$0xff] %vm311_vm3, %v8027_v19  ;;  %3754 = vperm.xlu0 %6208, %v8031_v7   ;;  %v1889_v25 = vpop.xlane.xlu0 %1888  ;;  %6229 = vpow2.f32 %v2056_v61 }
 0x1f2   : > { %v1891_v51 = vpop.xlane.xlu1 %1890  ;;  %v8048_v26 = vmax.f32 %v8029_v11, %v1889_v25  ;;  %v8078_v25 = vld [vmem:[#allocation2 + $0x100] sm:$0xff] }
 0x1f3   : > { %v8051_v18 = vmax.f32 %v8038_v52, %v1891_v51  ;;  %9763 = vst [vmem:[#allocation68_spill] sm:$0xff] %v8078_v25 }
 0x1f4   : > { %2222 = vperm.xlu1 %6207, %v7912_v22   ;;  %4183 = vst.msk [vmem:[#allocation2 + $0x70] sm:$0xff] %vm311_vm3, %v8048_v26 }
 0x1f5   : > { %4184 = vst.msk [vmem:[#allocation2 + $0x78] sm:$0xff] %vm311_vm3, %v8051_v18  ;;  %2237 = vperm.xlu0 %6208, %v7963_v38   ;;  %v1921_v40 = vpop.xlane.xlu0 %1920 }
 0x1f6   : > { %v1923_v49 = vpop.xlane.xlu1 %1922  ;;  %v8066_v44 = vmax.f32 %v8053_v12, %v1921_v40 }
 0x1f7   : > { %v8069_v21 = vmax.f32 %v8060_v28, %v1923_v49  ;;  %v8083_v49 = vpop.eup %6221 }
 0x1f8   : > { %2302 = vperm.xlu1 %6207, %v7936_v34   ;;  %4199 = vst.msk [vmem:[#allocation2 + $0xf0] sm:$0xff] %vm311_vm3, %v8066_v44  ;;  %9764 = vst [vmem:[#allocation69_spill] sm:$0xff] %v8083_v49  ;;  %v8091_v7 = vpop.eup %6223 }
 0x1f9   : > { %4200 = vst.msk [vmem:[#allocation2 + $0xf8] sm:$0xff] %vm311_vm3, %v8069_v21  ;;  %2317 = vperm.xlu0 %6208, %v7981_v33   ;;  %9765 = vst [vmem:[#allocation70_spill] sm:$0xff] %v8091_v7 }
 0x1fa   : > { %v1927_v14 = vpop.xlane.xlu1 %1926  ;;  %v1925_v40 = vpop.xlane.xlu0 %1924 }
 0x1fb   : > { %v8086_v57 = vmax.f32 %v8076_v15, %v1927_v14  ;;  %v8089_v51 = vmax.f32 %v8078_v25, %v1925_v40  ;;  %v2059_v14 = vsub.f32 %v7871_v36, %v7884_v9  ;;  %v8109_v25 = vpop.eup %6225  ;;  %v8122_v15 = vld [vmem:[#allocation2 + $0x110] sm:$0xff]  ;;  %v2072_v36 = vsub.f32 %v7847_v53, %v7863_v39  ;;  %v8142_v53 = vld [vmem:[#allocation2 + $0x198] sm:$0xff] }
 0x1fc   : > { %3669 = vperm.xlu1 %6207, %v8083_v49   ;;  %9767 = vst [vmem:[#allocation72_spill] sm:$0xff] %v8109_v25  ;;  %v8117_v62 = vpop.eup %6227  ;;  %9770 = vst [vmem:[#allocation75_spill] sm:$0xff] %v8122_v15  ;;  %v8144_v9 = vld [vmem:[#allocation2 + $0x190] sm:$0xff] }
 0x1fd   : > { %4202 = vst.msk [vmem:[#allocation2 + $0x108] sm:$0xff] %vm311_vm3, %v8086_v57  ;;  %3684 = vperm.xlu0 %6208, %v8091_v7   ;;  %4201 = vst.msk [vmem:[#allocation2 + $0x100] sm:$0xff] %vm311_vm3, %v8089_v51  ;;  %v8120_v7 = vld [vmem:[#allocation2 + $0x118] sm:$0xff]  ;;  %6231 = vpow2.f32 %v2059_v14  ;;  %v8162_v14 = vld [vmem:[#allocation2 + $0x120] sm:$0xff] }
 0x1fe   : > { %v1959_v40 = vpop.xlane.xlu1 %1958  ;;  %v1957_v49 = vpop.xlane.xlu0 %1956  ;;  %9768 = vst [vmem:[#allocation73_spill] sm:$0xff] %v8117_v62  ;;  %9769 = vst [vmem:[#allocation74_spill] sm:$0xff] %v8120_v7  ;;  %6233 = vpow2.f32 %v2072_v36  ;;  %v8160_v36 = vld [vmem:[#allocation2 + $0x128] sm:$0xff] }
 0x1ff   : > { %v8112_v63 = vmax.f32 %v8094_v5, %v1959_v40  ;;  %v8115_v10 = vmax.f32 %v8096_v6, %v1957_v49  ;;  %v2075_v49 = vsub.f32 %v7889_v43, %v7899_v17  ;;  %9771 = vst [vmem:[#allocation76_spill] sm:$0xff] %v8142_v53  ;;  %9772 = vst [vmem:[#allocation77_spill] sm:$0xff] %v8144_v9 }
 0x200   : > { %3749 = vperm.xlu1 %6207, %v8109_v25   ;;  %9774 = vst [vmem:[#allocation79_spill] sm:$0xff] %v8160_v36  ;;  %9775 = vst [vmem:[#allocation80_spill] sm:$0xff] %v8162_v14  ;;  %v2058_v6 = vsub.f32 %v7868_v8, %v7881_v2 }
 0x201   : > { %4218 = vst.msk [vmem:[#allocation2 + $0x188] sm:$0xff] %vm311_vm3, %v8112_v63  ;;  %3764 = vperm.xlu0 %6208, %v8117_v62   ;;  %4217 = vst.msk [vmem:[#allocation2 + $0x180] sm:$0xff] %vm311_vm3, %v8115_v10  ;;  %6235 = vpow2.f32 %v2075_v49  ;;  %v8182_v62 = vld [vmem:[#allocation2 + $0x1a8] sm:$0xff] }
 0x202   : > { %v1931_v40 = vpop.xlane.xlu1 %1930  ;;  %v1929_v61 = vpop.xlane.xlu0 %1928  ;;  %6237 = vpow2.f32 %v2058_v6 }
 0x203   : > { %v8136_v25 = vmax.f32 %v8120_v7, %v1931_v40  ;;  %v8139_v39 = vmax.f32 %v8122_v15, %v1929_v61 }
 0x204   : > { %2232 = vperm.xlu1 %6207, %v7960_v47  }
 0x205   : > { %4204 = vst.msk [vmem:[#allocation2 + $0x118] sm:$0xff] %vm311_vm3, %v8136_v25  ;;  %2247 = vperm.xlu0 %6208, %v8001_v29   ;;  %4203 = vst.msk [vmem:[#allocation2 + $0x110] sm:$0xff] %vm311_vm3, %v8139_v39 }
 0x206   : > { %v1963_v43 = vpop.xlane.xlu1 %1962  ;;  %v1961_v17 = vpop.xlane.xlu0 %1960 }
 0x207   : > { %v8154_v40 = vmax.f32 %v8142_v53, %v1963_v43  ;;  %v8157_v61 = vmax.f32 %v8144_v9, %v1961_v17  ;;  %v8171_v17 = vpop.eup %6229  ;;  %v8184_v53 = vld [vmem:[#allocation2 + $0x1a0] sm:$0xff] }
 0x208   : > { %2312 = vperm.xlu1 %6207, %v7978_v58   ;;  %9776 = vst [vmem:[#allocation81_spill] sm:$0xff] %v8171_v17  ;;  %v8179_v7 = vpop.eup %6231 }
 0x209   : > { %9773 = vst [vmem:[#allocation78_spill] sm:$0xff] %v8157_v61  ;;  %4220 = vst.msk [vmem:[#allocation2 + $0x198] sm:$0xff] %vm311_vm3, %v8154_v40  ;;  %2327 = vperm.xlu0 %6208, %v8027_v19  }
 0x20a   : > { %4219 = vst.msk [vmem:[#allocation2 + $0x190] sm:$0xff] %vm311_vm3, %v8157_v61  ;;  %v1935_v49 = vpop.xlane.xlu1 %1934  ;;  %v1933_v43 = vpop.xlane.xlu0 %1932  ;;  %9777 = vst [vmem:[#allocation82_spill] sm:$0xff] %v8179_v7 }
 0x20b   : > { %v8174_v9 = vmax.f32 %v8160_v36, %v1935_v49  ;;  %v8177_v15 = vmax.f32 %v8162_v14, %v1933_v43  ;;  %v2061_v49 = vsub.f32 %v7906_v23, %v7915_v3  ;;  %v8197_v14 = vpop.eup %6233  ;;  %v8210_v36 = vld [vmem:[#allocation2 + $0x130] sm:$0xff]  ;;  %v2074_v23 = vsub.f32 %v7886_v16, %v7896_v60  ;;  %v8230_v60 = vld [vmem:[#allocation2 + $0x1b8] sm:$0xff] }
 0x20c   : > { %3679 = vperm.xlu1 %6207, %v8171_v17   ;;  %9778 = vst [vmem:[#allocation83_spill] sm:$0xff] %v8197_v14  ;;  %v8205_v61 = vpop.eup %6235  ;;  %9780 = vst [vmem:[#allocation85_spill] sm:$0xff] %v8210_v36  ;;  %v8232_v3 = vld [vmem:[#allocation2 + $0x1b0] sm:$0xff] }
 0x20d   : > { %4206 = vst.msk [vmem:[#allocation2 + $0x128] sm:$0xff] %vm311_vm3, %v8174_v9  ;;  %3694 = vperm.xlu0 %6208, %v8179_v7   ;;  %4205 = vst.msk [vmem:[#allocation2 + $0x120] sm:$0xff] %vm311_vm3, %v8177_v15  ;;  %v8208_v7 = vld [vmem:[#allocation2 + $0x138] sm:$0xff]  ;;  %6239 = vpow2.f32 %v2061_v49  ;;  %v8250_v49 = vld [vmem:[#allocation2 + $0x148] sm:$0xff] }
 0x20e   : > { %v1967_v43 = vpop.xlane.xlu1 %1966  ;;  %v1965_v17 = vpop.xlane.xlu0 %1964  ;;  %9779 = vst [vmem:[#allocation84_spill] sm:$0xff] %v8205_v61  ;;  %9781 = vst [vmem:[#allocation86_spill] sm:$0xff] %v8230_v60  ;;  %6241 = vpow2.f32 %v2074_v23 }
 0x20f   : > { %v8200_v8 = vmax.f32 %v8182_v62, %v1967_v43  ;;  %v8203_v2 = vmax.f32 %v8184_v53, %v1965_v17  ;;  %v2077_v17 = vsub.f32 %v7926_v35, %v7939_v30  ;;  %9782 = vst [vmem:[#allocation87_spill] sm:$0xff] %v8232_v3  ;;  %v2063_v30 = vsub.f32 %v7950_v20, %v7963_v38 }
 0x210   : > { %3759 = vperm.xlu1 %6207, %v8197_v14   ;;  %9783 = vst [vmem:[#allocation88_spill] sm:$0xff] %v8250_v49  ;;  %v2079_v38 = vsub.f32 %v7972_v32, %v7981_v33  ;;  %v2065_v32 = vsub.f32 %v7990_v4, %v8001_v29  ;;  %v9789_v29 = vsub.f32 %v7901_v56, %v7912_v22 }
 0x211   : > { %4222 = vst.msk [vmem:[#allocation2 + $0x1a8] sm:$0xff] %vm311_vm3, %v8200_v8  ;;  %3774 = vperm.xlu0 %6208, %v8205_v61   ;;  %4221 = vst.msk [vmem:[#allocation2 + $0x1a0] sm:$0xff] %vm311_vm3, %v8203_v2  ;;  %6243 = vpow2.f32 %v2077_v17  ;;  %v8252_v61 = vld [vmem:[#allocation2 + $0x140] sm:$0xff]  ;;  %v2081_v4 = vsub.f32 %v8012_v24, %v8027_v19  ;;  %v2067_v19 = vsub.f32 %v8038_v52, %v8051_v18 }
 0x212   : > { %v1939_v43 = vpop.xlane.xlu1 %1938  ;;  %v1937_v6 = vpop.xlane.xlu0 %1936  ;;  %9784 = vst [vmem:[#allocation89_spill] sm:$0xff] %v8252_v61  ;;  %6245 = vpow2.f32 %v2063_v30  ;;  %v8276_v30 = vld [vmem:[#allocation2 + $0x1c0] sm:$0xff] }
 0x213   : > { %v8224_v14 = vmax.f32 %v8208_v7, %v1939_v43  ;;  %v8227_v16 = vmax.f32 %v8210_v36, %v1937_v6  ;;  %6247 = vpow2.f32 %v2079_v38  ;;  %v8298_v38 = vld [vmem:[#allocation2 + $0x150] sm:$0xff] }
 0x214   : > { %2242 = vperm.xlu1 %6207, %v7996_v13   ;;  %6249 = vpow2.f32 %v9789_v29  ;;  %v8319_v29 = vld [vmem:[#allocation2 + $0x1d8] sm:$0xff] }
 0x215   : > { %4208 = vst.msk [vmem:[#allocation2 + $0x138] sm:$0xff] %vm311_vm3, %v8224_v14  ;;  %2257 = vperm.xlu0 %6208, %v8051_v18   ;;  %4207 = vst.msk [vmem:[#allocation2 + $0x130] sm:$0xff] %vm311_vm3, %v8227_v16  ;;  %6251 = vpow2.f32 %v2065_v32  ;;  %v9792_v32 = vsub.f32 %v7917_v37, %v7936_v34  ;;  %v2083_v18 = vsub.f32 %v8060_v28, %v8069_v21 }
 0x216   : > { %v1971_v35 = vpop.xlane.xlu1 %1970  ;;  %v1969_v43 = vpop.xlane.xlu0 %1968  ;;  %v9799_v28 = vsub.f32 %v7965_v48, %v7978_v58  ;;  %v8390_v58 = vld [vmem:[#allocation2 + $0x178] sm:$0xff] }
 0x217   : > { %v8244_v6 = vmax.f32 %v8230_v60, %v1971_v35  ;;  %v8247_v23 = vmax.f32 %v8232_v3, %v1969_v43  ;;  %v8263_v43 = vpop.eup %6237  ;;  %v8274_v60 = vld [vmem:[#allocation2 + $0x1c8] sm:$0xff]  ;;  %6253 = vpow2.f32 %v9792_v32 }
 0x218   : > { %2322 = vperm.xlu1 %6207, %v8022_v27   ;;  %9785 = vst [vmem:[#allocation90_spill] sm:$0xff] %v8263_v43  ;;  %v8271_v36 = vpop.eup %6239  ;;  %6255 = vpow2.f32 %v2081_v4  ;;  %v8342_v32 = vld [vmem:[#allocation2 + $0x168] sm:$0xff]  ;;  %v9795_v4 = vsub.f32 %v7941_v31, %v7960_v47 }
 0x219   : > { %4224 = vst.msk [vmem:[#allocation2 + $0x1b8] sm:$0xff] %vm311_vm3, %v8244_v6  ;;  %2337 = vperm.xlu0 %6208, %v8069_v21   ;;  %4223 = vst.msk [vmem:[#allocation2 + $0x1b0] sm:$0xff] %vm311_vm3, %v8247_v23 }
 0x21a   : > { %v1943_v20 = vpop.xlane.xlu1 %1942  ;;  %v1941_v35 = vpop.xlane.xlu0 %1940  ;;  %9786 = vst [vmem:[#allocation91_spill] sm:$0xff] %v8271_v36  ;;  %6257 = vpow2.f32 %v9795_v4  ;;  %v8367_v4 = vld [vmem:[#allocation2 + $0x1e8] sm:$0xff] }
 0x21b   : > { %v8266_v3 = vmax.f32 %v8250_v49, %v1943_v20  ;;  %v8269_v17 = vmax.f32 %v8252_v61, %v1941_v35  ;;  %v8285_v35 = vpop.eup %6241  ;;  %6259 = vpow2.f32 %v2067_v19  ;;  %v8369_v19 = vld [vmem:[#allocation2 + $0x1e0] sm:$0xff] }
 0x21c   : > { %3689 = vperm.xlu1 %6207, %v8263_v43   ;;  %9787 = vst [vmem:[#allocation92_spill] sm:$0xff] %v8285_v35  ;;  %v8293_v49 = vpop.eup %6243  ;;  %9798 = vst [vmem:[#allocation100_spill] sm:$0xff] %v8369_v19  ;;  %6261 = vpow2.f32 %v9799_v28  ;;  %v8392_v28 = vld [vmem:[#allocation2 + $0x170] sm:$0xff] }
 0x21d   : > { %4210 = vst.msk [vmem:[#allocation2 + $0x148] sm:$0xff] %vm311_vm3, %v8266_v3  ;;  %3704 = vperm.xlu0 %6208, %v8271_v36   ;;  %4209 = vst.msk [vmem:[#allocation2 + $0x140] sm:$0xff] %vm311_vm3, %v8269_v17  ;;  %v8296_v36 = vld [vmem:[#allocation2 + $0x158] sm:$0xff]  ;;  %v8316_v22 = vpop.eup %6245  ;;  %6263 = vpow2.f32 %v2083_v18  ;;  %v9803_v18 = vsub.f32 %v7983_v1, %v7996_v13 }
 0x21e   : > { %v1975_v33 = vpop.xlane.xlu1 %1974  ;;  %v1973_v20 = vpop.xlane.xlu0 %1972  ;;  %9788 = vst [vmem:[#allocation93_spill] sm:$0xff] %v8293_v49  ;;  %9790 = vst [vmem:[#allocation94_spill] sm:$0xff] %v8316_v22  ;;  %v8413_v13 = vld [vmem:[#allocation2 + $0x1f8] sm:$0xff] }
 0x21f   : > { %v8288_v43 = vmax.f32 %v8274_v60, %v1975_v33  ;;  %v8291_v61 = vmax.f32 %v8276_v30, %v1973_v20  ;;  %v8339_v37 = vpop.eup %6247  ;;  %9802 = vst [vmem:[#allocation103_spill] sm:$0xff] %v8392_v28  ;;  %6265 = vpow2.f32 %v9803_v18  ;;  %9806 = vst [vmem:[#allocation106_spill] sm:$0xff] %v8413_v13  ;;  %v8415_v18 = vld [vmem:[#allocation2 + $0x1f0] sm:$0xff] }
 0x220   : > { %3769 = vperm.xlu1 %6207, %v8285_v35   ;;  %9793 = vst [vmem:[#allocation96_spill] sm:$0xff] %v8339_v37  ;;  %9807 = vst [vmem:[#allocation107_spill] sm:$0xff] %v8415_v18 }
 0x221   : > { %4226 = vst.msk [vmem:[#allocation2 + $0x1c8] sm:$0xff] %vm311_vm3, %v8288_v43  ;;  %3784 = vperm.xlu0 %6208, %v8293_v49   ;;  %4225 = vst.msk [vmem:[#allocation2 + $0x1c0] sm:$0xff] %vm311_vm3, %v8291_v61  ;;  %v8321_v49 = vld [vmem:[#allocation2 + $0x1d0] sm:$0xff] }
 0x222   : > { %v1947_v33 = vpop.xlane.xlu1 %1946  ;;  %v1945_v20 = vpop.xlane.xlu0 %1944  ;;  %9791 = vst [vmem:[#allocation95_spill] sm:$0xff] %v8321_v49 }
 0x223   : > { %v8311_v35 = vmax.f32 %v8296_v36, %v1947_v33  ;;  %v8314_v56 = vmax.f32 %v8298_v38, %v1945_v20 }
 0x224   : > { %2252 = vperm.xlu1 %6207, %v8048_v26  }
 0x225   : > { %4212 = vst.msk [vmem:[#allocation2 + $0x158] sm:$0xff] %vm311_vm3, %v8311_v35  ;;  %3714 = vperm.xlu0 %6208, %v8316_v22   ;;  %4211 = vst.msk [vmem:[#allocation2 + $0x150] sm:$0xff] %vm311_vm3, %v8314_v56  ;;  %v8344_v22 = vld [vmem:[#allocation2 + $0x160] sm:$0xff] }
 0x226   : > { %v1979_v24 = vpop.xlane.xlu1 %1978  ;;  %v1977_v33 = vpop.xlane.xlu0 %1976  ;;  %9794 = vst [vmem:[#allocation97_spill] sm:$0xff] %v8344_v22 }
 0x227   : > { %v8334_v20 = vmax.f32 %v8319_v29, %v1979_v24  ;;  %v8337_v34 = vmax.f32 %v8321_v49, %v1977_v33  ;;  %v8356_v33 = vpop.eup %6249 }
 0x228   : > { %2332 = vperm.xlu1 %6207, %v8066_v44   ;;  %9796 = vst [vmem:[#allocation98_spill] sm:$0xff] %v8356_v33  ;;  %v8364_v47 = vpop.eup %6251 }
 0x229   : > { %4228 = vst.msk [vmem:[#allocation2 + $0x1d8] sm:$0xff] %vm311_vm3, %v8334_v20  ;;  %3794 = vperm.xlu0 %6208, %v8339_v37   ;;  %4227 = vst.msk [vmem:[#allocation2 + $0x1d0] sm:$0xff] %vm311_vm3, %v8337_v34 }
 0x22a   : > { %v1951_v52 = vpop.xlane.xlu1 %1950  ;;  %v1949_v24 = vpop.xlane.xlu0 %1948  ;;  %9797 = vst [vmem:[#allocation99_spill] sm:$0xff] %v8364_v47 }
 0x22b   : > { %v8359_v49 = vmax.f32 %v8342_v32, %v1951_v52  ;;  %v8362_v31 = vmax.f32 %v8344_v22, %v1949_v24  ;;  %v8379_v24 = vpop.eup %6253 }
 0x22c   : > { %3699 = vperm.xlu1 %6207, %v8356_v33   ;;  %9800 = vst [vmem:[#allocation101_spill] sm:$0xff] %v8379_v24  ;;  %v8387_v48 = vpop.eup %6255 }
 0x22d   : > { %4214 = vst.msk [vmem:[#allocation2 + $0x168] sm:$0xff] %vm311_vm3, %v8359_v49  ;;  %3724 = vperm.xlu0 %6208, %v8364_v47   ;;  %4213 = vst.msk [vmem:[#allocation2 + $0x160] sm:$0xff] %vm311_vm3, %v8362_v31  ;;  %v8402_v47 = vpop.eup %6257 }
 0x22e   : > { %v1983_v21 = vpop.xlane.xlu1 %1982  ;;  %v1981_v52 = vpop.xlane.xlu0 %1980  ;;  %9801 = vst [vmem:[#allocation102_spill] sm:$0xff] %v8387_v48  ;;  %9804 = vst [vmem:[#allocation104_spill] sm:$0xff] %v8402_v47 }
 0x22f   : > { %v8382_v37 = vmax.f32 %v8367_v4, %v1983_v21  ;;  %v8385_v33 = vmax.f32 %v8369_v19, %v1981_v52  ;;  %v8410_v1 = vpop.eup %6259 }
 0x230   : > { %3779 = vperm.xlu1 %6207, %v8379_v24   ;;  %9805 = vst [vmem:[#allocation105_spill] sm:$0xff] %v8410_v1 }
 0x231   : > { %4230 = vst.msk [vmem:[#allocation2 + $0x1e8] sm:$0xff] %vm311_vm3, %v8382_v37  ;;  %3804 = vperm.xlu0 %6208, %v8387_v48   ;;  %4229 = vst.msk [vmem:[#allocation2 + $0x1e0] sm:$0xff] %vm311_vm3, %v8385_v33  ;;  %v9808_v48 = vsub.f32 %v8003_v54, %v8022_v27  ;;  %v729_v54 = vld [vmem:[%s7745_s26 + $0x100] sm:$0xff] }
 0x232   : > { %v1955_v21 = vpop.xlane.xlu1 %1954  ;;  %v1953_v52 = vpop.xlane.xlu0 %1952 }
 0x233   : > { %v8405_v24 = vmax.f32 %v8390_v58, %v1955_v21  ;;  %v8408_v19 = vmax.f32 %v8392_v28, %v1953_v52  ;;  %6267 = vpow2.f32 %v9808_v48  ;;  %v730_v48 = vld [vmem:[%s7745_s26 + $0x108] sm:$0xff] }
 0x234   : > { %3709 = vperm.xlu1 %6207, %v8402_v47   ;;  %v8425_v47 = vpop.eup %6261 }
 0x235   : > { %4216 = vst.msk [vmem:[#allocation2 + $0x178] sm:$0xff] %vm311_vm3, %v8405_v24  ;;  %3734 = vperm.xlu0 %6208, %v8410_v1   ;;  %4215 = vst.msk [vmem:[#allocation2 + $0x170] sm:$0xff] %vm311_vm3, %v8408_v19  ;;  %v8433_v27 = vpop.eup %6263  ;;  %v9811_v1 = vsub.f32 %v8029_v11, %v8048_v26  ;;  %v746_v26 = vld [vmem:[%s7745_s26 + $0x188] sm:$0xff] }
 0x236   : > { %v1987_v21 = vpop.xlane.xlu1 %1986  ;;  %v1985_v52 = vpop.xlane.xlu0 %1984  ;;  %9809 = vst [vmem:[#allocation108_spill] sm:$0xff] %v8425_v47  ;;  %9810 = vst [vmem:[#allocation109_spill] sm:$0xff] %v8433_v27 }
 0x237   : > { %v8428_v28 = vmax.f32 %v8413_v13, %v1987_v21  ;;  %v8431_v22 = vmax.f32 %v8415_v18, %v1985_v52  ;;  %6269 = vpow2.f32 %v9811_v1  ;;  %v6116_v21 = vpack.c.bf16 %v730_v48, %v729_v54  ;;  %v8446_v52 = vpop.eup %6265 }
 0x238   : > { %3789 = vperm.xlu1 %6207, %v8425_v47   ;;  %9812 = vst [vmem:[#allocation110_spill] sm:$0xff] %v8446_v52  ;;  %v745_v47 = vld [vmem:[%s7745_s26 + $0x180] sm:$0xff]  ;;  %v9813_v18 = vsub.f32 %v8053_v12, %v8066_v44 }
 0x239   : > { %4232 = vst.msk [vmem:[#allocation2 + $0x1f8] sm:$0xff] %vm311_vm3, %v8428_v28  ;;  %3814 = vperm.xlu0 %6208, %v8433_v27   ;;  %4231 = vst.msk [vmem:[#allocation2 + $0x1f0] sm:$0xff] %vm311_vm3, %v8431_v22  ;;  %6117 = vmatprep.subr.bf16.mxu0 %v6116_v21  ;;  %v6148_v27 = vpack.c.bf16 %v746_v26, %v745_v47 }
 0x23a   : > { %6271 = vpow2.f32 %v9813_v18 }
 0x23b   : > { %v2188_v11 = vpop.permute.xlu1 %2187  ;;  %6149 = vmatprep.subr.bf16.mxu1 %v6148_v27 }
 0x23c   : > { %3719 = vperm.xlu1 %6207, %v8446_v52   ;;  %v2501_v54 = vsub.f32 %v7134_v41, %v2188_v11 }
 0x23d   : > { %2347 = vperm.xlu0 %6208, %v8086_v57   ;;  %v8455_v13 = vpop.eup %6267 }
 0x23e   : > { %v2268_v1 = vpop.permute.xlu0 %2267  ;;  %9814 = vst [vmem:[#allocation111_spill] sm:$0xff] %v8455_v13  ;;  %6273 = vpow2.f32 %v2501_v54  ;;  %v732_v54 = vld [vmem:[%s7745_s26 + $0x118] sm:$0xff] }
 0x23f   : > { %v2517_v18 = vsub.f32 %v7138_v42, %v2268_v1  ;;  %v731_v1 = vld [vmem:[%s7745_s26 + $0x110] sm:$0xff] }
 0x240   : > { %3799 = vperm.xlu1 %6207, %v8455_v13  }
 0x241   : > { %2427 = vperm.xlu0 %6208, %v8112_v63   ;;  %v8460_v52 = vpop.eup %6269 }
 0x242   : > { %v2183_v48 = vpop.permute.xlu0 %2182  ;;  %9815 = vst [vmem:[#allocation112_spill] sm:$0xff] %v8460_v52 }
 0x243   : > { %v2500_v12 = vsub.f32 %v7144_v45, %v2183_v48  ;;  %v2263_v44 = vpop.permute.xlu1 %2262 }
 0x244   : > { %v2516_v47 = vsub.f32 %v7158_v0, %v2263_v44  ;;  %3729 = vperm.xlu1 %6207, %v8460_v52   ;;  %v8467_v41 = vpop.eup %6271  ;;  %v748_v44 = vld [vmem:[%s7745_s26 + $0x198] sm:$0xff]  ;;  %v9818_v52 = vld [vmem:[#allocation67_spill] sm:$0xff] }
 0x245   : > { %6275 = vpow2.f32 %v2500_v12  ;;  %2357 = vperm.xlu0 %6208, %v8136_v25   ;;  %9816 = vst [vmem:[#allocation113_spill] sm:$0xff] %v8467_v41  ;;  %v747_v12 = vld [vmem:[%s7745_s26 + $0x190] sm:$0xff]  ;;  %v9819_v13 = vsub.f32 %v9818_v52, %v8086_v57  ;;  %v750_v52 = vld [vmem:[%s7745_s26 + $0x1a8] sm:$0xff] }
 0x246   : > { %6277 = vpow2.f32 %v2516_v47  ;;  %v2278_v0 = vpop.permute.xlu0 %2277 }
 0x247   : > { %v2198_v11 = vpop.permute.xlu1 %2197  ;;  %6279 = vpow2.f32 %v2517_v18 }
 0x248   : > { %3809 = vperm.xlu1 %6207, %v8467_v41   ;;  %v2503_v42 = vsub.f32 %v7148_v46, %v2198_v11  ;;  %v8477_v48 = vpop.eup %6273  ;;  %v2519_v46 = vsub.f32 %v7154_v50, %v2278_v0  ;;  %v733_v41 = vld [vmem:[%s7745_s26 + $0x120] sm:$0xff]  ;;  %v6152_v50 = vpack.c.bf16 %v748_v44, %v747_v12 }
 0x249   : > { %2437 = vperm.xlu0 %6208, %v8154_v40  }
 0x24b   : > { %v2193_v45 = vpop.permute.xlu1 %2192 }
 0x24c   : > { %v2502_v26 = vsub.f32 %v7171_v59, %v2193_v45  ;;  %2342 = vperm.xlu1 %6207, %v8089_v51   ;;  %v6120_v59 = vpack.c.bf16 %v732_v54, %v731_v1  ;;  %v735_v1 = vld [vmem:[%s7745_s26 + $0x130] sm:$0xff]  ;;  %v736_v54 = vld [vmem:[%s7745_s26 + $0x138] sm:$0xff] }
 0x24d   : > { %2367 = vperm.xlu0 %6208, %v8174_v9  }
 0x24e   : > { %6281 = vpow2.f32 %v2502_v26  ;;  %v734_v26 = vld [vmem:[%s7745_s26 + $0x128] sm:$0xff] }
 0x24f   : > { %v8481_v18 = vpop.eup %6275  ;;  %6283 = vpow2.f32 %v2503_v42  ;;  %v2273_v47 = vpop.permute.xlu1 %2272  ;;  %v6124_v57 = vpack.c.bf16 %v734_v26, %v733_v41  ;;  %v9822_v41 = vld [vmem:[#allocation6_spill] sm:$0xff] }
 0x250   : > { %9817 = vst [vmem:[#allocation114_spill] sm:$0xff] %v8481_v18  ;;  %v8484_v11 = vpop.eup %6277  ;;  %v2518_v45 = vsub.f32 %v7164_v55, %v2273_v47  ;;  %2422 = vperm.xlu1 %6207, %v8115_v10   ;;  %5668 = vmatprep.mubr.f32.mxu0 %v8481_v18  ;;  %6285 = vpow2.f32 %v9819_v13  ;;  %v749_v13 = vld [vmem:[%s7745_s26 + $0x1a0] sm:$0xff]  ;;  %v2288_v0 = vpop.permute.xlu0 %2287  ;;  %v9824_v18 = vld [vmem:[#allocation78_spill] sm:$0xff] }
 0x251   : > { %2447 = vperm.xlu0 %6208, %v8200_v8   ;;  %5669 = vmatmul.mubr.f32.vlgmr.msra.gmra.mrb[32].mxu0 %v8477_v48  ;;  %v8496_v42 = vpop.eup %6279  ;;  %v6156_v12 = vpack.c.bf16 %v750_v52, %v749_v13  ;;  %v9823_v47 = vld [vmem:[#allocation5_spill] sm:$0xff]  ;;  %v751_v13 = vld [vmem:[%s7745_s26 + $0x1b0] sm:$0xff]  ;;  %v752_v52 = vld [vmem:[%s7745_s26 + $0x1b8] sm:$0xff] }
 0x252   : > { %9820 = vst [vmem:[#allocation67_spill] sm:$0xff] %v8496_v42  ;;  %6287 = vpow2.f32 %v2518_v45  ;;  %5724 = vmatprep.mubr.f32.mxu1 %v8484_v11  ;;  %6119 = vmatpush3.bf16.msra.mxu0 %v6116_v21  ;;  %v9821_v21 = vsub.f32 %v8094_v5, %v8112_v63  ;;  %v6128_v5 = vpack.c.bf16 %v736_v54, %v735_v1 }
 0x253   : > { %6289 = vpow2.f32 %v2519_v46  ;;  %5725 = vmatmul.mubr.f32.vlgmr.msra.gmra.mrb[32].mxu1 %v8496_v42  ;;  %v2208_v55 = vpop.permute.xlu1 %2207  ;;  %6121 = vmatprep.subr.bf16.mxu0 %v6120_v59 }
 0x254   : > { %2352 = vperm.xlu1 %6207, %v8139_v39   ;;  %6151 = vmatpush3.bf16.msra.mxu1 %v6148_v27  ;;  %6291 = vpow2.f32 %v9821_v21  ;;  %v2505_v44 = vsub.f32 %v9822_v41, %v2208_v55  ;;  %v738_v55 = vld [vmem:[%s7745_s26 + $0x148] sm:$0xff]  ;;  %v9827_v41 = vld [vmem:[#allocation8_spill] sm:$0xff] }
 0x255   : > { %2377 = vperm.xlu0 %6208, %v8224_v14   ;;  %6153 = vmatprep.subr.bf16.mxu1 %v6152_v50 }
 0x256   : > { %6123 = vmatpush3.bf16.msra.mxu0 %v6120_v59  ;;  %v737_v59 = vld [vmem:[%s7745_s26 + $0x140] sm:$0xff] }
 0x257   : > { %v2203_v46 = vpop.permute.xlu1 %2202  ;;  %6125 = vmatprep.subr.bf16.mxu0 %v6124_v57 }
 0x258   : > { %v8510_v27 = vpop.eup %6281  ;;  %v2504_v45 = vsub.f32 %v9823_v47, %v2203_v46  ;;  %v8513_v26 = vpop.permute.xlu0 %2297  ;;  %2432 = vperm.xlu1 %6207, %v9824_v18   ;;  %6155 = vmatpush3.bf16.msra.mxu1 %v6152_v50  ;;  %v2521_v50 = vsub.f32 %v9827_v41, %v2288_v0  ;;  %v9829_v46 = vld [vmem:[#allocation7_spill] sm:$0xff]  ;;  %v9832_v0 = vld [vmem:[#allocation68_spill] sm:$0xff] }
 0x259   : > { %v8516_v63 = vpop.eup %6283  ;;  %2457 = vperm.xlu0 %6208, %v8244_v6   ;;  %5671 = vmatprep.mubr.f32.mxu0 %v8510_v27  ;;  %v2084_v41 = vsub.f32 %v9832_v0, %v8089_v51  ;;  %v9834_v51 = vld [vmem:[#allocation71_spill] sm:$0xff] }
 0x25a   : > { %9825 = vst [vmem:[#allocation6_spill] sm:$0xff] %v8516_v63  ;;  %6293 = vpow2.f32 %v2504_v45  ;;  %5672 = vmatmul.mubr.f32.gmra.mrb[34].mxu0 %v8516_v63  ;;  %6157 = vmatprep.subr.bf16.mxu1 %v6156_v12  ;;  %v8525_v21 = vpop.eup %6285  ;;  %v6132_v45 = vpack.c.bf16 %v738_v55, %v737_v59  ;;  %v753_v59 = vld [vmem:[%s7745_s26 + $0x1c0] sm:$0xff]  ;;  %v754_v55 = vld [vmem:[%s7745_s26 + $0x1c8] sm:$0xff]  ;;  %v2100_v0 = vsub.f32 %v9834_v51, %v8115_v10 }
 0x25b   : > { %9826 = vst [vmem:[#allocation5_spill] sm:$0xff] %v8525_v21  ;;  %6295 = vpow2.f32 %v2505_v44  ;;  %v2283_v1 = vpop.permute.xlu1 %2282  ;;  %6127 = vmatpush3.bf16.msra.mxu0 %v6124_v57  ;;  %v6160_v57 = vpack.c.bf16 %v752_v52, %v751_v13  ;;  %v739_v44 = vld [vmem:[%s7745_s26 + $0x150] sm:$0xff]  ;;  %v9838_v10 = vld [vmem:[#allocation10_spill] sm:$0xff] }
 0x25c   : > { %v8528_v54 = vpop.eup %6287  ;;  %v2520_v47 = vsub.f32 %v9829_v46, %v2283_v1  ;;  %v8531_v42 = vpop.permute.xlu0 %3744  ;;  %2362 = vperm.xlu1 %6207, %v8177_v15   ;;  %6129 = vmatprep.subr.bf16.mxu0 %v6128_v5  ;;  %v740_v1 = vld [vmem:[%s7745_s26 + $0x158] sm:$0xff] }
 0x25d   : > { %9828 = vst [vmem:[#allocation78_spill] sm:$0xff] %v8528_v54  ;;  %9830 = vst [vmem:[#allocation8_spill] sm:$0xff] %v8531_v42  ;;  %v8534_v63 = vpop.eup %6289  ;;  %3824 = vperm.xlu0 %6208, %v8525_v21   ;;  %5727 = vmatprep.mubr.f32.mxu1 %v8528_v54  ;;  %v6136_v52 = vpack.c.bf16 %v740_v1, %v739_v44  ;;  %v6164_v21 = vpack.c.bf16 %v754_v55, %v753_v59  ;;  %v756_v44 = vld [vmem:[%s7745_s26 + $0x1d8] sm:$0xff]  ;;  %v9839_v1 = vld [vmem:[#allocation9_spill] sm:$0xff] }
 0x25e   : > { %9831 = vst [vmem:[#allocation7_spill] sm:$0xff] %v8534_v63  ;;  %6297 = vpow2.f32 %v2520_v47  ;;  %5728 = vmatmul.mubr.f32.gmra.mrb[34].mxu1 %v8534_v63  ;;  %v8545_v42 = vpop.eup %6291  ;;  %v743_v59 = vld [vmem:[%s7745_s26 + $0x170] sm:$0xff]  ;;  %v744_v55 = vld [vmem:[%s7745_s26 + $0x178] sm:$0xff] }
 0x25f   : > { %6299 = vpow2.f32 %v2521_v50  ;;  %v2218_v46 = vpop.permute.xlu1 %2217  ;;  %6131 = vmatpush3.bf16.msra.mxu0 %v6128_v5  ;;  %6159 = vmatpush3.bf16.msra.mxu1 %v6156_v12  ;;  %9833 = vst [vmem:[#allocation68_spill] sm:$0xff] %v8545_v42  ;;  %v741_v12 = vld [vmem:[%s7745_s26 + $0x160] sm:$0xff]  ;;  %v742_v5 = vld [vmem:[%s7745_s26 + $0x168] sm:$0xff] }
 0x260   : > { %v8549_v13 = vpop.permute.xlu0 %3659  ;;  %2442 = vperm.xlu1 %6207, %v8203_v2   ;;  %6133 = vmatprep.subr.bf16.mxu0 %v6132_v45  ;;  %6301 = vpow2.f32 %v2084_v41  ;;  %v9836_v50 = vld [vmem:[#allocation74_spill] sm:$0xff]  ;;  %v2507_v51 = vsub.f32 %v9838_v10, %v2218_v46  ;;  %v9843_v10 = vld [vmem:[#allocation11_spill] sm:$0xff] }
 0x261   : > { %9835 = vst [vmem:[#allocation71_spill] sm:$0xff] %v8549_v13  ;;  %3904 = vperm.xlu0 %6208, %v8545_v42   ;;  %6161 = vmatprep.subr.bf16.mxu1 %v6160_v57  ;;  %v9837_v47 = vsub.f32 %v9836_v50, %v8136_v25  ;;  %v755_v13 = vld [vmem:[%s7745_s26 + $0x1d0] sm:$0xff]  ;;  %v6140_v25 = vpack.c.bf16 %v742_v5, %v741_v12  ;;  %v758_v50 = vld [vmem:[%s7745_s26 + $0x1e8] sm:$0xff]  ;;  %v9842_v12 = vld [vmem:[#allocation12_spill] sm:$0xff] }
 0x262   : > { %v2523_v5 = vsub.f32 %v9842_v12, %v8513_v26 }
 0x263   : > { %6303 = vpow2.f32 %v9837_v47  ;;  %v2213_v63 = vpop.permute.xlu1 %2212  ;;  %6135 = vmatpush3.bf16.msra.mxu0 %v6132_v45  ;;  %6163 = vmatpush3.bf16.msra.mxu1 %v6160_v57  ;;  %v9840_v45 = vld [vmem:[#allocation76_spill] sm:$0xff] }
 0x264   : > { %v8561_v41 = vpop.eup %6293  ;;  %6305 = vpow2.f32 %v2100_v0  ;;  %v2506_v42 = vsub.f32 %v9839_v1, %v2213_v63  ;;  %v8564_v54 = vpop.permute.xlu0 %2227  ;;  %2372 = vperm.xlu1 %6207, %v8227_v16   ;;  %6137 = vmatprep.subr.bf16.mxu0 %v6136_v52  ;;  %v9841_v57 = vsub.f32 %v9840_v45, %v8154_v40  ;;  %v6168_v63 = vpack.c.bf16 %v756_v44, %v755_v13  ;;  %v757_v0 = vld [vmem:[%s7745_s26 + $0x1e0] sm:$0xff] }
 0x265   : > { %v8567_v46 = vpop.eup %6295  ;;  %2387 = vperm.xlu0 %6208, %v8266_v3   ;;  %5674 = vmatprep.mubr.f32.mxu0 %v8561_v41  ;;  %v6144_v13 = vpack.c.bf16 %v744_v55, %v743_v59  ;;  %v6172_v26 = vpack.c.bf16 %v758_v50, %v757_v0  ;;  %v9846_v0 = vld [vmem:[#allocation75_spill] sm:$0xff] }
 0x266   : > { %6307 = vpow2.f32 %v9841_v57  ;;  %5675 = vmatmul.mubr.f32.gmra.mrb[36].mxu0 %v8567_v46  ;;  %6165 = vmatprep.subr.bf16.mxu1 %v6164_v21  ;;  %v2086_v50 = vsub.f32 %v9846_v0, %v8139_v39 }
 0x267   : > { %6309 = vpow2.f32 %v2506_v42  ;;  %v2293_v40 = vpop.permute.xlu1 %2292  ;;  %6139 = vmatpush3.bf16.msra.mxu0 %v6136_v52  ;;  %6167 = vmatpush3.bf16.msra.mxu1 %v6164_v21  ;;  %v760_v52 = vld [vmem:[%s7745_s26 + $0x1f8] sm:$0xff] }
 0x268   : > { %6311 = vpow2.f32 %v2507_v51  ;;  %v8581_v47 = vpop.eup %6297  ;;  %v2522_v1 = vsub.f32 %v9843_v10, %v2293_v40  ;;  %v8584_v42 = vpop.permute.xlu0 %2307  ;;  %2452 = vperm.xlu1 %6207, %v8247_v23   ;;  %6141 = vmatprep.subr.bf16.mxu0 %v6140_v25  ;;  %v759_v51 = vld [vmem:[%s7745_s26 + $0x1f0] sm:$0xff]  ;;  %v9849_v40 = vld [vmem:[#allocation77_spill] sm:$0xff] }
 0x269   : > { %v8587_v44 = vpop.eup %6299  ;;  %2467 = vperm.xlu0 %6208, %v8288_v43   ;;  %5730 = vmatprep.mubr.f32.mxu1 %v8581_v47  ;;  %v6176_v55 = vpack.c.bf16 %v760_v52, %v759_v51  ;;  %v2102_v10 = vsub.f32 %v9849_v40, %v9824_v18  ;;  %v9850_v51 = vld [vmem:[#allocation79_spill] sm:$0xff]  ;;  %v9852_v18 = vld [vmem:[#allocation14_spill] sm:$0xff]  ;;  %v9853_v40 = vld [vmem:[#allocation13_spill] sm:$0xff] }
 0x26a   : > { %6313 = vpow2.f32 %v2522_v1  ;;  %5731 = vmatmul.mubr.f32.gmra.mrb[36].mxu1 %v8587_v44  ;;  %6169 = vmatprep.subr.bf16.mxu1 %v6168_v63  ;;  %v8594_v21 = vpop.eup %6301 }
 0x26b   : > { %9844 = vst [vmem:[#allocation74_spill] sm:$0xff] %v8594_v21  ;;  %6315 = vpow2.f32 %v2523_v5  ;;  %v8596_v45 = vpop.permute.xlu1 %3664  ;;  %6143 = vmatpush3.bf16.msra.mxu0 %v6140_v25  ;;  %6171 = vmatpush3.bf16.msra.mxu1 %v6168_v63 }
 0x26c   : > { %v8600_v59 = vpop.permute.xlu0 %3674  ;;  %3819 = vperm.xlu1 %6207, %v8594_v21   ;;  %6145 = vmatprep.subr.bf16.mxu0 %v6144_v13  ;;  %6317 = vpow2.f32 %v2086_v50 }
 0x26d   : > { %v8598_v57 = vpop.eup %6303  ;;  %6173 = vmatprep.subr.bf16.mxu1 %v6172_v26 }
 0x26e   : > { %9845 = vst [vmem:[#allocation10_spill] sm:$0xff] %v8598_v57  ;;  %3834 = vperm.xlu0 %6208, %v8598_v57   ;;  %v8606_v12 = vpop.eup %6305 }
 0x26f   : > { %9847 = vst [vmem:[#allocation9_spill] sm:$0xff] %v8606_v12  ;;  %v8610_v25 = vpop.permute.xlu1 %3739  ;;  %6147 = vmatpush3.bf16.msra.mxu0 %v6144_v13  ;;  %6175 = vmatpush3.bf16.msra.mxu1 %v6172_v26  ;;  %v9851_v13 = vsub.f32 %v9850_v51, %v8174_v9  ;;  %v2509_v26 = vsub.f32 %v9852_v18, %v8564_v54  ;;  %v9855_v54 = vld [vmem:[#allocation16_spill] sm:$0xff]  ;;  %v9856_v51 = vld [vmem:[#allocation15_spill] sm:$0xff] }
 0x270   : > { %v8608_v5 = vpop.eup %6307  ;;  %v8616_v1 = vpop.permute.xlu0 %3754  ;;  %3899 = vperm.xlu1 %6207, %v8606_v12   ;;  %6177 = vmatprep.subr.bf16.mxu1 %v6176_v55  ;;  %v9854_v9 = vsub.f32 %v8182_v62, %v8200_v8 }
 0x271   : > { %9848 = vst [vmem:[#allocation76_spill] sm:$0xff] %v8608_v5  ;;  %v8612_v63 = vpop.eup %6309  ;;  %6319 = vpow2.f32 %v9851_v13 }
 0x272   : > { %v8619_v39 = vpop.eup %6311  ;;  %3914 = vperm.xlu0 %6208, %v8608_v5   ;;  %5677 = vmatprep.mubr.f32.mxu0 %v8612_v63  ;;  %6321 = vpow2.f32 %v2102_v10 }
 0x273   : > { %5678 = vmatmul.mubr.f32.gmra.mrb[38].mxu0 %v8619_v39  ;;  %v2223_v52 = vpop.permute.xlu1 %2222  ;;  %6179 = vmatpush3.bf16.msra.mxu1 %v6176_v55  ;;  %6323 = vpow2.f32 %v9854_v9  ;;  %v2525_v55 = vsub.f32 %v9855_v54, %v8584_v42  ;;  %v9859_v42 = vld [vmem:[#allocation80_spill] sm:$0xff] }
 0x274   : > { %v8629_v0 = vpop.eup %6313  ;;  %v2508_v50 = vsub.f32 %v9853_v40, %v2223_v52  ;;  %v2238_v57 = vpop.permute.xlu0 %2237  ;;  %2382 = vperm.xlu1 %6207, %v8269_v17   ;;  %v2088_v40 = vsub.f32 %v9859_v42, %v8177_v15  ;;  %v9862_v15 = vsub.f32 %v8208_v7, %v8224_v14  ;;  %v9863_v42 = vld [vmem:[#allocation18_spill] sm:$0xff]  ;;  %v9867_v7 = vld [vmem:[#allocation20_spill] sm:$0xff] }
 0x275   : > { %v8633_v5 = vpop.eup %6315  ;;  %5733 = vmatprep.mubr.f32.mxu1 %v8629_v0 }
 0x276   : > { %2397 = vperm.xlu0 %6208, %v8311_v35   ;;  %6325 = vpow2.f32 %v2508_v50  ;;  %5734 = vmatmul.mubr.f32.gmra.mrb[38].mxu1 %v8633_v5  ;;  %v8646_v62 = vpop.eup %6317 }
 0x277   : > { %6327 = vpow2.f32 %v2509_v26  ;;  %v2303_v10 = vpop.permute.xlu1 %2302  ;;  %9857 = vst [vmem:[#allocation12_spill] sm:$0xff] %v8646_v62 }
 0x278   : > { %v2524_v13 = vsub.f32 %v9856_v51, %v2303_v10  ;;  %v2318_v18 = vpop.permute.xlu0 %2317  ;;  %2462 = vperm.xlu1 %6207, %v8291_v61   ;;  %v2104_v10 = vsub.f32 %v8184_v53, %v8203_v2 }
 0x279   : > { %v2527_v14 = vsub.f32 %v9867_v7, %v2318_v18  ;;  %v9872_v18 = vld [vmem:[#allocation85_spill] sm:$0xff] }
 0x27a   : > { %2477 = vperm.xlu0 %6208, %v8334_v20   ;;  %6329 = vpow2.f32 %v2524_v13 }
 0x27b   : > { %6331 = vpow2.f32 %v2525_v55  ;;  %v8648_v8 = vpop.permute.xlu1 %3669  ;;  %v8650_v52 = vpop.eup %6319 }
 0x27c   : > { %9858 = vst [vmem:[#allocation11_spill] sm:$0xff] %v8650_v52  ;;  %v8652_v26 = vpop.permute.xlu0 %3684  ;;  %3829 = vperm.xlu1 %6207, %v8646_v62   ;;  %v8658_v50 = vpop.eup %6321  ;;  %6333 = vpow2.f32 %v2088_v40 }
 0x27d   : > { %9860 = vst [vmem:[#allocation75_spill] sm:$0xff] %v8658_v50  ;;  %v8660_v9 = vpop.eup %6323  ;;  %6335 = vpow2.f32 %v9862_v15 }
 0x27e   : > { %3844 = vperm.xlu0 %6208, %v8650_v52   ;;  %9861 = vst [vmem:[#allocation77_spill] sm:$0xff] %v8660_v9  ;;  %v2511_v52 = vsub.f32 %v9863_v42, %v2238_v57  ;;  %6337 = vpow2.f32 %v2104_v10 }
 0x27f   : > { %v8662_v54 = vpop.permute.xlu1 %3749 }
 0x280   : > { %v8664_v55 = vpop.eup %6325  ;;  %v8668_v51 = vpop.permute.xlu0 %3764  ;;  %3909 = vperm.xlu1 %6207, %v8658_v50   ;;  %v9864_v50 = vld [vmem:[#allocation17_spill] sm:$0xff] }
 0x281   : > { %v8671_v13 = vpop.eup %6327  ;;  %5680 = vmatprep.mubr.f32.mxu0 %v8664_v55 }
 0x282   : > { %3924 = vperm.xlu0 %6208, %v8660_v9   ;;  %5681 = vmatmul.mubr.f32.gmra.mrb[40].mxu0 %v8671_v13  ;;  %v9865_v9 = vld [vmem:[#allocation86_spill] sm:$0xff] }
 0x283   : > { %v2233_v53 = vpop.permute.xlu1 %2232  ;;  %v9866_v21 = vsub.f32 %v9865_v9, %v8244_v6 }
 0x284   : > { %v8680_v2 = vpop.eup %6329  ;;  %v2510_v62 = vsub.f32 %v9864_v50, %v2233_v53  ;;  %v2248_v12 = vpop.permute.xlu0 %2247  ;;  %2392 = vperm.xlu1 %6207, %v8314_v56   ;;  %v9868_v50 = vld [vmem:[#allocation19_spill] sm:$0xff]  ;;  %v9874_v53 = vld [vmem:[#allocation88_spill] sm:$0xff] }
 0x285   : > { %v8684_v40 = vpop.eup %6331  ;;  %6339 = vpow2.f32 %v9866_v21  ;;  %5736 = vmatprep.mubr.f32.mxu1 %v8680_v2  ;;  %v2093_v7 = vsub.f32 %v9874_v53, %v8266_v3  ;;  %v9878_v3 = vld [vmem:[#allocation22_spill] sm:$0xff] }
 0x286   : > { %2407 = vperm.xlu0 %6208, %v8359_v49   ;;  %6341 = vpow2.f32 %v2510_v62  ;;  %5737 = vmatmul.mubr.f32.gmra.mrb[40].mxu1 %v8684_v40  ;;  %v8696_v6 = vpop.eup %6333  ;;  %v2513_v53 = vsub.f32 %v9878_v3, %v2248_v12 }
 0x287   : > { %6343 = vpow2.f32 %v2511_v52  ;;  %v2313_v57 = vpop.permute.xlu1 %2312  ;;  %9869 = vst [vmem:[#allocation79_spill] sm:$0xff] %v8696_v6  ;;  %v8700_v62 = vpop.eup %6335  ;;  %v2090_v52 = vsub.f32 %v9872_v18, %v8227_v16  ;;  %v2109_v18 = vsub.f32 %v8274_v60, %v8288_v43  ;;  %v2095_v60 = vsub.f32 %v8296_v36, %v8311_v35  ;;  %v9880_v43 = vld [vmem:[#allocation24_spill] sm:$0xff] }
 0x288   : > { %v2526_v10 = vsub.f32 %v9868_v50, %v2313_v57  ;;  %v2328_v15 = vpop.permute.xlu0 %2327  ;;  %2472 = vperm.xlu1 %6207, %v8337_v34   ;;  %9870 = vst [vmem:[#allocation14_spill] sm:$0xff] %v8700_v62  ;;  %v8708_v42 = vpop.eup %6337  ;;  %v2111_v36 = vsub.f32 %v8319_v29, %v8334_v20  ;;  %v2097_v29 = vsub.f32 %v8342_v32, %v8359_v49 }
 0x289   : > { %9873 = vst [vmem:[#allocation16_spill] sm:$0xff] %v8708_v42  ;;  %v2529_v12 = vsub.f32 %v9880_v43, %v2328_v15 }
 0x28a   : > { %2487 = vperm.xlu0 %6208, %v8382_v37   ;;  %6345 = vpow2.f32 %v2526_v10  ;;  %v9876_v10 = vld [vmem:[#allocation87_spill] sm:$0xff] }
 0x28b   : > { %6347 = vpow2.f32 %v2527_v14  ;;  %v8698_v21 = vpop.permute.xlu1 %3679 }
 0x28c   : > { %v8702_v9 = vpop.permute.xlu0 %3694  ;;  %3839 = vperm.xlu1 %6207, %v8696_v6   ;;  %6349 = vpow2.f32 %v2090_v52 }
 0x28d   : > { %9871 = vst [vmem:[#allocation13_spill] sm:$0xff] %v8702_v9  ;;  %v2106_v9 = vsub.f32 %v9876_v10, %v8247_v23  ;;  %6351 = vpow2.f32 %v2093_v7 }
 0x28e   : > { %3854 = vperm.xlu0 %6208, %v8700_v62   ;;  %v9879_v62 = vld [vmem:[#allocation21_spill] sm:$0xff] }
 0x28f   : > { %v8712_v57 = vpop.eup %6339  ;;  %v8714_v14 = vpop.permute.xlu1 %3759  ;;  %6353 = vpow2.f32 %v2106_v9  ;;  %v9881_v9 = vld [vmem:[#allocation23_spill] sm:$0xff] }
 0x290   : > { %9875 = vst [vmem:[#allocation15_spill] sm:$0xff] %v8712_v57  ;;  %v8716_v50 = vpop.eup %6341  ;;  %v8720_v6 = vpop.permute.xlu0 %3774  ;;  %3919 = vperm.xlu1 %6207, %v8708_v42   ;;  %6355 = vpow2.f32 %v2109_v18 }
 0x291   : > { %9877 = vst [vmem:[#allocation80_spill] sm:$0xff] %v8720_v6  ;;  %v8723_v16 = vpop.eup %6343  ;;  %5683 = vmatprep.mubr.f32.mxu0 %v8716_v50 }
 0x292   : > { %3934 = vperm.xlu0 %6208, %v8712_v57   ;;  %5684 = vmatmul.mubr.f32.gmra.mrb[42].mxu0 %v8723_v16 }
 0x293   : > { %v2243_v23 = vpop.permute.xlu1 %2242 }
 0x294   : > { %v8731_v10 = vpop.eup %6345  ;;  %v2512_v42 = vsub.f32 %v9879_v62, %v2243_v23  ;;  %v2258_v6 = vpop.permute.xlu0 %2257  ;;  %2402 = vperm.xlu1 %6207, %v8362_v31  }
 0x295   : > { %v8735_v52 = vpop.eup %6347  ;;  %5739 = vmatprep.mubr.f32.mxu1 %v8731_v10 }
 0x296   : > { %2417 = vperm.xlu0 %6208, %v8405_v24   ;;  %6357 = vpow2.f32 %v2512_v42  ;;  %5740 = vmatmul.mubr.f32.gmra.mrb[42].mxu1 %v8735_v52  ;;  %v8748_v35 = vpop.eup %6349 }
 0x297   : > { %6359 = vpow2.f32 %v2513_v53  ;;  %v2323_v62 = vpop.permute.xlu1 %2322  ;;  %9882 = vst [vmem:[#allocation18_spill] sm:$0xff] %v8748_v35  ;;  %v8752_v18 = vpop.eup %6351  ;;  %v9884_v53 = vld [vmem:[#allocation89_spill] sm:$0xff] }
 0x298   : > { %v2528_v7 = vsub.f32 %v9881_v9, %v2323_v62  ;;  %v2338_v3 = vpop.permute.xlu0 %2337  ;;  %2482 = vperm.xlu1 %6207, %v8385_v33   ;;  %6361 = vpow2.f32 %v2095_v60  ;;  %9883 = vst [vmem:[#allocation17_spill] sm:$0xff] %v8752_v18  ;;  %v2092_v23 = vsub.f32 %v9884_v53, %v8269_v17  ;;  %v2108_v62 = vsub.f32 %v8276_v30, %v8291_v61  ;;  %v9888_v61 = vld [vmem:[#allocation26_spill] sm:$0xff] }
 0x299   : > { %v8760_v60 = vpop.eup %6353  ;;  %v2515_v30 = vsub.f32 %v9888_v61, %v2258_v6  ;;  %v2094_v53 = vsub.f32 %v8298_v38, %v8314_v56  ;;  %v9891_v38 = vld [vmem:[#allocation28_spill] sm:$0xff]  ;;  %v9893_v61 = vld [vmem:[#allocation27_spill] sm:$0xff] }
 0x29a   : > { %2497 = vperm.xlu0 %6208, %v8428_v28   ;;  %6363 = vpow2.f32 %v2528_v7  ;;  %9885 = vst [vmem:[#allocation86_spill] sm:$0xff] %v8760_v60  ;;  %v8764_v20 = vpop.eup %6355  ;;  %v2113_v7 = vsub.f32 %v8367_v4, %v8382_v37  ;;  %v2531_v56 = vsub.f32 %v9891_v38, %v2338_v3 }
 0x29b   : > { %6365 = vpow2.f32 %v2529_v12  ;;  %v8750_v42 = vpop.permute.xlu1 %3689  ;;  %9886 = vst [vmem:[#allocation20_spill] sm:$0xff] %v8764_v20 }
 0x29c   : > { %v8754_v15 = vpop.permute.xlu0 %3704  ;;  %3849 = vperm.xlu1 %6207, %v8748_v35   ;;  %6367 = vpow2.f32 %v2111_v36 }
 0x29d   : > { %6369 = vpow2.f32 %v2092_v23  ;;  %v9889_v23 = vld [vmem:[#allocation25_spill] sm:$0xff] }
 0x29e   : > { %3864 = vperm.xlu0 %6208, %v8752_v18   ;;  %6371 = vpow2.f32 %v2097_v29 }
 0x29f   : > { %v8766_v43 = vpop.permute.xlu1 %3769  ;;  %6373 = vpow2.f32 %v2108_v62 }
 0x2a0   : > { %v8768_v12 = vpop.eup %6357  ;;  %v8772_v9 = vpop.permute.xlu0 %3784  ;;  %3929 = vperm.xlu1 %6207, %v8760_v60   ;;  %6375 = vpow2.f32 %v2113_v7 }
 0x2a1   : > { %v8775_v17 = vpop.eup %6359  ;;  %5686 = vmatprep.mubr.f32.mxu0 %v8768_v12 }
 0x2a2   : > { %3944 = vperm.xlu0 %6208, %v8764_v20   ;;  %5687 = vmatmul.mubr.f32.gmra.mrb[44].mxu0 %v8775_v17  ;;  %v8782_v49 = vpop.eup %6361  ;;  %v2099_v20 = vsub.f32 %v8390_v58, %v8405_v24  ;;  %v9895_v24 = vld [vmem:[#allocation95_spill] sm:$0xff] }
 0x2a3   : > { %9887 = vst [vmem:[#allocation19_spill] sm:$0xff] %v8782_v49  ;;  %v2253_v32 = vpop.permute.xlu1 %2252  ;;  %v2110_v58 = vsub.f32 %v9895_v24, %v8337_v34  ;;  %v9900_v34 = vld [vmem:[#allocation97_spill] sm:$0xff] }
 0x2a4   : > { %v8785_v36 = vpop.eup %6363  ;;  %v2514_v37 = vsub.f32 %v9889_v23, %v2253_v32  ;;  %v8790_v4 = vpop.permute.xlu0 %3714  ;;  %2412 = vperm.xlu1 %6207, %v8408_v19  }
 0x2a5   : > { %9890 = vst [vmem:[#allocation85_spill] sm:$0xff] %v8790_v4  ;;  %v8793_v29 = vpop.eup %6365  ;;  %5742 = vmatprep.mubr.f32.mxu1 %v8785_v36 }
 0x2a6   : > { %3874 = vperm.xlu0 %6208, %v8782_v49   ;;  %6377 = vpow2.f32 %v2514_v37  ;;  %5743 = vmatmul.mubr.f32.gmra.mrb[44].mxu1 %v8793_v29  ;;  %v8801_v62 = vpop.eup %6367 }
 0x2a7   : > { %6379 = vpow2.f32 %v2515_v30  ;;  %v2333_v6 = vpop.permute.xlu1 %2332  ;;  %9892 = vst [vmem:[#allocation88_spill] sm:$0xff] %v8801_v62  ;;  %v9896_v30 = vld [vmem:[#allocation106_spill] sm:$0xff]  ;;  %v8812_v3 = vpop.eup %6369 }
 0x2a8   : > { %6381 = vpow2.f32 %v2094_v53  ;;  %v2530_v32 = vsub.f32 %v9893_v61, %v2333_v6  ;;  %v8804_v7 = vpop.permute.xlu0 %3794  ;;  %2492 = vperm.xlu1 %6207, %v8431_v22   ;;  %v2115_v23 = vsub.f32 %v9896_v30, %v8428_v28  ;;  %9897 = vst [vmem:[#allocation22_spill] sm:$0xff] %v8812_v3  ;;  %v8816_v37 = vpop.eup %6371 }
 0x2a9   : > { %9894 = vst [vmem:[#allocation87_spill] sm:$0xff] %v8804_v7  ;;  %6383 = vpow2.f32 %v2099_v20  ;;  %9898 = vst [vmem:[#allocation21_spill] sm:$0xff] %v8816_v37  ;;  %v2096_v20 = vsub.f32 %v9900_v34, %v8362_v31  ;;  %v8824_v6 = vpop.eup %6373  ;;  %v9905_v31 = vld [vmem:[#allocation100_spill] sm:$0xff] }
 0x2aa   : > { %3954 = vperm.xlu0 %6208, %v8801_v62   ;;  %6385 = vpow2.f32 %v2530_v32  ;;  %9901 = vst [vmem:[#allocation23_spill] sm:$0xff] %v8824_v6  ;;  %v8826_v28 = vpop.eup %6375 }
 0x2ab   : > { %6387 = vpow2.f32 %v2531_v56  ;;  %v8814_v53 = vpop.permute.xlu1 %3699  ;;  %9902 = vst [vmem:[#allocation89_spill] sm:$0xff] %v8826_v28 }
 0x2ac   : > { %v8818_v38 = vpop.permute.xlu0 %3724  ;;  %3859 = vperm.xlu1 %6207, %v8812_v3   ;;  %6389 = vpow2.f32 %v2110_v58  ;;  %v2112_v58 = vsub.f32 %v9905_v31, %v8385_v33  ;;  %v9910_v33 = vld [vmem:[#allocation103_spill] sm:$0xff] }
 0x2ad   : > { %9899 = vst [vmem:[#allocation24_spill] sm:$0xff] %v8818_v38  ;;  %6391 = vpow2.f32 %v2115_v23  ;;  %v2098_v31 = vsub.f32 %v9910_v33, %v8408_v19  ;;  %v9927_v38 = vld [vmem:[#allocation31_spill] sm:$0xff] }
 0x2ae   : > { %3884 = vperm.xlu0 %6208, %v8816_v37   ;;  %6393 = vpow2.f32 %v2096_v20 }
 0x2af   : > { %v8828_v56 = vpop.permute.xlu1 %3779  ;;  %6395 = vpow2.f32 %v2112_v58  ;;  %v9915_v58 = vld [vmem:[#allocation107_spill] sm:$0xff] }
 0x2b0   : > { %9903 = vst [vmem:[#allocation26_spill] sm:$0xff] %v8828_v56  ;;  %v8830_v61 = vpop.eup %6377  ;;  %v8832_v32 = vpop.permute.xlu0 %3804  ;;  %3939 = vperm.xlu1 %6207, %v8824_v6   ;;  %6397 = vpow2.f32 %v2098_v31  ;;  %v2114_v19 = vsub.f32 %v9915_v58, %v8431_v22 }
 0x2b1   : > { %9904 = vst [vmem:[#allocation25_spill] sm:$0xff] %v8832_v32  ;;  %v8835_v24 = vpop.eup %6379  ;;  %5689 = vmatprep.mubr.f32.mxu0 %v8830_v61  ;;  %v9926_v32 = vld [vmem:[#allocation32_spill] sm:$0xff] }
 0x2b2   : > { %3964 = vperm.xlu0 %6208, %v8826_v28   ;;  %v8841_v30 = vpop.eup %6381  ;;  %5690 = vmatmul.mubr.f32.gmra.mrb[46].mxu0 %v8835_v24  ;;  %6399 = vpow2.f32 %v2114_v19  ;;  %v9924_v19 = vld [vmem:[#allocation29_spill] sm:$0xff] }
 0x2b3   : > { %9906 = vst [vmem:[#allocation28_spill] sm:$0xff] %v8841_v30  ;;  %v8844_v23 = vpop.eup %6383  ;;  %v8846_v34 = vpop.permute.xlu1 %3709 }
 0x2b4   : > { %9907 = vst [vmem:[#allocation27_spill] sm:$0xff] %v8844_v23  ;;  %9908 = vst [vmem:[#allocation95_spill] sm:$0xff] %v8846_v34  ;;  %v8848_v37 = vpop.eup %6385  ;;  %v8850_v62 = vpop.permute.xlu0 %3734  ;;  %3869 = vperm.xlu1 %6207, %v8841_v30  }
 0x2b5   : > { %9909 = vst [vmem:[#allocation106_spill] sm:$0xff] %v8850_v62  ;;  %v8853_v20 = vpop.eup %6387  ;;  %5745 = vmatprep.mubr.f32.mxu1 %v8848_v37  ;;  %v9925_v62 = vld [vmem:[#allocation30_spill] sm:$0xff] }
 0x2b6   : > { %3894 = vperm.xlu0 %6208, %v8844_v23   ;;  %5746 = vmatmul.mubr.f32.gmra.mrb[46].mxu1 %v8853_v20  ;;  %v8860_v28 = vpop.eup %6389 }
 0x2b7   : > { %9911 = vst [vmem:[#allocation97_spill] sm:$0xff] %v8860_v28  ;;  %v8862_v49 = vpop.permute.xlu1 %3789  ;;  %v8864_v18 = vpop.eup %6391 }
 0x2b8   : > { %9912 = vst [vmem:[#allocation100_spill] sm:$0xff] %v8862_v49  ;;  %9913 = vst [vmem:[#allocation103_spill] sm:$0xff] %v8864_v18  ;;  %v8866_v57 = vpop.permute.xlu0 %3814  ;;  %3949 = vperm.xlu1 %6207, %v8860_v28   ;;  %v8872_v33 = vpop.eup %6393 }
 0x2b9   : > { %9914 = vst [vmem:[#allocation115_spill] sm:$0xff] %v8866_v57  ;;  %9916 = vst [vmem:[#allocation107_spill] sm:$0xff] %v8872_v33  ;;  %v8877_v6 = vpop.eup %6395 }
 0x2ba   : > { %3974 = vperm.xlu0 %6208, %v8864_v18   ;;  %9918 = vst [vmem:[#allocation117_spill] sm:$0xff] %v8877_v6  ;;  %v8882_v31 = vpop.eup %6397 }
 0x2bb   : > { %v8874_v23 = vpop.permute.xlu1 %3719  ;;  %9920 = vst [vmem:[#allocation119_spill] sm:$0xff] %v8882_v31 }
 0x2bc   : > { %9917 = vst [vmem:[#allocation116_spill] sm:$0xff] %v8874_v23  ;;  %v2348_v30 = vpop.permute.xlu0 %2347  ;;  %3879 = vperm.xlu1 %6207, %v8872_v33   ;;  %v8887_v18 = vpop.eup %6399 }
 0x2bd   : > { %9922 = vst [vmem:[#allocation121_spill] sm:$0xff] %v8887_v18  ;;  %v2533_v35 = vsub.f32 %v9924_v19, %v2348_v30 }
 0x2bf   : > { %v8879_v3 = vpop.permute.xlu1 %3799 }
 0x2c0   : > { %9919 = vst [vmem:[#allocation118_spill] sm:$0xff] %v8879_v3  ;;  %v2428_v60 = vpop.permute.xlu0 %2427  ;;  %3959 = vperm.xlu1 %6207, %v8877_v6  }
 0x2c3   : > { %v8884_v22 = vpop.permute.xlu1 %3729 }
 0x2c4   : > { %9921 = vst [vmem:[#allocation120_spill] sm:$0xff] %v8884_v22  ;;  %v2358_v58 = vpop.permute.xlu0 %2357  ;;  %3889 = vperm.xlu1 %6207, %v8882_v31   ;;  %v2549_v22 = vsub.f32 %v9926_v32, %v2428_v60  ;;  %v9931_v60 = vld [vmem:[#allocation35_spill] sm:$0xff] }
 0x2c7   : > { %v8889_v28 = vpop.permute.xlu1 %3809 }
 0x2c8   : > { %9923 = vst [vmem:[#allocation122_spill] sm:$0xff] %v8889_v28  ;;  %v2438_v33 = vpop.permute.xlu0 %2437  ;;  %3969 = vperm.xlu1 %6207, %v8887_v18   ;;  %v9928_v28 = vld [vmem:[#allocation34_spill] sm:$0xff]  ;;  %v9929_v18 = vld [vmem:[#allocation33_spill] sm:$0xff] }
 0x2c9   : > { %v2535_v7 = vsub.f32 %v9928_v28, %v2358_v58 }
 0x2cb   : > { %v2343_v57 = vpop.permute.xlu1 %2342 }
 0x2cc   : > { %v2532_v3 = vsub.f32 %v9925_v62, %v2343_v57  ;;  %v2368_v6 = vpop.permute.xlu0 %2367  ;;  %v9930_v57 = vld [vmem:[#allocation36_spill] sm:$0xff] }
 0x2cd   : > { %v2551_v62 = vsub.f32 %v9930_v57, %v2438_v33  ;;  %v9936_v57 = vld [vmem:[#allocation39_spill] sm:$0xff] }
 0x2ce   : > { %6401 = vpow2.f32 %v2532_v3 }
 0x2cf   : > { %6403 = vpow2.f32 %v2533_v35  ;;  %v2423_v23 = vpop.permute.xlu1 %2422 }
 0x2d0   : > { %v2548_v31 = vsub.f32 %v9927_v38, %v2423_v23  ;;  %v2448_v49 = vpop.permute.xlu0 %2447 }
 0x2d2   : > { %6405 = vpow2.f32 %v2548_v31 }
 0x2d3   : > { %6407 = vpow2.f32 %v2549_v22  ;;  %v2353_v34 = vpop.permute.xlu1 %2352  ;;  %v9935_v22 = vld [vmem:[#allocation40_spill] sm:$0xff] }
 0x2d4   : > { %v2534_v4 = vsub.f32 %v9929_v18, %v2353_v34  ;;  %v2378_v30 = vpop.permute.xlu0 %2377  ;;  %v9932_v18 = vld [vmem:[#allocation38_spill] sm:$0xff]  ;;  %v9933_v34 = vld [vmem:[#allocation37_spill] sm:$0xff]  ;;  %v2553_v58 = vsub.f32 %v9935_v22, %v2448_v49  ;;  %v9941_v22 = vld [vmem:[#allocation44_spill] sm:$0xff] }
 0x2d6   : > { %6409 = vpow2.f32 %v2534_v4  ;;  %v2537_v4 = vsub.f32 %v9932_v18, %v2368_v6 }
 0x2d7   : > { %6411 = vpow2.f32 %v2535_v7  ;;  %v2433_v3 = vpop.permute.xlu1 %2432 }
 0x2d8   : > { %v8899_v35 = vpop.eup %6401  ;;  %v2550_v32 = vsub.f32 %v9931_v60, %v2433_v3  ;;  %v2458_v38 = vpop.permute.xlu0 %2457  ;;  %v9938_v60 = vld [vmem:[#allocation42_spill] sm:$0xff] }
 0x2d9   : > { %2630 = vadd.xlane.f32.xlu0 %v8477_v48  ;;  %v8903_v23 = vpop.eup %6403  ;;  %5780 = vmatprep.mubr.f32.mxu0 %v8899_v35 }
 0x2da   : > { %6413 = vpow2.f32 %v2550_v32  ;;  %5781 = vmatmul.mubr.f32.vlgmr.msra.gmra.mrb[48].mxu0 %v8903_v23  ;;  %v2539_v32 = vsub.f32 %v9938_v60, %v2378_v30 }
 0x2db   : > { %6415 = vpow2.f32 %v2551_v62  ;;  %v2363_v7 = vpop.permute.xlu1 %2362 }
 0x2dc   : > { %v8908_v28 = vpop.eup %6405  ;;  %v2536_v33 = vsub.f32 %v9933_v34, %v2363_v7  ;;  %v8912_v31 = vpop.permute.xlu0 %3824  ;;  %v9940_v34 = vld [vmem:[#allocation78_spill] sm:$0xff] }
 0x2dd   : > { %2660 = vadd.xlane.f32.xlu0 %v8484_v11  ;;  %9934 = vst [vmem:[#allocation29_spill] sm:$0xff] %v8912_v31  ;;  %v8914_v48 = vpop.eup %6407  ;;  %5836 = vmatprep.mubr.f32.mxu1 %v8908_v28  ;;  %v9953_v31 = vld [vmem:[#allocation47_spill] sm:$0xff] }
 0x2de   : > { %6417 = vpow2.f32 %v2536_v33  ;;  %5837 = vmatmul.mubr.f32.vlgmr.msra.gmra.mrb[48].mxu1 %v8914_v48 }
 0x2df   : > { %6419 = vpow2.f32 %v2537_v4  ;;  %v2443_v6 = vpop.permute.xlu1 %2442  ;;  %v9939_v4 = vld [vmem:[#allocation41_spill] sm:$0xff] }
 0x2e0   : > { %v8919_v19 = vpop.eup %6409  ;;  %v2552_v62 = vsub.f32 %v9936_v57, %v2443_v6  ;;  %v8923_v11 = vpop.permute.xlu0 %3904  ;;  %v9942_v57 = vld [vmem:[#allocation43_spill] sm:$0xff] }
 0x2e1   : > { %2632 = vadd.xlane.f32.xlu0 %v8510_v27  ;;  %9937 = vst [vmem:[#allocation30_spill] sm:$0xff] %v8923_v11  ;;  %v8925_v3 = vpop.eup %6411  ;;  %5783 = vmatprep.mubr.f32.mxu0 %v8919_v19 }
 0x2e2   : > { %6421 = vpow2.f32 %v2552_v62  ;;  %5784 = vmatmul.mubr.f32.gmra.mrb[50].mxu0 %v8925_v3 }
 0x2e3   : > { %6423 = vpow2.f32 %v2553_v58  ;;  %v2373_v49 = vpop.permute.xlu1 %2372  ;;  %v2555_v58 = vsub.f32 %v9941_v22, %v2458_v38 }
 0x2e4   : > { %v8930_v18 = vpop.eup %6413  ;;  %v2538_v7 = vsub.f32 %v9939_v4, %v2373_v49  ;;  %v2388_v27 = vpop.permute.xlu0 %2387 }
 0x2e5   : > { %2664 = vadd.xlane.f32.xlu0 %v9940_v34  ;;  %v8934_v33 = vpop.eup %6415  ;;  %5839 = vmatprep.mubr.f32.mxu1 %v8930_v18 }
 0x2e6   : > { %6425 = vpow2.f32 %v2538_v7  ;;  %5840 = vmatmul.mubr.f32.gmra.mrb[50].mxu1 %v8934_v33  ;;  %v9945_v7 = vld [vmem:[#allocation67_spill] sm:$0xff] }
 0x2e7   : > { %6427 = vpow2.f32 %v2539_v32  ;;  %v2453_v6 = vpop.permute.xlu1 %2452 }
 0x2e8   : > { %v8939_v30 = vpop.eup %6417  ;;  %v2554_v62 = vsub.f32 %v9942_v57, %v2453_v6  ;;  %v2468_v60 = vpop.permute.xlu0 %2467  ;;  %v9948_v6 = vld [vmem:[#allocation114_spill] sm:$0xff] }
 0x2e9   : > { %2636 = vadd.xlane.f32.xlu0 %v8561_v41  ;;  %v8943_v49 = vpop.eup %6419  ;;  %5786 = vmatprep.mubr.f32.mxu0 %v8939_v30  ;;  %v9949_v57 = vld [vmem:[#allocation46_spill] sm:$0xff] }
 0x2ea   : > { %6429 = vpow2.f32 %v2554_v62  ;;  %5787 = vmatmul.mubr.f32.gmra.mrb[52].mxu0 %v8943_v49  ;;  %v2541_v62 = vsub.f32 %v9949_v57, %v2388_v27 }
 0x2eb   : > { %6431 = vpow2.f32 %v2555_v58  ;;  %v8947_v4 = vpop.permute.xlu1 %3819 }
 0x2ec   : > { %9943 = vst [vmem:[#allocation32_spill] sm:$0xff] %v8947_v4  ;;  %v8949_v32 = vpop.eup %6421  ;;  %2662 = vadd.xlane.f32.xlu1 %v9945_v7  ;;  %v9951_v4 = vld [vmem:[#allocation6_spill] sm:$0xff] }
 0x2ed   : > { %2668 = vadd.xlane.f32.xlu0 %v8581_v47  ;;  %v8952_v38 = vpop.permute.xlu0 %3834  ;;  %v8955_v41 = vpop.eup %6423  ;;  %5842 = vmatprep.mubr.f32.mxu1 %v8949_v32 }
 0x2ee   : > { %9944 = vst [vmem:[#allocation31_spill] sm:$0xff] %v8952_v38  ;;  %5843 = vmatmul.mubr.f32.gmra.mrb[52].mxu1 %v8955_v41 }
 0x2ef   : > { %v8959_v34 = vpop.permute.xlu1 %3899 }
 0x2f0   : > { %9946 = vst [vmem:[#allocation34_spill] sm:$0xff] %v8959_v34  ;;  %v8961_v22 = vpop.eup %6425  ;;  %2628 = vadd.xlane.f32.xlu1 %v9948_v6  ;;  %v9950_v34 = vld [vmem:[#allocation45_spill] sm:$0xff]  ;;  %v9952_v6 = vld [vmem:[#allocation48_spill] sm:$0xff] }
 0x2f1   : > { %2640 = vadd.xlane.f32.xlu0 %v8612_v63  ;;  %v8964_v58 = vpop.permute.xlu0 %3914  ;;  %v8967_v47 = vpop.eup %6427  ;;  %5789 = vmatprep.mubr.f32.mxu0 %v8961_v22  ;;  %v2557_v27 = vsub.f32 %v9952_v6, %v2468_v60  ;;  %v9957_v6 = vld [vmem:[#allocation49_spill] sm:$0xff] }
 0x2f2   : > { %9947 = vst [vmem:[#allocation33_spill] sm:$0xff] %v8964_v58  ;;  %5790 = vmatmul.mubr.f32.gmra.mrb[54].mxu0 %v8967_v47 }
 0x2f3   : > { %v2383_v7 = vpop.permute.xlu1 %2382 }
 0x2f4   : > { %v8972_v38 = vpop.eup %6429  ;;  %v2540_v11 = vsub.f32 %v9950_v34, %v2383_v7  ;;  %2634 = vadd.xlane.f32.xlu1 %v9951_v4 }
 0x2f5   : > { %2672 = vadd.xlane.f32.xlu0 %v8629_v0  ;;  %v2398_v63 = vpop.permute.xlu0 %2397  ;;  %v8977_v58 = vpop.eup %6431  ;;  %5845 = vmatprep.mubr.f32.mxu1 %v8972_v38  ;;  %v9954_v0 = vld [vmem:[#allocation7_spill] sm:$0xff] }
 0x2f6   : > { %6433 = vpow2.f32 %v2540_v11  ;;  %5846 = vmatmul.mubr.f32.gmra.mrb[54].mxu1 %v8977_v58 }
 0x2f7   : > { %6435 = vpow2.f32 %v2541_v62  ;;  %v2463_v57 = vpop.permute.xlu1 %2462 }
 0x2f8   : > { %v2556_v56 = vsub.f32 %v9953_v31, %v2463_v57  ;;  %2666 = vadd.xlane.f32.xlu1 %v9954_v0  ;;  %v9958_v57 = vld [vmem:[#allocation52_spill] sm:$0xff] }
 0x2f9   : > { %2644 = vadd.xlane.f32.xlu0 %v8664_v55  ;;  %v2478_v34 = vpop.permute.xlu0 %2477 }
 0x2fa   : > { %6437 = vpow2.f32 %v2556_v56 }
 0x2fb   : > { %6439 = vpow2.f32 %v2557_v27  ;;  %v8985_v4 = vpop.permute.xlu1 %3829 }
 0x2fc   : > { %2638 = vadd.xlane.f32.xlu1 %v8567_v46 }
 0x2fd   : > { %2676 = vadd.xlane.f32.xlu0 %v8680_v2  ;;  %v8988_v11 = vpop.permute.xlu0 %3844  ;;  %v9956_v2 = vld [vmem:[#allocation50_spill] sm:$0xff] }
 0x2fe   : > { %v2543_v31 = vsub.f32 %v9956_v2, %v2398_v63  ;;  %v2559_v63 = vsub.f32 %v9958_v57, %v2478_v34  ;;  %v9959_v2 = vld [vmem:[#allocation51_spill] sm:$0xff]  ;;  %v9961_v34 = vld [vmem:[#allocation54_spill] sm:$0xff] }
 0x2ff   : > { %v8991_v62 = vpop.permute.xlu1 %3909 }
 0x300   : > { %v8993_v60 = vpop.eup %6433  ;;  %2670 = vadd.xlane.f32.xlu1 %v8587_v44 }
 0x301   : > { %2648 = vadd.xlane.f32.xlu0 %v8716_v50  ;;  %v8996_v55 = vpop.permute.xlu0 %3924  ;;  %v8999_v56 = vpop.eup %6435  ;;  %5792 = vmatprep.mubr.f32.mxu0 %v8993_v60 }
 0x302   : > { %9955 = vst [vmem:[#allocation36_spill] sm:$0xff] %v8996_v55  ;;  %5793 = vmatmul.mubr.f32.gmra.mrb[56].mxu0 %v8999_v56 }
 0x303   : > { %v2393_v7 = vpop.permute.xlu1 %2392 }
 0x304   : > { %v9004_v46 = vpop.eup %6437  ;;  %v2542_v27 = vsub.f32 %v9957_v6, %v2393_v7  ;;  %2642 = vadd.xlane.f32.xlu1 %v8619_v39  ;;  %v9962_v6 = vld [vmem:[#allocation53_spill] sm:$0xff] }
 0x305   : > { %2680 = vadd.xlane.f32.xlu0 %v8731_v10  ;;  %v9009_v50 = vpop.eup %6439  ;;  %5848 = vmatprep.mubr.f32.mxu1 %v9004_v46  ;;  %v2408_v44 = vpop.permute.xlu0 %2407 }
 0x306   : > { %6441 = vpow2.f32 %v2542_v27  ;;  %5849 = vmatmul.mubr.f32.gmra.mrb[56].mxu1 %v9009_v50 }
 0x307   : > { %6443 = vpow2.f32 %v2543_v31  ;;  %v2473_v0 = vpop.permute.xlu1 %2472 }
 0x308   : > { %v2558_v55 = vsub.f32 %v9959_v2, %v2473_v0  ;;  %2674 = vadd.xlane.f32.xlu1 %v8633_v5  ;;  %v9965_v0 = vld [vmem:[#allocation55_spill] sm:$0xff] }
 0x309   : > { %2652 = vadd.xlane.f32.xlu0 %v8768_v12  ;;  %v2488_v10 = vpop.permute.xlu0 %2487 }
 0x30a   : > { %6445 = vpow2.f32 %v2558_v55 }
 0x30b   : > { %6447 = vpow2.f32 %v2559_v63  ;;  %v9017_v39 = vpop.permute.xlu1 %3839 }
 0x30c   : > { %2646 = vadd.xlane.f32.xlu1 %v8671_v13 }
 0x30d   : > { %2684 = vadd.xlane.f32.xlu0 %v8785_v36  ;;  %v9030_v5 = vpop.permute.xlu0 %3854  ;;  %v2545_v36 = vsub.f32 %v9961_v34, %v2408_v44 }
 0x30e   : > { %9960 = vst [vmem:[#allocation35_spill] sm:$0xff] %v9030_v5 }
 0x30f   : > { %v9021_v7 = vpop.permute.xlu1 %3919 }
 0x310   : > { %v9023_v31 = vpop.eup %6441  ;;  %2678 = vadd.xlane.f32.xlu1 %v8684_v40 }
 0x311   : > { %2656 = vadd.xlane.f32.xlu0 %v8830_v61  ;;  %v9027_v12 = vpop.eup %6443  ;;  %5795 = vmatprep.mubr.f32.mxu0 %v9023_v31  ;;  %v9963_v61 = vld [vmem:[#allocation56_spill] sm:$0xff]  ;;  %v9044_v63 = vpop.permute.xlu0 %3934 }
 0x312   : > { %5796 = vmatmul.mubr.f32.gmra.mrb[58].mxu0 %v9027_v12  ;;  %v2561_v57 = vsub.f32 %v9963_v61, %v2488_v10  ;;  %9964 = vst [vmem:[#allocation38_spill] sm:$0xff] %v9044_v63 }
 0x313   : > { %v2403_v55 = vpop.permute.xlu1 %2402 }
 0x314   : > { %v9034_v13 = vpop.eup %6445  ;;  %v2544_v27 = vsub.f32 %v9962_v6, %v2403_v55  ;;  %2650 = vadd.xlane.f32.xlu1 %v8723_v16  ;;  %v3610_v55 = vld [vmem:[#allocation4 + $0x88] sm:$0xff] }
 0x315   : > { %2688 = vadd.xlane.f32.xlu0 %v8848_v37  ;;  %v9039_v40 = vpop.eup %6447  ;;  %5851 = vmatprep.mubr.f32.mxu1 %v9034_v13  ;;  %v2418_v37 = vpop.permute.xlu0 %2417  ;;  %v9968_v6 = vld [vmem:[#allocation58_spill] sm:$0xff] }
 0x316   : > { %6449 = vpow2.f32 %v2544_v27  ;;  %5852 = vmatmul.mubr.f32.gmra.mrb[58].mxu1 %v9039_v40  ;;  %v2547_v27 = vsub.f32 %v9968_v6, %v2418_v37 }
 0x317   : > { %6451 = vpow2.f32 %v2545_v36  ;;  %v2483_v44 = vpop.permute.xlu1 %2482  ;;  %v3594_v36 = vld [vmem:[#allocation4 + $0x8] sm:$0xff] }
 0x318   : > { %v2560_v2 = vsub.f32 %v9965_v0, %v2483_v44  ;;  %2682 = vadd.xlane.f32.xlu1 %v8735_v52  ;;  %v3593_v52 = vld [vmem:[#allocation4] sm:$0xff]  ;;  %v9969_v44 = vld [vmem:[#allocation71_spill] sm:$0xff] }
 0x319   : > { %2692 = vadd.xlane.f32.xlu0 %v8899_v35  ;;  %v2498_v0 = vpop.permute.xlu0 %2497 }
 0x31a   : > { %6453 = vpow2.f32 %v2560_v2 }
 0x31b   : > { %6455 = vpow2.f32 %v2561_v57  ;;  %v9049_v16 = vpop.permute.xlu1 %3849 }
 0x31c   : > { %9966 = vst [vmem:[#allocation37_spill] sm:$0xff] %v9049_v16  ;;  %2654 = vadd.xlane.f32.xlu1 %v8775_v17  ;;  %v3978_v17 = vmul.f32 %v8596_v45, %v3594_v36  ;;  %v9971_v16 = vld [vmem:[#allocation8_spill] sm:$0xff] }
 0x31d   : > { %2724 = vadd.xlane.f32.xlu0 %v8908_v28  ;;  %v3609_v28 = vld [vmem:[#allocation4 + $0x80] sm:$0xff]  ;;  %v3994_v45 = vmul.f32 %v9971_v16, %v3610_v55 }
 0x31e   : > { %v3993_v37 = vmul.f32 %v8610_v25, %v3609_v28  ;;  %v3596_v25 = vld [vmem:[#allocation4 + $0x18] sm:$0xff] }
 0x31f   : > { %v9053_v34 = vpop.permute.xlu1 %3929  ;;  %v3612_v28 = vld [vmem:[#allocation4 + $0x98] sm:$0xff] }
 0x320   : > { %9967 = vst [vmem:[#allocation40_spill] sm:$0xff] %v9053_v34  ;;  %v9055_v10 = vpop.eup %6449  ;;  %2686 = vadd.xlane.f32.xlu1 %v8793_v29  ;;  %v9970_v29 = vld [vmem:[#allocation57_spill] sm:$0xff] }
 0x321   : > { %2696 = vadd.xlane.f32.xlu0 %v8919_v19  ;;  %v9059_v35 = vpop.eup %6451  ;;  %5798 = vmatprep.mubr.f32.mxu0 %v9055_v10  ;;  %v3977_v19 = vmul.f32 %v9969_v44, %v3593_v52 }
 0x322   : > { %5799 = vmatmul.mubr.f32.gmra.mrb[60].mxu0 %v9059_v35 }
 0x323   : > { %v2413_v61 = vpop.permute.xlu1 %2412 }
 0x324   : > { %v9065_v57 = vpop.eup %6453  ;;  %v2546_v2 = vsub.f32 %v9970_v29, %v2413_v61  ;;  %v5670_v34 = vpop.f32.mrb[32].mxu0  ;;  %2658 = vadd.xlane.f32.xlu1 %v8835_v24 }
 0x325   : > { %2728 = vadd.xlane.f32.xlu0 %v8930_v18  ;;  %v9071_v63 = vpop.eup %6455  ;;  %v4042_v36 = vadd.f32 %v5670_v34, %v3978_v17  ;;  %v3079_v5 = vpop.f32.mrb[33].mxu0  ;;  %5854 = vmatprep.mubr.f32.mxu1 %v9065_v57  ;;  %v9972_v18 = vld [vmem:[#allocation60_spill] sm:$0xff]  ;;  %v9973_v34 = vld [vmem:[#allocation59_spill] sm:$0xff]  ;;  %v3980_v17 = vmul.f32 %v8600_v59, %v3596_v25 }
 0x326   : > { %6457 = vpow2.f32 %v2546_v2  ;;  %v4041_v52 = vadd.f32 %v3977_v19, %v3079_v5  ;;  %v5726_v6 = vpop.f32.mrb[32].mxu1  ;;  %5855 = vmatmul.mubr.f32.gmra.mrb[60].mxu1 %v9071_v63  ;;  %v2563_v61 = vsub.f32 %v9972_v18, %v2498_v0  ;;  %v3595_v5 = vld [vmem:[#allocation4 + $0x10] sm:$0xff] }
 0x327   : > { %6459 = vpow2.f32 %v2547_v27  ;;  %4106 = vst.msk [vmem:[#allocation4 + $0x8] sm:$0xff] %vm440_vm0, %v4042_v36  ;;  %v4058_v24 = vadd.f32 %v5726_v6, %v3994_v45  ;;  %v3224_v44 = vpop.f32.mrb[33].mxu1  ;;  %v2493_v29 = vpop.permute.xlu1 %2492  ;;  %v3979_v27 = vmul.f32 %v8648_v8, %v3595_v5  ;;  %v3611_v19 = vld [vmem:[#allocation4 + $0x90] sm:$0xff]  ;;  %v3996_v36 = vmul.f32 %v8616_v1, %v3612_v28 }
 0x328   : > { %4105 = vst.msk [vmem:[#allocation4] sm:$0xff] %vm440_vm0, %v4041_v52  ;;  %v4057_v16 = vadd.f32 %v3993_v37, %v3224_v44  ;;  %v2562_v55 = vsub.f32 %v9973_v34, %v2493_v29  ;;  %2690 = vadd.xlane.f32.xlu1 %v8853_v20  ;;  %v9111_v6 = vpop.permute.xlu0 %3864 }
 0x329   : > { %2700 = vadd.xlane.f32.xlu0 %v8939_v30  ;;  %4122 = vst.msk [vmem:[#allocation4 + $0x88] sm:$0xff] %vm440_vm0, %v4058_v24  ;;  %v3613_v24 = vld [vmem:[#allocation4 + $0xa0] sm:$0xff] }
 0x32a   : > { %4121 = vst.msk [vmem:[#allocation4 + $0x80] sm:$0xff] %vm440_vm0, %v4057_v16  ;;  %6461 = vpow2.f32 %v2562_v55 }
 0x32b   : > { %6463 = vpow2.f32 %v2563_v61 }
 0x32c   : > { %2694 = vadd.xlane.f32.xlu1 %v8903_v23  ;;  %v3995_v23 = vmul.f32 %v8662_v54, %v3611_v19  ;;  %v3598_v54 = vld [vmem:[#allocation4 + $0x28] sm:$0xff] }
 0x32d   : > { %2732 = vadd.xlane.f32.xlu0 %v8949_v32  ;;  %v5673_v30 = vpop.f32.mrb[34].mxu0  ;;  %v3982_v18 = vmul.f32 %v8652_v26, %v3598_v54  ;;  %v3997_v26 = vmul.f32 %v8714_v14, %v3613_v24  ;;  %v9974_v14 = vld [vmem:[#allocation13_spill] sm:$0xff] }
 0x32e   : > { %v4044_v20 = vadd.f32 %v5673_v30, %v3980_v17  ;;  %v3089_v0 = vpop.f32.mrb[35].mxu0  ;;  %v3616_v17 = vld [vmem:[#allocation4 + $0xb8] sm:$0xff]  ;;  %v3615_v30 = vld [vmem:[#allocation4 + $0xb0] sm:$0xff] }
 0x32f   : > { %v4043_v2 = vadd.f32 %v3979_v27, %v3089_v0 }
 0x330   : > { %v9089_v45 = vpop.eup %6457  ;;  %4108 = vst.msk [vmem:[#allocation4 + $0x18] sm:$0xff] %vm440_vm0, %v4044_v20  ;;  %2726 = vadd.xlane.f32.xlu1 %v8914_v48  ;;  %v9975_v20 = vld [vmem:[#allocation80_spill] sm:$0xff] }
 0x331   : > { %2704 = vadd.xlane.f32.xlu0 %v8961_v22  ;;  %v9095_v59 = vpop.eup %6459  ;;  %4107 = vst.msk [vmem:[#allocation4 + $0x10] sm:$0xff] %vm440_vm0, %v4043_v2  ;;  %v5729_v8 = vpop.f32.mrb[34].mxu1  ;;  %5801 = vmatprep.mubr.f32.mxu0 %v9089_v45  ;;  %v3597_v22 = vld [vmem:[#allocation4 + $0x20] sm:$0xff]  ;;  %v4000_v0 = vmul.f32 %v9975_v20, %v3616_v17 }
 0x332   : > { %v4060_v32 = vadd.f32 %v5729_v8, %v3996_v36  ;;  %v3234_v37 = vpop.f32.mrb[35].mxu1  ;;  %5802 = vmatmul.mubr.f32.gmra.mrb[62].mxu0 %v9095_v59  ;;  %v2772_v17 = vld [vmem:[#allocation3 + $0x80] sm:$0xff] }
 0x333   : > { %v4059_v1 = vadd.f32 %v3995_v23, %v3234_v37 }
 0x334   : > { %v9101_v52 = vpop.eup %6461  ;;  %4124 = vst.msk [vmem:[#allocation4 + $0x98] sm:$0xff] %vm440_vm0, %v4060_v32  ;;  %2698 = vadd.xlane.f32.xlu1 %v8925_v3  ;;  %v3981_v3 = vmul.f32 %v8698_v21, %v3597_v22  ;;  %v3601_v32 = vld [vmem:[#allocation4 + $0x40] sm:$0xff] }
 0x335   : > { %2736 = vadd.xlane.f32.xlu0 %v8972_v38  ;;  %v9106_v48 = vpop.eup %6463  ;;  %4123 = vst.msk [vmem:[#allocation4 + $0x90] sm:$0xff] %vm440_vm0, %v4059_v1  ;;  %5857 = vmatprep.mubr.f32.mxu1 %v9101_v52  ;;  %v3614_v38 = vld [vmem:[#allocation4 + $0xa8] sm:$0xff]  ;;  %v3617_v22 = vld [vmem:[#allocation4 + $0xc0] sm:$0xff] }
 0x336   : > { %5858 = vmatmul.mubr.f32.gmra.mrb[62].mxu1 %v9106_v48  ;;  %v3998_v34 = vmul.f32 %v8668_v51, %v3614_v38  ;;  %v3600_v51 = vld [vmem:[#allocation4 + $0x38] sm:$0xff] }
 0x337   : > { %v3984_v5 = vmul.f32 %v9974_v14, %v3600_v51  ;;  %v3620_v51 = vld [vmem:[#allocation4 + $0xd8] sm:$0xff] }
 0x338   : > { %2730 = vadd.xlane.f32.xlu1 %v8934_v33 }
 0x339   : > { %2708 = vadd.xlane.f32.xlu0 %v8993_v60  ;;  %v5676_v61 = vpop.f32.mrb[36].mxu0  ;;  %v9122_v60 = vpop.permute.xlu0 %3944 }
 0x33a   : > { %v4046_v44 = vadd.f32 %v5676_v61, %v3982_v18  ;;  %v3099_v29 = vpop.f32.mrb[37].mxu0 }
 0x33b   : > { %v4045_v16 = vadd.f32 %v3981_v3, %v3099_v29 }
 0x33c   : > { %4110 = vst.msk [vmem:[#allocation4 + $0x28] sm:$0xff] %vm440_vm0, %v4046_v44  ;;  %2702 = vadd.xlane.f32.xlu1 %v8943_v49  ;;  %v3599_v49 = vld [vmem:[#allocation4 + $0x30] sm:$0xff] }
 0x33d   : > { %2740 = vadd.xlane.f32.xlu0 %v9004_v46  ;;  %4109 = vst.msk [vmem:[#allocation4 + $0x20] sm:$0xff] %vm440_vm0, %v4045_v16  ;;  %v5732_v21 = vpop.f32.mrb[36].mxu1  ;;  %v9129_v46 = vpop.permute.xlu0 %3874  ;;  %v3983_v28 = vmul.f32 %v8750_v42, %v3599_v49  ;;  %v2757_v16 = vld [vmem:[#allocation3 + $0x8] sm:$0xff]  ;;  %v9979_v49 = vld [vmem:[#allocation95_spill] sm:$0xff] }
 0x33e   : > { %v4062_v33 = vadd.f32 %v5732_v21, %v3998_v34  ;;  %v3244_v55 = vpop.f32.mrb[37].mxu1  ;;  %v3603_v34 = vld [vmem:[#allocation4 + $0x50] sm:$0xff]  ;;  %v9977_v21 = vld [vmem:[#allocation85_spill] sm:$0xff] }
 0x33f   : > { %v4061_v25 = vadd.f32 %v3997_v26, %v3244_v55  ;;  %v9978_v55 = vld [vmem:[#allocation63_spill] sm:$0xff] }
 0x340   : > { %4126 = vst.msk [vmem:[#allocation4 + $0xa8] sm:$0xff] %vm440_vm0, %v4062_v33  ;;  %2734 = vadd.xlane.f32.xlu1 %v8955_v41 }
 0x341   : > { %2712 = vadd.xlane.f32.xlu0 %v9023_v31  ;;  %4125 = vst.msk [vmem:[#allocation4 + $0xa0] sm:$0xff] %vm440_vm0, %v4061_v25  ;;  %v9140_v2 = vpop.permute.xlu0 %3954  ;;  %v2821_v25 = vmul.f32 %v9978_v55, %v2757_v16  ;;  %v9987_v55 = vld [vmem:[#allocation116_spill] sm:$0xff] }
 0x344   : > { %2706 = vadd.xlane.f32.xlu1 %v8967_v47  ;;  %v9143_v47 = vpop.permute.xlu1 %3859 }
 0x345   : > { %2744 = vadd.xlane.f32.xlu0 %v9034_v13  ;;  %v3999_v13 = vmul.f32 %v8766_v43, %v3615_v30 }
 0x346   : > { %v5679_v27 = vpop.f32.mrb[38].mxu0 }
 0x347   : > { %v4048_v31 = vadd.f32 %v5679_v27, %v3984_v5  ;;  %v3109_v19 = vpop.f32.mrb[39].mxu0 }
 0x348   : > { %v4047_v41 = vadd.f32 %v3983_v28, %v3109_v19  ;;  %2738 = vadd.xlane.f32.xlu1 %v8977_v58  ;;  %v9149_v58 = vpop.permute.xlu0 %3884  ;;  %v9151_v43 = vpop.permute.xlu1 %3939  ;;  %v9980_v19 = vld [vmem:[#allocation87_spill] sm:$0xff] }
 0x349   : > { %4112 = vst.msk [vmem:[#allocation4 + $0x38] sm:$0xff] %vm440_vm0, %v4048_v31  ;;  %2716 = vadd.xlane.f32.xlu0 %v9055_v10  ;;  %v5735_v42 = vpop.f32.mrb[38].mxu1  ;;  %v3602_v10 = vld [vmem:[#allocation4 + $0x48] sm:$0xff] }
 0x34a   : > { %4111 = vst.msk [vmem:[#allocation4 + $0x30] sm:$0xff] %vm440_vm0, %v4047_v41  ;;  %v4064_v36 = vadd.f32 %v5735_v42, %v4000_v0  ;;  %v3254_v23 = vpop.f32.mrb[39].mxu1  ;;  %v3986_v37 = vmul.f32 %v8754_v15, %v3602_v10  ;;  %v9976_v15 = vld [vmem:[#allocation26_spill] sm:$0xff]  ;;  %v4004_v41 = vmul.f32 %v9980_v19, %v3620_v51 }
 0x34b   : > { %v4063_v8 = vadd.f32 %v3999_v13, %v3254_v23  ;;  %v9982_v13 = vld [vmem:[#allocation100_spill] sm:$0xff] }
 0x34c   : > { %4128 = vst.msk [vmem:[#allocation4 + $0xb8] sm:$0xff] %vm440_vm0, %v4064_v36  ;;  %2710 = vadd.xlane.f32.xlu1 %v8999_v56  ;;  %v3985_v56 = vmul.f32 %v8814_v53, %v3601_v32  ;;  %v9159_v1 = vpop.permute.xlu0 %3964  ;;  %v9161_v18 = vpop.permute.xlu1 %3869 }
 0x34d   : > { %2748 = vadd.xlane.f32.xlu0 %v9065_v57  ;;  %4127 = vst.msk [vmem:[#allocation4 + $0xb0] sm:$0xff] %vm440_vm0, %v4063_v8  ;;  %v3618_v57 = vld [vmem:[#allocation4 + $0xc8] sm:$0xff]  ;;  %v2758_v8 = vld [vmem:[#allocation3 + $0x10] sm:$0xff] }
 0x34e   : > { %v4002_v3 = vmul.f32 %v8772_v9, %v3618_v57  ;;  %v3604_v9 = vld [vmem:[#allocation4 + $0x58] sm:$0xff] }
 0x34f   : > { %v3988_v33 = vmul.f32 %v9977_v21, %v3604_v9  ;;  %v9985_v9 = vld [vmem:[#allocation24_spill] sm:$0xff]  ;;  %v9986_v21 = vld [vmem:[#allocation81_spill] sm:$0xff] }
 0x350   : > { %2742 = vadd.xlane.f32.xlu1 %v9009_v50  ;;  %v9168_v24 = vpop.permute.xlu0 %3894  ;;  %v9170_v29 = vpop.permute.xlu1 %3949 }
 0x351   : > { %2720 = vadd.xlane.f32.xlu0 %v9089_v45 }
 0x354   : > { %2714 = vadd.xlane.f32.xlu1 %v9027_v12  ;;  %v4001_v12 = vmul.f32 %v9976_v15, %v3617_v22  ;;  %v9178_v26 = vpop.permute.xlu1 %3879  ;;  %v2774_v22 = vld [vmem:[#allocation3 + $0x90] sm:$0xff] }
 0x355   : > { %2752 = vadd.xlane.f32.xlu0 %v9101_v52  ;;  %v5682_v54 = vpop.f32.mrb[40].mxu0 }
 0x356   : > { %v4050_v45 = vadd.f32 %v5682_v54, %v3986_v37  ;;  %v3119_v38 = vpop.f32.mrb[41].mxu0 }
 0x357   : > { %v4049_v50 = vadd.f32 %v3985_v56, %v3119_v38  ;;  %v9983_v56 = vld [vmem:[#allocation69_spill] sm:$0xff] }
 0x358   : > { %4114 = vst.msk [vmem:[#allocation4 + $0x48] sm:$0xff] %vm440_vm0, %v4050_v45  ;;  %2746 = vadd.xlane.f32.xlu1 %v9039_v40  ;;  %v9176_v40 = vpop.permute.xlu0 %3974  ;;  %v9185_v20 = vpop.permute.xlu1 %3959  ;;  %v2822_v54 = vmul.f32 %v9983_v56, %v2758_v8  ;;  %v2756_v8 = vld [vmem:[#allocation3] sm:$0xff] }
 0x359   : > { %4113 = vst.msk [vmem:[#allocation4 + $0x40] sm:$0xff] %vm440_vm0, %v4049_v50  ;;  %v5738_v53 = vpop.f32.mrb[40].mxu1 }
 0x35a   : > { %v4066_v52 = vadd.f32 %v5738_v53, %v4002_v3  ;;  %v3264_v61 = vpop.f32.mrb[41].mxu1  ;;  %v9984_v3 = vld [vmem:[#allocation72_spill] sm:$0xff] }
 0x35b   : > { %v4065_v44 = vadd.f32 %v4001_v12, %v3264_v61  ;;  %v2838_v15 = vmul.f32 %v9984_v3, %v2774_v22  ;;  %v3606_v12 = vld [vmem:[#allocation4 + $0x68] sm:$0xff]  ;;  %v3605_v61 = vld [vmem:[#allocation4 + $0x60] sm:$0xff] }
 0x35c   : > { %4130 = vst.msk [vmem:[#allocation4 + $0xc8] sm:$0xff] %vm440_vm0, %v4066_v52  ;;  %2718 = vadd.xlane.f32.xlu1 %v9059_v35  ;;  %v3987_v35 = vmul.f32 %v9979_v49, %v3603_v34  ;;  %v9197_v45 = vpop.permute.xlu1 %3889  ;;  %v2760_v52 = vld [vmem:[#allocation3 + $0x20] sm:$0xff]  ;;  %v3990_v16 = vmul.f32 %v9985_v9, %v3606_v12 }
 0x35d   : > { %4129 = vst.msk [vmem:[#allocation4 + $0xc0] sm:$0xff] %vm440_vm0, %v4065_v44 }
 0x360   : > { %2750 = vadd.xlane.f32.xlu1 %v9071_v63  ;;  %v3619_v63 = vld [vmem:[#allocation4 + $0xd0] sm:$0xff]  ;;  %v9202_v34 = vpop.permute.xlu1 %3969 }
 0x361   : > { %v4003_v42 = vmul.f32 %v9982_v13, %v3619_v63 }
 0x364   : > { %2722 = vadd.xlane.f32.xlu1 %v9095_v59  ;;  %v9981_v59 = vld [vmem:[#allocation65_spill] sm:$0xff] }
 0x365   : > { %v5685_v5 = vpop.f32.mrb[42].mxu0  ;;  %v2836_v0 = vmul.f32 %v9981_v59, %v2772_v17 }
 0x366   : > { %v2631_v14 = vpop.xlane.xlu0 %2630  ;;  %v4052_v27 = vadd.f32 %v5685_v5, %v3988_v33  ;;  %v3129_v30 = vpop.f32.mrb[43].mxu0  ;;  %v2824_v33 = vmul.f32 %v9986_v21, %v2760_v52  ;;  %v3622_v5 = vld [vmem:[#allocation4 + $0xe8] sm:$0xff]  ;;  %v9994_v21 = vld [vmem:[#allocation92_spill] sm:$0xff] }
 0x367   : > { %v2885_v28 = vadd.f32 %v2821_v25, %v2631_v14  ;;  %v4051_v31 = vadd.f32 %v3987_v35, %v3129_v30  ;;  %v3989_v25 = vmul.f32 %v9987_v55, %v3605_v61  ;;  %v2776_v35 = vld [vmem:[#allocation3 + $0xa0] sm:$0xff]  ;;  %v2773_v14 = vld [vmem:[#allocation3 + $0x88] sm:$0xff]  ;;  %v2778_v61 = vld [vmem:[#allocation3 + $0xb0] sm:$0xff] }
 0x368   : > { %4116 = vst.msk [vmem:[#allocation4 + $0x58] sm:$0xff] %vm440_vm0, %v4052_v27  ;;  %2754 = vadd.xlane.f32.xlu1 %v9106_v48  ;;  %v3621_v27 = vld [vmem:[#allocation4 + $0xe0] sm:$0xff]  ;;  %v9995_v55 = vld [vmem:[#allocation64_spill] sm:$0xff] }
 0x369   : > { %2950 = vst.msk [vmem:[#allocation3 + $0x8] sm:$0xff] %vm311_vm3, %v2885_v28  ;;  %v5741_v23 = vpop.f32.mrb[42].mxu1 }
 0x36a   : > { %4115 = vst.msk [vmem:[#allocation4 + $0x50] sm:$0xff] %vm440_vm0, %v4051_v31  ;;  %v2661_v36 = vpop.xlane.xlu0 %2660  ;;  %v4068_v32 = vadd.f32 %v5741_v23, %v4004_v41  ;;  %v3274_v37 = vpop.f32.mrb[43].mxu1  ;;  %v9988_v31 = vld [vmem:[#allocation83_spill] sm:$0xff]  ;;  %v9989_v41 = vld [vmem:[#allocation61_spill] sm:$0xff] }
 0x36b   : > { %v2900_v10 = vadd.f32 %v2836_v0, %v2661_v36  ;;  %v4067_v57 = vadd.f32 %v4003_v42, %v3274_v37  ;;  %v2840_v19 = vmul.f32 %v9988_v31, %v2776_v35  ;;  %v2837_v59 = vmul.f32 %v9989_v41, %v2773_v14  ;;  %v9990_v0 = vld [vmem:[#allocation25_spill] sm:$0xff]  ;;  %v2762_v23 = vld [vmem:[#allocation3 + $0x30] sm:$0xff]  ;;  %v2775_v14 = vld [vmem:[#allocation3 + $0x98] sm:$0xff] }
 0x36c   : > { %4132 = vst.msk [vmem:[#allocation4 + $0xd8] sm:$0xff] %vm440_vm0, %v4068_v32  ;;  %v4006_v13 = vmul.f32 %v9990_v0, %v3622_v5  ;;  %v9991_v32 = vld [vmem:[#allocation118_spill] sm:$0xff]  ;;  %v2764_v35 = vld [vmem:[#allocation3 + $0x40] sm:$0xff]  ;;  %v3608_v5 = vld [vmem:[#allocation4 + $0x78] sm:$0xff] }
 0x36d   : > { %2965 = vst.msk [vmem:[#allocation3 + $0x80] sm:$0xff] %vm311_vm3, %v2900_v10  ;;  %v4005_v37 = vmul.f32 %v9991_v32, %v3621_v27 }
 0x36e   : > { %4131 = vst.msk [vmem:[#allocation4 + $0xd0] sm:$0xff] %vm440_vm0, %v4067_v57  ;;  %v2633_v48 = vpop.xlane.xlu0 %2632 }
 0x36f   : > { %v2886_v38 = vadd.f32 %v2822_v54, %v2633_v48 }
 0x370   : > { %v4237_v50 = vld [vmem:[#allocation3 + $0x8] sm:$0xff] }
 0x371   : > { %6465 = vrcp.f32 %v4237_v50  ;;  %2951 = vst.msk [vmem:[#allocation3 + $0x10] sm:$0xff] %vm311_vm3, %v2886_v38  ;;  %v9992_v50 = vld [vmem:[#allocation90_spill] sm:$0xff] }
 0x372   : > { %v2665_v53 = vpop.xlane.xlu0 %2664  ;;  %v2826_v3 = vmul.f32 %v9992_v50, %v2762_v23  ;;  %v2761_v23 = vld [vmem:[#allocation3 + $0x28] sm:$0xff] }
 0x373   : > { %v2902_v44 = vadd.f32 %v2838_v15, %v2665_v53  ;;  %v9993_v15 = vld [vmem:[#allocation62_spill] sm:$0xff] }
 0x374   : > { %v2820_v12 = vmul.f32 %v9993_v15, %v2756_v8  ;;  %v3624_v8 = vld [vmem:[#allocation4 + $0xf8] sm:$0xff] }
 0x375   : > { %2967 = vst.msk [vmem:[#allocation3 + $0x90] sm:$0xff] %vm311_vm3, %v2902_v44  ;;  %v5688_v49 = vpop.f32.mrb[44].mxu0  ;;  %v2759_v44 = vld [vmem:[#allocation3 + $0x18] sm:$0xff] }
 0x376   : > { %v2637_v51 = vpop.xlane.xlu0 %2636  ;;  %v4054_v63 = vadd.f32 %v5688_v49, %v3990_v16  ;;  %v3139_v28 = vpop.f32.mrb[45].mxu0 }
 0x377   : > { %v2888_v17 = vadd.f32 %v2824_v33, %v2637_v51  ;;  %v4053_v30 = vadd.f32 %v3989_v25, %v3139_v28  ;;  %v2842_v33 = vmul.f32 %v9994_v21, %v2778_v61  ;;  %v2823_v25 = vmul.f32 %v9995_v55, %v2759_v44  ;;  %v3607_v28 = vld [vmem:[#allocation4 + $0x70] sm:$0xff]  ;;  %v4252_v44 = vld [vmem:[#allocation3 + $0x80] sm:$0xff]  ;;  %v10003_v55 = vld [vmem:[#allocation122_spill] sm:$0xff] }
 0x378   : > { %4118 = vst.msk [vmem:[#allocation4 + $0x68] sm:$0xff] %vm440_vm0, %v4054_v63  ;;  %v2766_v21 = vld [vmem:[#allocation3 + $0x50] sm:$0xff] }
 0x379   : > { %2953 = vst.msk [vmem:[#allocation3 + $0x20] sm:$0xff] %vm311_vm3, %v2888_v17  ;;  %v2663_v36 = vpop.xlane.xlu1 %2662  ;;  %v5744_v54 = vpop.f32.mrb[44].mxu1 }
 0x37a   : > { %4117 = vst.msk [vmem:[#allocation4 + $0x60] sm:$0xff] %vm440_vm0, %v4053_v30  ;;  %v2669_v42 = vpop.xlane.xlu0 %2668  ;;  %v2901_v56 = vadd.f32 %v2837_v59, %v2663_v36  ;;  %v4070_v48 = vadd.f32 %v5744_v54, %v4006_v13  ;;  %v3284_v22 = vpop.f32.mrb[45].mxu1  ;;  %v9996_v30 = vld [vmem:[#allocation98_spill] sm:$0xff]  ;;  %v2780_v36 = vld [vmem:[#allocation3 + $0xc0] sm:$0xff]  ;;  %v3623_v54 = vld [vmem:[#allocation4 + $0xf0] sm:$0xff] }
 0x37b   : > { %v6466_v10 = vpop.eup %6465  ;;  %v2904_v57 = vadd.f32 %v2840_v19, %v2669_v42  ;;  %v4069_v38 = vadd.f32 %v4005_v37, %v3284_v22  ;;  %v2828_v31 = vmul.f32 %v9996_v30, %v2764_v35  ;;  %v9997_v19 = vld [vmem:[#allocation66_spill] sm:$0xff]  ;;  %v10005_v30 = vld [vmem:[#allocation73_spill] sm:$0xff] }
 0x37c   : > { %4435 = vperm.xlu0 %6208, %v6466_v10   ;;  %2966 = vst.msk [vmem:[#allocation3 + $0x88] sm:$0xff] %vm311_vm3, %v2901_v56  ;;  %v2839_v41 = vmul.f32 %v9997_v19, %v2775_v14  ;;  %v9998_v59 = vld [vmem:[#allocation106_spill] sm:$0xff]  ;;  %v9999_v10 = vld [vmem:[#allocation120_spill] sm:$0xff]  ;;  %v4238_v19 = vld [vmem:[#allocation3 + $0x10] sm:$0xff] }
 0x37d   : > { %2969 = vst.msk [vmem:[#allocation3 + $0xa0] sm:$0xff] %vm311_vm3, %v2904_v57  ;;  %v2629_v52 = vpop.xlane.xlu1 %2628  ;;  %v3992_v0 = vmul.f32 %v9998_v59, %v3608_v5  ;;  %v3991_v32 = vmul.f32 %v9999_v10, %v3607_v28  ;;  %v10004_v28 = vld [vmem:[#allocation104_spill] sm:$0xff] }
 0x37e   : > { %4134 = vst.msk [vmem:[#allocation4 + $0xe8] sm:$0xff] %vm440_vm0, %v4070_v48  ;;  %v2641_v53 = vpop.xlane.xlu0 %2640  ;;  %4133 = vst.msk [vmem:[#allocation4 + $0xe0] sm:$0xff] %vm440_vm0, %v4069_v38  ;;  %v2884_v16 = vadd.f32 %v2820_v12, %v2629_v52  ;;  %v10001_v12 = vld [vmem:[#allocation70_spill] sm:$0xff]  ;;  %v10002_v52 = vld [vmem:[#allocation115_spill] sm:$0xff] }
 0x37f   : > { %v2890_v9 = vadd.f32 %v2826_v3, %v2641_v53  ;;  %v10000_v3 = vld [vmem:[#allocation101_spill] sm:$0xff]  ;;  %v2825_v53 = vmul.f32 %v10001_v12, %v2761_v23  ;;  %v4008_v61 = vmul.f32 %v10002_v52, %v3624_v8  ;;  %v10006_v10 = vld [vmem:[#allocation108_spill] sm:$0xff] }
 0x380   : > { %2949 = vst.msk [vmem:[#allocation3] sm:$0xff] %vm311_vm3, %v2884_v16  ;;  %v2844_v15 = vmul.f32 %v10000_v3, %v2780_v36 }
 0x381   : > { %2955 = vst.msk [vmem:[#allocation3 + $0x30] sm:$0xff] %vm311_vm3, %v2890_v9  ;;  %v2635_v49 = vpop.xlane.xlu1 %2634 }
 0x382   : > { %v2673_v51 = vpop.xlane.xlu0 %2672  ;;  %v2887_v63 = vadd.f32 %v2823_v25, %v2635_v49  ;;  %v4007_v25 = vmul.f32 %v10003_v55, %v3623_v54  ;;  %v2765_v55 = vld [vmem:[#allocation3 + $0x48] sm:$0xff] }
 0x383   : > { %v2906_v17 = vadd.f32 %v2842_v33, %v2673_v51  ;;  %v4253_v27 = vld [vmem:[#allocation3 + $0x88] sm:$0xff] }
 0x384   : > { %2952 = vst.msk [vmem:[#allocation3 + $0x18] sm:$0xff] %vm311_vm3, %v2887_v63  ;;  %6467 = vrcp.f32 %v4253_v27  ;;  %v2777_v33 = vld [vmem:[#allocation3 + $0xa8] sm:$0xff]  ;;  %v2830_v27 = vmul.f32 %v10004_v28, %v2766_v21 }
 0x385   : > { %2971 = vst.msk [vmem:[#allocation3 + $0xb0] sm:$0xff] %vm311_vm3, %v2906_v17  ;;  %v2667_v42 = vpop.xlane.xlu1 %2666  ;;  %v5691_v56 = vpop.f32.mrb[46].mxu0 }
 0x386   : > { %v2645_v13 = vpop.xlane.xlu0 %2644  ;;  %v2903_v57 = vadd.f32 %v2839_v41, %v2667_v42  ;;  %v4056_v22 = vadd.f32 %v5691_v56, %v3992_v0  ;;  %v3149_v38 = vpop.f32.mrb[47].mxu0  ;;  %v2782_v0 = vld [vmem:[#allocation3 + $0xd0] sm:$0xff] }
 0x387   : > { %v2892_v37 = vadd.f32 %v2828_v31, %v2645_v13  ;;  %v4236_v48 = vld [vmem:[#allocation3] sm:$0xff]  ;;  %v4055_v50 = vadd.f32 %v3991_v32, %v3149_v38  ;;  %v2841_v31 = vmul.f32 %v10005_v30, %v2777_v33  ;;  %v2763_v13 = vld [vmem:[#allocation3 + $0x38] sm:$0xff]  ;;  %v2846_v32 = vmul.f32 %v10006_v10, %v2782_v0  ;;  %v4254_v56 = vld [vmem:[#allocation3 + $0x90] sm:$0xff] }
 0x388   : > { %2968 = vst.msk [vmem:[#allocation3 + $0x98] sm:$0xff] %vm311_vm3, %v2903_v57  ;;  %6469 = vrcp.f32 %v4236_v48  ;;  %v2779_v38 = vld [vmem:[#allocation3 + $0xb8] sm:$0xff]  ;;  %v2784_v33 = vld [vmem:[#allocation3 + $0xe0] sm:$0xff] }
 0x389   : > { %2957 = vst.msk [vmem:[#allocation3 + $0x40] sm:$0xff] %vm311_vm3, %v2892_v37  ;;  %v2639_v16 = vpop.xlane.xlu1 %2638  ;;  %v5747_v35 = vpop.f32.mrb[46].mxu1  ;;  %6471 = vrcp.f32 %v4252_v44  ;;  %v10007_v37 = vld [vmem:[#allocation82_spill] sm:$0xff]  ;;  %v10013_v10 = vld [vmem:[#allocation93_spill] sm:$0xff] }
 0x38a   : > { %4120 = vst.msk [vmem:[#allocation4 + $0x78] sm:$0xff] %vm440_vm0, %v4056_v22  ;;  %v2677_v9 = vpop.xlane.xlu0 %2676  ;;  %4119 = vst.msk [vmem:[#allocation4 + $0x70] sm:$0xff] %vm440_vm0, %v4055_v50  ;;  %v2889_v49 = vadd.f32 %v2825_v53, %v2639_v16  ;;  %v4072_v5 = vadd.f32 %v5747_v35, %v4008_v61  ;;  %v3294_v17 = vpop.f32.mrb[47].mxu1  ;;  %v2827_v57 = vmul.f32 %v10007_v37, %v2763_v13  ;;  %v2768_v22 = vld [vmem:[#allocation3 + $0x60] sm:$0xff]  ;;  %v10008_v53 = vld [vmem:[#allocation110_spill] sm:$0xff] }
 0x38b   : > { %v2908_v51 = vadd.f32 %v2844_v15, %v2677_v9  ;;  %v4239_v14 = vld [vmem:[#allocation3 + $0x18] sm:$0xff]  ;;  %v4071_v63 = vadd.f32 %v4007_v25, %v3294_v17  ;;  %v2832_v52 = vmul.f32 %v10008_v53, %v2768_v22  ;;  %v4240_v9 = vld [vmem:[#allocation3 + $0x20] sm:$0xff]  ;;  %v4242_v37 = vld [vmem:[#allocation3 + $0x30] sm:$0xff] }
 0x38c   : > { %2954 = vst.msk [vmem:[#allocation3 + $0x28] sm:$0xff] %vm311_vm3, %v2889_v49  ;;  %6473 = vrcp.f32 %v4239_v14  ;;  %v10009_v61 = vld [vmem:[#allocation84_spill] sm:$0xff] }
 0x38d   : > { %2973 = vst.msk [vmem:[#allocation3 + $0xc0] sm:$0xff] %vm311_vm3, %v2908_v51  ;;  %v2671_v59 = vpop.xlane.xlu1 %2670  ;;  %6475 = vrcp.f32 %v4238_v19  ;;  %v2843_v44 = vmul.f32 %v10009_v61, %v2779_v38  ;;  %v2770_v19 = vld [vmem:[#allocation3 + $0x70] sm:$0xff] }
 0x38e   : > { %4136 = vst.msk [vmem:[#allocation4 + $0xf8] sm:$0xff] %vm440_vm0, %v4072_v5  ;;  %v2649_v41 = vpop.xlane.xlu0 %2648  ;;  %4135 = vst.msk [vmem:[#allocation4 + $0xf0] sm:$0xff] %vm440_vm0, %v4071_v63  ;;  %v2905_v36 = vadd.f32 %v2841_v31, %v2671_v59  ;;  %v6468_v23 = vpop.eup %6467  ;;  %v10010_v5 = vld [vmem:[#allocation111_spill] sm:$0xff] }
 0x38f   : > { %v2894_v42 = vadd.f32 %v2830_v27, %v2649_v41  ;;  %v4255_v8 = vld [vmem:[#allocation3 + $0x98] sm:$0xff]  ;;  %4515 = vperm.xlu0 %6208, %v6468_v23   ;;  %v2848_v17 = vmul.f32 %v10010_v5, %v2784_v33  ;;  %v10011_v63 = vld [vmem:[#allocation91_spill] sm:$0xff]  ;;  %v4256_v27 = vld [vmem:[#allocation3 + $0xa0] sm:$0xff] }
 0x390   : > { %2970 = vst.msk [vmem:[#allocation3 + $0xa8] sm:$0xff] %vm311_vm3, %v2905_v36  ;;  %6477 = vrcp.f32 %v4255_v8  ;;  %v2829_v28 = vmul.f32 %v10011_v63, %v2765_v55  ;;  %v2781_v41 = vld [vmem:[#allocation3 + $0xc8] sm:$0xff]  ;;  %v10012_v23 = vld [vmem:[#allocation112_spill] sm:$0xff] }
 0x391   : > { %2959 = vst.msk [vmem:[#allocation3 + $0x50] sm:$0xff] %vm311_vm3, %v2894_v42  ;;  %v2643_v48 = vpop.xlane.xlu1 %2642  ;;  %6479 = vrcp.f32 %v4254_v56  ;;  %v2834_v8 = vmul.f32 %v10012_v23, %v2770_v19  ;;  %v2783_v33 = vld [vmem:[#allocation3 + $0xd8] sm:$0xff]  ;;  %v2769_v19 = vld [vmem:[#allocation3 + $0x68] sm:$0xff] }
 0x392   : > { %v2681_v54 = vpop.xlane.xlu0 %2680  ;;  %v2891_v3 = vadd.f32 %v2827_v57, %v2643_v48  ;;  %v6470_v15 = vpop.eup %6469  ;;  %v2767_v48 = vld [vmem:[#allocation3 + $0x58] sm:$0xff] }
 0x393   : > { %v2910_v50 = vadd.f32 %v2846_v32, %v2681_v54  ;;  %v4241_v12 = vld [vmem:[#allocation3 + $0x28] sm:$0xff]  ;;  %4430 = vperm.xlu1 %6207, %v6470_v15   ;;  %v6472_v25 = vpop.eup %6471  ;;  %v2845_v32 = vmul.f32 %v10013_v10, %v2781_v41  ;;  %v2786_v54 = vld [vmem:[#allocation3 + $0xf0] sm:$0xff] }
 0x394   : > { %2956 = vst.msk [vmem:[#allocation3 + $0x38] sm:$0xff] %vm311_vm3, %v2891_v3  ;;  %6481 = vrcp.f32 %v4241_v12  ;;  %v10014_v12 = vld [vmem:[#allocation113_spill] sm:$0xff] }
 0x395   : > { %2975 = vst.msk [vmem:[#allocation3 + $0xd0] sm:$0xff] %vm311_vm3, %v2910_v50  ;;  %v2675_v21 = vpop.xlane.xlu1 %2674  ;;  %6483 = vrcp.f32 %v4240_v9  ;;  %v2850_v53 = vmul.f32 %v10014_v12, %v2786_v54  ;;  %v2785_v54 = vld [vmem:[#allocation3 + $0xe8] sm:$0xff] }
 0x396   : > { %v2653_v16 = vpop.xlane.xlu0 %2652  ;;  %v2907_v49 = vadd.f32 %v2843_v44, %v2675_v21  ;;  %v6474_v35 = vpop.eup %6473  ;;  %v4258_v44 = vld [vmem:[#allocation3 + $0xb0] sm:$0xff]  ;;  %v2788_v21 = vld [vmem:[#allocation3 + $0x100] sm:$0xff] }
 0x397   : > { %v2896_v51 = vadd.f32 %v2832_v52, %v2653_v16  ;;  %v4257_v14 = vld [vmem:[#allocation3 + $0xa8] sm:$0xff]  ;;  %4445 = vperm.xlu0 %6208, %v6474_v35   ;;  %4510 = vperm.xlu1 %6207, %v6472_v25   ;;  %v6476_v59 = vpop.eup %6475 }
 0x398   : > { %2972 = vst.msk [vmem:[#allocation3 + $0xb8] sm:$0xff] %vm311_vm3, %v2907_v49  ;;  %6485 = vrcp.f32 %v4257_v14  ;;  %v10015_v52 = vld [vmem:[#allocation94_spill] sm:$0xff] }
 0x399   : > { %2961 = vst.msk [vmem:[#allocation3 + $0x60] sm:$0xff] %vm311_vm3, %v2896_v51  ;;  %v2647_v31 = vpop.xlane.xlu1 %2646  ;;  %6487 = vrcp.f32 %v4256_v27  ;;  %v2831_v61 = vmul.f32 %v10015_v52, %v2767_v48  ;;  %v10016_v14 = vld [vmem:[#allocation74_spill] sm:$0xff] }
 0x39a   : > { %v2685_v30 = vpop.xlane.xlu0 %2684  ;;  %v2893_v13 = vadd.f32 %v2829_v28, %v2647_v31  ;;  %v6478_v42 = vpop.eup %6477  ;;  %v2852_v5 = vmul.f32 %v10016_v14, %v2788_v21  ;;  %v4244_v28 = vld [vmem:[#allocation3 + $0x40] sm:$0xff]  ;;  %v4246_v21 = vld [vmem:[#allocation3 + $0x50] sm:$0xff]  ;;  %v10023_v14 = vld [vmem:[#allocation32_spill] sm:$0xff] }
 0x39b   : > { %v2912_v0 = vadd.f32 %v2848_v17, %v2685_v30  ;;  %v4243_v36 = vld [vmem:[#allocation3 + $0x38] sm:$0xff]  ;;  %4525 = vperm.xlu0 %6208, %v6478_v42   ;;  %4440 = vperm.xlu1 %6207, %v6476_v59   ;;  %v6480_v22 = vpop.eup %6479  ;;  %v2804_v31 = vld [vmem:[#allocation3 + $0x180] sm:$0xff] }
 0x39c   : > { %2958 = vst.msk [vmem:[#allocation3 + $0x48] sm:$0xff] %vm311_vm3, %v2893_v13  ;;  %6489 = vrcp.f32 %v4243_v36  ;;  %v10017_v17 = vld [vmem:[#allocation96_spill] sm:$0xff]  ;;  %v10018_v36 = vld [vmem:[#allocation9_spill] sm:$0xff] }
 0x39d   : > { %2977 = vst.msk [vmem:[#allocation3 + $0xe0] sm:$0xff] %vm311_vm3, %v2912_v0  ;;  %v2679_v56 = vpop.xlane.xlu1 %2678  ;;  %6491 = vrcp.f32 %v4242_v37  ;;  %v2847_v63 = vmul.f32 %v10017_v17, %v2783_v33  ;;  %v2868_v23 = vmul.f32 %v10018_v36, %v2804_v31 }
 0x39e   : > { %v2657_v57 = vpop.xlane.xlu0 %2656  ;;  %v2909_v50 = vadd.f32 %v2845_v32, %v2679_v56  ;;  %v6482_v3 = vpop.eup %6481  ;;  %v4260_v32 = vld [vmem:[#allocation3 + $0xc0] sm:$0xff]  ;;  %v2790_v56 = vld [vmem:[#allocation3 + $0x110] sm:$0xff] }
 0x39f   : > { %v2898_v38 = vadd.f32 %v2834_v8, %v2657_v57  ;;  %v4259_v15 = vld [vmem:[#allocation3 + $0xb8] sm:$0xff]  ;;  %4455 = vperm.xlu0 %6208, %v6482_v3   ;;  %4520 = vperm.xlu1 %6207, %v6480_v22   ;;  %v6484_v55 = vpop.eup %6483  ;;  %v10019_v8 = vld [vmem:[#allocation99_spill] sm:$0xff]  ;;  %v3626_v22 = vld [vmem:[#allocation4 + $0x108] sm:$0xff] }
 0x3a0   : > { %2974 = vst.msk [vmem:[#allocation3 + $0xc8] sm:$0xff] %vm311_vm3, %v2909_v50  ;;  %6493 = vrcp.f32 %v4259_v15  ;;  %v2833_v10 = vmul.f32 %v10019_v8, %v2769_v19  ;;  %v3625_v15 = vld [vmem:[#allocation4 + $0x100] sm:$0xff] }
 0x3a1   : > { %2963 = vst.msk [vmem:[#allocation3 + $0x70] sm:$0xff] %vm311_vm3, %v2898_v38  ;;  %v2651_v16 = vpop.xlane.xlu1 %2650  ;;  %6495 = vrcp.f32 %v4258_v44 }
 0x3a2   : > { %v2689_v9 = vpop.xlane.xlu0 %2688  ;;  %v2895_v51 = vadd.f32 %v2831_v61, %v2651_v16  ;;  %v6486_v49 = vpop.eup %6485  ;;  %v10021_v61 = vld [vmem:[#allocation102_spill] sm:$0xff] }
 0x3a3   : > { %v2914_v25 = vadd.f32 %v2850_v53, %v2689_v9  ;;  %v4245_v35 = vld [vmem:[#allocation3 + $0x48] sm:$0xff]  ;;  %4535 = vperm.xlu0 %6208, %v6486_v49   ;;  %4450 = vperm.xlu1 %6207, %v6484_v55   ;;  %v6488_v41 = vpop.eup %6487  ;;  %v10020_v53 = vld [vmem:[#allocation12_spill] sm:$0xff]  ;;  %v2849_v44 = vmul.f32 %v10021_v61, %v2785_v54  ;;  %v10022_v9 = vld [vmem:[#allocation29_spill] sm:$0xff] }
 0x3a4   : > { %2960 = vst.msk [vmem:[#allocation3 + $0x58] sm:$0xff] %vm311_vm3, %v2895_v51  ;;  %6497 = vrcp.f32 %v4245_v35  ;;  %v2854_v52 = vmul.f32 %v10020_v53, %v2790_v56  ;;  %v4010_v16 = vmul.f32 %v10022_v9, %v3626_v22  ;;  %v2771_v51 = vld [vmem:[#allocation3 + $0x78] sm:$0xff]  ;;  %v3642_v35 = vld [vmem:[#allocation4 + $0x188] sm:$0xff]  ;;  %v3627_v53 = vld [vmem:[#allocation4 + $0x110] sm:$0xff] }
 0x3a5   : > { %2979 = vst.msk [vmem:[#allocation3 + $0xf0] sm:$0xff] %vm311_vm3, %v2914_v25  ;;  %v2683_v30 = vpop.xlane.xlu1 %2682  ;;  %6499 = vrcp.f32 %v4244_v28  ;;  %v2806_v25 = vld [vmem:[#allocation3 + $0x190] sm:$0xff]  ;;  %v2787_v56 = vld [vmem:[#allocation3 + $0xf8] sm:$0xff]  ;;  %v10027_v22 = vld [vmem:[#allocation34_spill] sm:$0xff] }
 0x3a6   : > { %v2693_v27 = vpop.xlane.xlu0 %2692  ;;  %v2911_v0 = vadd.f32 %v2847_v63, %v2683_v30  ;;  %v6490_v13 = vpop.eup %6489  ;;  %v3641_v30 = vld [vmem:[#allocation4 + $0x180] sm:$0xff] }
 0x3a7   : > { %v2916_v59 = vadd.f32 %v2852_v5, %v2693_v27  ;;  %v4261_v42 = vld [vmem:[#allocation3 + $0xc8] sm:$0xff]  ;;  %4465 = vperm.xlu0 %6208, %v6490_v13   ;;  %4530 = vperm.xlu1 %6207, %v6488_v41   ;;  %v6492_v48 = vpop.eup %6491  ;;  %v4009_v5 = vmul.f32 %v10023_v14, %v3625_v15 }
 0x3a8   : > { %2976 = vst.msk [vmem:[#allocation3 + $0xd8] sm:$0xff] %vm311_vm3, %v2911_v0  ;;  %6501 = vrcp.f32 %v4261_v42  ;;  %v10024_v0 = vld [vmem:[#allocation75_spill] sm:$0xff]  ;;  %v10025_v42 = vld [vmem:[#allocation105_spill] sm:$0xff] }
 0x3a9   : > { %2981 = vst.msk [vmem:[#allocation3 + $0x100] sm:$0xff] %vm311_vm3, %v2916_v59  ;;  %v2655_v57 = vpop.xlane.xlu1 %2654  ;;  %6503 = vrcp.f32 %v4260_v32  ;;  %v2870_v13 = vmul.f32 %v10024_v0, %v2806_v25  ;;  %v2835_v36 = vmul.f32 %v10025_v42, %v2771_v51  ;;  %v10030_v25 = vld [vmem:[#allocation31_spill] sm:$0xff] }
 0x3aa   : > { %v2725_v37 = vpop.xlane.xlu0 %2724  ;;  %v2897_v50 = vadd.f32 %v2833_v10, %v2655_v57  ;;  %v6494_v3 = vpop.eup %6493  ;;  %v4262_v10 = vld [vmem:[#allocation3 + $0xd0] sm:$0xff]  ;;  %v2792_v57 = vld [vmem:[#allocation3 + $0x120] sm:$0xff] }
 0x3ab   : > { %v2932_v38 = vadd.f32 %v2868_v23, %v2725_v37  ;;  %v4247_v12 = vld [vmem:[#allocation3 + $0x58] sm:$0xff]  ;;  %4545 = vperm.xlu0 %6208, %v6494_v3   ;;  %4460 = vperm.xlu1 %6207, %v6492_v48   ;;  %v6496_v49 = vpop.eup %6495  ;;  %v10026_v23 = vld [vmem:[#allocation30_spill] sm:$0xff] }
 0x3ac   : > { %2962 = vst.msk [vmem:[#allocation3 + $0x68] sm:$0xff] %vm311_vm3, %v2897_v50  ;;  %6505 = vrcp.f32 %v4247_v12  ;;  %v4026_v8 = vmul.f32 %v10026_v23, %v3642_v35  ;;  %v3628_v48 = vld [vmem:[#allocation4 + $0x118] sm:$0xff] }
 0x3ad   : > { %2997 = vst.msk [vmem:[#allocation3 + $0x180] sm:$0xff] %vm311_vm3, %v2932_v38  ;;  %v2687_v55 = vpop.xlane.xlu1 %2686  ;;  %v5782_v28 = vpop.f32.mrb[48].mxu0  ;;  %6507 = vrcp.f32 %v4246_v21  ;;  %v4025_v38 = vmul.f32 %v10027_v22, %v3641_v30  ;;  %v4012_v51 = vmul.f32 %v10030_v25, %v3628_v48  ;;  %v10031_v23 = vld [vmem:[#allocation16_spill] sm:$0xff]  ;;  %v2794_v48 = vld [vmem:[#allocation3 + $0x130] sm:$0xff]  ;;  %v2805_v22 = vld [vmem:[#allocation3 + $0x188] sm:$0xff] }
 0x3ae   : > { %v2697_v33 = vpop.xlane.xlu0 %2696  ;;  %v2913_v63 = vadd.f32 %v2849_v44, %v2687_v55  ;;  %v6498_v27 = vpop.eup %6497  ;;  %v4074_v19 = vadd.f32 %v5782_v28, %v4010_v16  ;;  %v10028_v16 = vld [vmem:[#allocation79_spill] sm:$0xff]  ;;  %v3644_v28 = vld [vmem:[#allocation4 + $0x198] sm:$0xff] }
 0x3af   : > { %v2918_v17 = vadd.f32 %v2854_v52, %v2697_v33  ;;  %v4263_v31 = vld [vmem:[#allocation3 + $0xd8] sm:$0xff]  ;;  %v3369_v41 = vpop.f32.mrb[49].mxu0  ;;  %4475 = vperm.xlu0 %6208, %v6498_v27   ;;  %4540 = vperm.xlu1 %6207, %v6496_v49   ;;  %v6500_v54 = vpop.eup %6499  ;;  %v2856_v21 = vmul.f32 %v10028_v16, %v2792_v57  ;;  %v10029_v33 = vld [vmem:[#allocation109_spill] sm:$0xff]  ;;  %v4011_v27 = vmul.f32 %v8985_v4, %v3627_v53 }
 0x3b0   : > { %2978 = vst.msk [vmem:[#allocation3 + $0xe8] sm:$0xff] %vm311_vm3, %v2913_v63  ;;  %v4073_v59 = vadd.f32 %v4009_v5, %v3369_v41  ;;  %6509 = vrcp.f32 %v4263_v31  ;;  %v2851_v55 = vmul.f32 %v10029_v33, %v2787_v56  ;;  %v4248_v49 = vld [vmem:[#allocation3 + $0x60] sm:$0xff]  ;;  %v10034_v33 = vld [vmem:[#allocation18_spill] sm:$0xff] }
 0x3b1   : > { %2983 = vst.msk [vmem:[#allocation3 + $0x110] sm:$0xff] %vm311_vm3, %v2918_v17  ;;  %v2659_v37 = vpop.xlane.xlu1 %2658  ;;  %v5838_v15 = vpop.f32.mrb[48].mxu1  ;;  %6511 = vrcp.f32 %v4262_v10  ;;  %v2808_v5 = vld [vmem:[#allocation3 + $0x1a0] sm:$0xff]  ;;  %v2789_v17 = vld [vmem:[#allocation3 + $0x108] sm:$0xff] }
 0x3b2   : > { %4138 = vst.msk [vmem:[#allocation4 + $0x108] sm:$0xff] %vm440_vm0, %v4074_v19  ;;  %v2729_v32 = vpop.xlane.xlu0 %2728  ;;  %4137 = vst.msk [vmem:[#allocation4 + $0x100] sm:$0xff] %vm440_vm0, %v4073_v59  ;;  %v2899_v3 = vadd.f32 %v2835_v36, %v2659_v37  ;;  %v6502_v12 = vpop.eup %6501  ;;  %v4090_v61 = vadd.f32 %v5838_v15, %v4026_v8  ;;  %v3643_v59 = vld [vmem:[#allocation4 + $0x190] sm:$0xff]  ;;  %v2872_v4 = vmul.f32 %v10031_v23, %v2808_v5  ;;  %v10032_v8 = vld [vmem:[#allocation5_spill] sm:$0xff] }
 0x3b3   : > { %v2934_v50 = vadd.f32 %v2870_v13, %v2729_v32  ;;  %v4249_v52 = vld [vmem:[#allocation3 + $0x68] sm:$0xff]  ;;  %v3514_v44 = vpop.f32.mrb[49].mxu1  ;;  %4555 = vperm.xlu0 %6208, %v6502_v12   ;;  %4470 = vperm.xlu1 %6207, %v6500_v54   ;;  %v6504_v63 = vpop.eup %6503  ;;  %v2853_v10 = vmul.f32 %v10032_v8, %v2789_v17  ;;  %v10033_v32 = vld [vmem:[#allocation33_spill] sm:$0xff]  ;;  %v2810_v5 = vld [vmem:[#allocation3 + $0x1b0] sm:$0xff] }
 0x3b4   : > { %2964 = vst.msk [vmem:[#allocation3 + $0x78] sm:$0xff] %vm311_vm3, %v2899_v3  ;;  %v4089_v9 = vadd.f32 %v4025_v38, %v3514_v44  ;;  %6513 = vrcp.f32 %v4249_v52  ;;  %v4028_v37 = vmul.f32 %v10033_v32, %v3644_v28  ;;  %v4264_v57 = vld [vmem:[#allocation3 + $0xe0] sm:$0xff]  ;;  %v4027_v3 = vmul.f32 %v8991_v62, %v3643_v59  ;;  %v2791_v17 = vld [vmem:[#allocation3 + $0x118] sm:$0xff]  ;;  %v3646_v28 = vld [vmem:[#allocation4 + $0x1a8] sm:$0xff] }
 0x3b5   : > { %2999 = vst.msk [vmem:[#allocation3 + $0x190] sm:$0xff] %vm311_vm3, %v2934_v50  ;;  %v2691_v14 = vpop.xlane.xlu1 %2690  ;;  %v5785_v19 = vpop.f32.mrb[50].mxu0  ;;  %6515 = vrcp.f32 %v4248_v49  ;;  %v3630_v50 = vld [vmem:[#allocation4 + $0x128] sm:$0xff]  ;;  %v2858_v62 = vmul.f32 %v10034_v33, %v2794_v48  ;;  %v4250_v49 = vld [vmem:[#allocation3 + $0x70] sm:$0xff]  ;;  %v3645_v59 = vld [vmem:[#allocation4 + $0x1a0] sm:$0xff] }
 0x3b6   : > { %4154 = vst.msk [vmem:[#allocation4 + $0x188] sm:$0xff] %vm440_vm0, %v4090_v61  ;;  %v2701_v35 = vpop.xlane.xlu0 %2700  ;;  %4153 = vst.msk [vmem:[#allocation4 + $0x180] sm:$0xff] %vm440_vm0, %v4089_v9  ;;  %v2915_v31 = vadd.f32 %v2851_v55, %v2691_v14  ;;  %v6506_v41 = vpop.eup %6505  ;;  %v4076_v13 = vadd.f32 %v5785_v19, %v4012_v51  ;;  %v3629_v61 = vld [vmem:[#allocation4 + $0x120] sm:$0xff]  ;;  %v10035_v55 = vld [vmem:[#allocation68_spill] sm:$0xff]  ;;  %v4014_v51 = vmul.f32 %v8988_v11, %v3630_v50 }
 0x3b7   : > { %v2920_v30 = vadd.f32 %v2856_v21, %v2701_v35  ;;  %v4265_v0 = vld [vmem:[#allocation3 + $0xe8] sm:$0xff]  ;;  %v3379_v42 = vpop.f32.mrb[51].mxu0  ;;  %4485 = vperm.xlu0 %6208, %v6506_v41   ;;  %4550 = vperm.xlu1 %6207, %v6504_v63   ;;  %v6508_v38 = vpop.eup %6507  ;;  %v2869_v25 = vmul.f32 %v10035_v55, %v2805_v22  ;;  %v10038_v8 = vld [vmem:[#allocation36_spill] sm:$0xff]  ;;  %v4266_v32 = vld [vmem:[#allocation3 + $0xf0] sm:$0xff] }
 0x3b8   : > { %2980 = vst.msk [vmem:[#allocation3 + $0xf8] sm:$0xff] %vm311_vm3, %v2915_v31  ;;  %v4075_v36 = vadd.f32 %v4011_v27, %v3379_v42  ;;  %6517 = vrcp.f32 %v4265_v0  ;;  %v4013_v27 = vmul.f32 %v9017_v39, %v3629_v61  ;;  %v10037_v23 = vld [vmem:[#allocation10_spill] sm:$0xff]  ;;  %v3632_v22 = vld [vmem:[#allocation4 + $0x138] sm:$0xff] }
 0x3b9   : > { %2985 = vst.msk [vmem:[#allocation3 + $0x120] sm:$0xff] %vm311_vm3, %v2920_v30  ;;  %v2695_v54 = vpop.xlane.xlu1 %2694  ;;  %v5841_v53 = vpop.f32.mrb[50].mxu1  ;;  %6519 = vrcp.f32 %v4264_v57 }
 0x3ba   : > { %4140 = vst.msk [vmem:[#allocation4 + $0x118] sm:$0xff] %vm440_vm0, %v4076_v13  ;;  %v2733_v56 = vpop.xlane.xlu0 %2732  ;;  %4139 = vst.msk [vmem:[#allocation4 + $0x110] sm:$0xff] %vm440_vm0, %v4075_v36  ;;  %v2917_v12 = vadd.f32 %v2853_v10, %v2695_v54  ;;  %v6510_v52 = vpop.eup %6509  ;;  %v4092_v9 = vadd.f32 %v5841_v53, %v4028_v37  ;;  %v10036_v36 = vld [vmem:[#allocation86_spill] sm:$0xff]  ;;  %v4030_v10 = vmul.f32 %v10038_v8, %v3646_v28  ;;  %v2807_v54 = vld [vmem:[#allocation3 + $0x198] sm:$0xff] }
 0x3bb   : > { %v2936_v15 = vadd.f32 %v2872_v4, %v2733_v56  ;;  %v4251_v44 = vld [vmem:[#allocation3 + $0x78] sm:$0xff]  ;;  %v3524_v16 = vpop.f32.mrb[51].mxu1  ;;  %4565 = vperm.xlu0 %6208, %v6510_v52   ;;  %4480 = vperm.xlu1 %6207, %v6508_v38   ;;  %v6512_v63 = vpop.eup %6511  ;;  %v2874_v39 = vmul.f32 %v10036_v36, %v2810_v5  ;;  %v2855_v4 = vmul.f32 %v10037_v23, %v2791_v17  ;;  %v2796_v56 = vld [vmem:[#allocation3 + $0x140] sm:$0xff]  ;;  %v3631_v53 = vld [vmem:[#allocation4 + $0x130] sm:$0xff] }
 0x3bc   : > { %2982 = vst.msk [vmem:[#allocation3 + $0x108] sm:$0xff] %vm311_vm3, %v2917_v12  ;;  %v4091_v21 = vadd.f32 %v4027_v3, %v3524_v16  ;;  %6521 = vrcp.f32 %v4251_v44  ;;  %v4029_v38 = vmul.f32 %v9021_v7, %v3645_v59  ;;  %v10039_v16 = vld [vmem:[#allocation22_spill] sm:$0xff]  ;;  %v3648_v17 = vld [vmem:[#allocation4 + $0x1b8] sm:$0xff] }
 0x3bd   : > { %3001 = vst.msk [vmem:[#allocation3 + $0x1a0] sm:$0xff] %vm311_vm3, %v2936_v15  ;;  %v2727_v14 = vpop.xlane.xlu1 %2726  ;;  %v5788_v19 = vpop.f32.mrb[52].mxu0  ;;  %6523 = vrcp.f32 %v4250_v49  ;;  %v2860_v7 = vmul.f32 %v10039_v16, %v2796_v56  ;;  %v2809_v56 = vld [vmem:[#allocation3 + $0x1a8] sm:$0xff]  ;;  %v10048_v16 = vld [vmem:[#allocation77_spill] sm:$0xff] }
 0x3be   : > { %4156 = vst.msk [vmem:[#allocation4 + $0x198] sm:$0xff] %vm440_vm0, %v4092_v9  ;;  %v2705_v35 = vpop.xlane.xlu0 %2704  ;;  %4155 = vst.msk [vmem:[#allocation4 + $0x190] sm:$0xff] %vm440_vm0, %v4091_v21  ;;  %v2933_v31 = vadd.f32 %v2869_v25, %v2727_v14  ;;  %v6514_v41 = vpop.eup %6513  ;;  %v4078_v0 = vadd.f32 %v5788_v19, %v4014_v51  ;;  %v10040_v21 = vld [vmem:[#allocation76_spill] sm:$0xff]  ;;  %v4268_v25 = vld [vmem:[#allocation3 + $0x100] sm:$0xff] }
 0x3bf   : > { %v2922_v30 = vadd.f32 %v2858_v62, %v2705_v35  ;;  %v4267_v11 = vld [vmem:[#allocation3 + $0xf8] sm:$0xff]  ;;  %v3389_v13 = vpop.f32.mrb[53].mxu0  ;;  %4495 = vperm.xlu0 %6208, %v6514_v41   ;;  %4560 = vperm.xlu1 %6207, %v6512_v63   ;;  %v6516_v48 = vpop.eup %6515  ;;  %v2871_v33 = vmul.f32 %v10040_v21, %v2807_v54  ;;  %v10041_v62 = vld [vmem:[#allocation35_spill] sm:$0xff]  ;;  %v2812_v35 = vld [vmem:[#allocation3 + $0x1c0] sm:$0xff] }
 0x3c0   : > { %2998 = vst.msk [vmem:[#allocation3 + $0x188] sm:$0xff] %vm311_vm3, %v2933_v31  ;;  %v4077_v42 = vadd.f32 %v4013_v27, %v3389_v13  ;;  %6525 = vrcp.f32 %v4267_v11  ;;  %v4016_v55 = vmul.f32 %v10041_v62, %v3632_v22  ;;  %v2793_v14 = vld [vmem:[#allocation3 + $0x128] sm:$0xff]  ;;  %v10042_v63 = vld [vmem:[#allocation37_spill] sm:$0xff]  ;;  %v3647_v41 = vld [vmem:[#allocation4 + $0x1b0] sm:$0xff] }
 0x3c1   : > { %2987 = vst.msk [vmem:[#allocation3 + $0x130] sm:$0xff] %vm311_vm3, %v2922_v30  ;;  %v2699_v57 = vpop.xlane.xlu1 %2698  ;;  %v5844_v15 = vpop.f32.mrb[52].mxu1  ;;  %6527 = vrcp.f32 %v4266_v32  ;;  %v4015_v28 = vmul.f32 %v10042_v63, %v3631_v53  ;;  %v4270_v21 = vld [vmem:[#allocation3 + $0x110] sm:$0xff] }
 0x3c2   : > { %4142 = vst.msk [vmem:[#allocation4 + $0x128] sm:$0xff] %vm440_vm0, %v4078_v0  ;;  %v2737_v37 = vpop.xlane.xlu0 %2736  ;;  %4141 = vst.msk [vmem:[#allocation4 + $0x120] sm:$0xff] %vm440_vm0, %v4077_v42  ;;  %v2919_v3 = vadd.f32 %v2855_v4, %v2699_v57  ;;  %v6518_v12 = vpop.eup %6517  ;;  %v4094_v61 = vadd.f32 %v5844_v15, %v4030_v10  ;;  %v10043_v42 = vld [vmem:[#allocation23_spill] sm:$0xff]  ;;  %v10045_v4 = vld [vmem:[#allocation38_spill] sm:$0xff] }
 0x3c3   : > { %v2938_v50 = vadd.f32 %v2874_v39, %v2737_v37  ;;  %v4269_v52 = vld [vmem:[#allocation3 + $0x108] sm:$0xff]  ;;  %v3534_v44 = vpop.f32.mrb[53].mxu1  ;;  %4575 = vperm.xlu0 %6208, %v6518_v12   ;;  %4490 = vperm.xlu1 %6207, %v6516_v48   ;;  %v6520_v5 = vpop.eup %6519  ;;  %v2876_v36 = vmul.f32 %v10043_v42, %v2812_v35  ;;  %v10044_v39 = vld [vmem:[#allocation11_spill] sm:$0xff]  ;;  %v4032_v8 = vmul.f32 %v10045_v4, %v3648_v17  ;;  %v4284_v10 = vld [vmem:[#allocation3 + $0x180] sm:$0xff] }
 0x3c4   : > { %2984 = vst.msk [vmem:[#allocation3 + $0x118] sm:$0xff] %vm311_vm3, %v2919_v3  ;;  %v4093_v9 = vadd.f32 %v4029_v38, %v3534_v44  ;;  %6529 = vrcp.f32 %v4269_v52  ;;  %v2857_v23 = vmul.f32 %v10044_v39, %v2793_v14  ;;  %v2798_v57 = vld [vmem:[#allocation3 + $0x150] sm:$0xff]  ;;  %v10046_v48 = vld [vmem:[#allocation40_spill] sm:$0xff]  ;;  %v10049_v17 = vld [vmem:[#allocation97_spill] sm:$0xff] }
 0x3c5   : > { %3003 = vst.msk [vmem:[#allocation3 + $0x1b0] sm:$0xff] %vm311_vm3, %v2938_v50  ;;  %v2731_v49 = vpop.xlane.xlu1 %2730  ;;  %v5791_v31 = vpop.f32.mrb[54].mxu0  ;;  %6531 = vrcp.f32 %v4268_v25  ;;  %v4031_v22 = vmul.f32 %v10046_v48, %v3647_v41  ;;  %v10047_v44 = vld [vmem:[#allocation28_spill] sm:$0xff]  ;;  %v2800_v41 = vld [vmem:[#allocation3 + $0x160] sm:$0xff]  ;;  %v10051_v4 = vld [vmem:[#allocation107_spill] sm:$0xff] }
 0x3c6   : > { %4158 = vst.msk [vmem:[#allocation4 + $0x1a8] sm:$0xff] %vm440_vm0, %v4094_v61  ;;  %v2709_v51 = vpop.xlane.xlu0 %2708  ;;  %4157 = vst.msk [vmem:[#allocation4 + $0x1a0] sm:$0xff] %vm440_vm0, %v4093_v9  ;;  %v2935_v30 = vadd.f32 %v2871_v33, %v2731_v49  ;;  %v6522_v19 = vpop.eup %6521  ;;  %v4080_v11 = vadd.f32 %v5791_v31, %v4016_v55  ;;  %v2862_v9 = vmul.f32 %v10047_v44, %v2798_v57  ;;  %v2814_v55 = vld [vmem:[#allocation3 + $0x1d0] sm:$0xff]  ;;  %v2795_v25 = vld [vmem:[#allocation3 + $0x138] sm:$0xff] }
 0x3c7   : > { %v2924_v27 = vadd.f32 %v2860_v7, %v2709_v51  ;;  %v4285_v59 = vld [vmem:[#allocation3 + $0x188] sm:$0xff]  ;;  %v3399_v0 = vpop.f32.mrb[55].mxu0  ;;  %4505 = vperm.xlu0 %6208, %v6522_v19   ;;  %4570 = vperm.xlu1 %6207, %v6520_v5   ;;  %v6524_v54 = vpop.eup %6523  ;;  %v2873_v7 = vmul.f32 %v10048_v16, %v2809_v56  ;;  %v2878_v63 = vmul.f32 %v10049_v17, %v2814_v55  ;;  %v3633_v39 = vld [vmem:[#allocation4 + $0x140] sm:$0xff] }
 0x3c8   : > { %3000 = vst.msk [vmem:[#allocation3 + $0x198] sm:$0xff] %vm311_vm3, %v2935_v30  ;;  %v4079_v13 = vadd.f32 %v4015_v28, %v3399_v0  ;;  %6533 = vrcp.f32 %v4285_v59  ;;  %v10050_v28 = vld [vmem:[#allocation14_spill] sm:$0xff]  ;;  %v4286_v30 = vld [vmem:[#allocation3 + $0x190] sm:$0xff]  ;;  %v2811_v59 = vld [vmem:[#allocation3 + $0x1b8] sm:$0xff] }
 0x3c9   : > { %2989 = vst.msk [vmem:[#allocation3 + $0x140] sm:$0xff] %vm311_vm3, %v2924_v27  ;;  %v2703_v37 = vpop.xlane.xlu1 %2702  ;;  %v5847_v3 = vpop.f32.mrb[54].mxu1  ;;  %6535 = vrcp.f32 %v4284_v10  ;;  %v2859_v27 = vmul.f32 %v10050_v28, %v2795_v25  ;;  %v3634_v0 = vld [vmem:[#allocation4 + $0x148] sm:$0xff]  ;;  %v10052_v10 = vld [vmem:[#allocation15_spill] sm:$0xff]  ;;  %v4272_v57 = vld [vmem:[#allocation3 + $0x120] sm:$0xff] }
 0x3ca   : > { %4144 = vst.msk [vmem:[#allocation4 + $0x138] sm:$0xff] %vm440_vm0, %v4080_v11  ;;  %v2741_v32 = vpop.xlane.xlu0 %2740  ;;  %4143 = vst.msk [vmem:[#allocation4 + $0x130] sm:$0xff] %vm440_vm0, %v4079_v13  ;;  %v2921_v50 = vadd.f32 %v2857_v23, %v2703_v37  ;;  %v6526_v15 = vpop.eup %6525  ;;  %v4096_v53 = vadd.f32 %v5847_v3, %v4032_v8  ;;  %v2864_v8 = vmul.f32 %v10051_v4, %v2800_v41  ;;  %v2816_v48 = vld [vmem:[#allocation3 + $0x1e0] sm:$0xff]  ;;  %v10055_v41 = vld [vmem:[#allocation119_spill] sm:$0xff] }
 0x3cb   : > { %v2940_v38 = vadd.f32 %v2876_v36, %v2741_v32  ;;  %v4271_v12 = vld [vmem:[#allocation3 + $0x118] sm:$0xff]  ;;  %v3544_v52 = vpop.f32.mrb[55].mxu1  ;;  %4585 = vperm.xlu0 %6208, %v6526_v15   ;;  %4500 = vperm.xlu1 %6207, %v6524_v54   ;;  %v6528_v51 = vpop.eup %6527  ;;  %v2875_v32 = vmul.f32 %v10052_v10, %v2811_v59  ;;  %v4018_v37 = vmul.f32 %v9111_v6, %v3634_v0  ;;  %v4288_v55 = vld [vmem:[#allocation3 + $0x1a0] sm:$0xff]  ;;  %v4274_v0 = vld [vmem:[#allocation3 + $0x130] sm:$0xff] }
 0x3cc   : > { %2986 = vst.msk [vmem:[#allocation3 + $0x128] sm:$0xff] %vm311_vm3, %v2921_v50  ;;  %v4095_v61 = vadd.f32 %v4031_v22, %v3544_v52  ;;  %6537 = vrcp.f32 %v4271_v12  ;;  %v2797_v22 = vld [vmem:[#allocation3 + $0x148] sm:$0xff]  ;;  %v4017_v3 = vmul.f32 %v9143_v47, %v3633_v39  ;;  %v2799_v39 = vld [vmem:[#allocation3 + $0x158] sm:$0xff] }
 0x3cd   : > { %3005 = vst.msk [vmem:[#allocation3 + $0x1c0] sm:$0xff] %vm311_vm3, %v2940_v38  ;;  %v2735_v62 = vpop.xlane.xlu1 %2734  ;;  %6539 = vrcp.f32 %v4270_v21  ;;  %v3650_v50 = vld [vmem:[#allocation4 + $0x1c8] sm:$0xff] }
 0x3ce   : > { %4160 = vst.msk [vmem:[#allocation4 + $0x1b8] sm:$0xff] %vm440_vm0, %v4096_v53  ;;  %v2713_v33 = vpop.xlane.xlu0 %2712  ;;  %4159 = vst.msk [vmem:[#allocation4 + $0x1b0] sm:$0xff] %vm440_vm0, %v4095_v61  ;;  %v2937_v35 = vadd.f32 %v2873_v7, %v2735_v62  ;;  %v6530_v14 = vpop.eup %6529  ;;  %v3649_v61 = vld [vmem:[#allocation4 + $0x1c0] sm:$0xff]  ;;  %v4034_v62 = vmul.f32 %v9122_v60, %v3650_v50 }
 0x3cf   : > { %v2926_v49 = vadd.f32 %v2862_v9, %v2713_v33  ;;  %v4287_v5 = vld [vmem:[#allocation3 + $0x198] sm:$0xff]  ;;  %4595 = vperm.xlu0 %6208, %v6530_v14   ;;  %4580 = vperm.xlu1 %6207, %v6528_v51   ;;  %v6532_v11 = vpop.eup %6531  ;;  %v10053_v7 = vld [vmem:[#allocation117_spill] sm:$0xff] }
 0x3d0   : > { %3002 = vst.msk [vmem:[#allocation3 + $0x1a8] sm:$0xff] %vm311_vm3, %v2937_v35  ;;  %6541 = vrcp.f32 %v4287_v5  ;;  %v2880_v21 = vmul.f32 %v10053_v7, %v2816_v48  ;;  %v10054_v33 = vld [vmem:[#allocation17_spill] sm:$0xff]  ;;  %v2813_v35 = vld [vmem:[#allocation3 + $0x1c8] sm:$0xff]  ;;  %v4033_v5 = vmul.f32 %v9151_v43, %v3649_v61  ;;  %v10056_v43 = vld [vmem:[#allocation20_spill] sm:$0xff] }
 0x3d1   : > { %2991 = vst.msk [vmem:[#allocation3 + $0x150] sm:$0xff] %vm311_vm3, %v2926_v49  ;;  %v2707_v19 = vpop.xlane.xlu1 %2706  ;;  %6543 = vrcp.f32 %v4286_v30  ;;  %v2861_v47 = vmul.f32 %v10054_v33, %v2797_v22  ;;  %v2802_v49 = vld [vmem:[#allocation3 + $0x170] sm:$0xff]  ;;  %v3636_v48 = vld [vmem:[#allocation4 + $0x158] sm:$0xff]  ;;  %v4276_v33 = vld [vmem:[#allocation3 + $0x140] sm:$0xff] }
 0x3d2   : > { %v2745_v31 = vpop.xlane.xlu0 %2744  ;;  %v2923_v42 = vadd.f32 %v2859_v27, %v2707_v19  ;;  %v6534_v36 = vpop.eup %6533  ;;  %v2866_v59 = vmul.f32 %v10055_v41, %v2802_v49  ;;  %v4290_v22 = vld [vmem:[#allocation3 + $0x1b0] sm:$0xff]  ;;  %v3652_v7 = vld [vmem:[#allocation4 + $0x1d8] sm:$0xff] }
 0x3d3   : > { %v2942_v13 = vadd.f32 %v2878_v63, %v2745_v31  ;;  %v4273_v23 = vld [vmem:[#allocation3 + $0x128] sm:$0xff]  ;;  %4675 = vperm.xlu0 %6208, %v6534_v36   ;;  %4590 = vperm.xlu1 %6207, %v6532_v11   ;;  %v6536_v38 = vpop.eup %6535  ;;  %v2877_v11 = vmul.f32 %v10056_v43, %v2813_v35  ;;  %v2818_v36 = vld [vmem:[#allocation3 + $0x1f0] sm:$0xff] }
 0x3d4   : > { %2988 = vst.msk [vmem:[#allocation3 + $0x138] sm:$0xff] %vm311_vm3, %v2923_v42  ;;  %6545 = vrcp.f32 %v4273_v23 }
 0x3d5   : > { %3007 = vst.msk [vmem:[#allocation3 + $0x1d0] sm:$0xff] %vm311_vm3, %v2942_v13  ;;  %v2739_v54 = vpop.xlane.xlu1 %2738  ;;  %v5794_v53 = vpop.f32.mrb[56].mxu0  ;;  %6547 = vrcp.f32 %v4272_v57 }
 0x3d6   : > { %v2717_v56 = vpop.xlane.xlu0 %2716  ;;  %v2939_v12 = vadd.f32 %v2875_v32, %v2739_v54  ;;  %v6538_v52 = vpop.eup %6537  ;;  %v4082_v9 = vadd.f32 %v5794_v53, %v4018_v37  ;;  %v10057_v37 = vld [vmem:[#allocation121_spill] sm:$0xff] }
 0x3d7   : > { %v2928_v15 = vadd.f32 %v2864_v8, %v2717_v56  ;;  %v4289_v44 = vld [vmem:[#allocation3 + $0x1a8] sm:$0xff]  ;;  %v3409_v16 = vpop.f32.mrb[57].mxu0  ;;  %4605 = vperm.xlu0 %6208, %v6538_v52   ;;  %4670 = vperm.xlu1 %6207, %v6536_v38   ;;  %v6540_v14 = vpop.eup %6539  ;;  %v2882_v57 = vmul.f32 %v10057_v37, %v2818_v36  ;;  %v10058_v56 = vld [vmem:[#allocation19_spill] sm:$0xff] }
 0x3d8   : > { %3004 = vst.msk [vmem:[#allocation3 + $0x1b8] sm:$0xff] %vm311_vm3, %v2939_v12  ;;  %v4081_v6 = vadd.f32 %v4017_v3, %v3409_v16  ;;  %6549 = vrcp.f32 %v4289_v44  ;;  %v2863_v54 = vmul.f32 %v10058_v56, %v2799_v39  ;;  %v2815_v3 = vld [vmem:[#allocation3 + $0x1d8] sm:$0xff]  ;;  %v3635_v12 = vld [vmem:[#allocation4 + $0x150] sm:$0xff]  ;;  %v3638_v56 = vld [vmem:[#allocation4 + $0x168] sm:$0xff] }
 0x3d9   : > { %2993 = vst.msk [vmem:[#allocation3 + $0x160] sm:$0xff] %vm311_vm3, %v2928_v15  ;;  %v2711_v51 = vpop.xlane.xlu1 %2710  ;;  %v5850_v28 = vpop.f32.mrb[56].mxu1  ;;  %6551 = vrcp.f32 %v4288_v55  ;;  %v10059_v16 = vld [vmem:[#allocation88_spill] sm:$0xff]  ;;  %v2801_v55 = vld [vmem:[#allocation3 + $0x168] sm:$0xff]  ;;  %v10062_v37 = vld [vmem:[#allocation27_spill] sm:$0xff] }
 0x3da   : > { %4146 = vst.msk [vmem:[#allocation4 + $0x148] sm:$0xff] %vm440_vm0, %v4082_v9  ;;  %v2749_v25 = vpop.xlane.xlu0 %2748  ;;  %4145 = vst.msk [vmem:[#allocation4 + $0x140] sm:$0xff] %vm440_vm0, %v4081_v6  ;;  %v2925_v63 = vadd.f32 %v2861_v47, %v2711_v51  ;;  %v6542_v27 = vpop.eup %6541  ;;  %v4098_v31 = vadd.f32 %v5850_v28, %v4034_v62  ;;  %v4020_v9 = vmul.f32 %v9129_v46, %v3636_v48  ;;  %v3651_v51 = vld [vmem:[#allocation4 + $0x1d0] sm:$0xff]  ;;  %v2803_v39 = vld [vmem:[#allocation3 + $0x178] sm:$0xff] }
 0x3db   : > { %v2944_v17 = vadd.f32 %v2880_v21, %v2749_v25  ;;  %v4275_v30 = vld [vmem:[#allocation3 + $0x138] sm:$0xff]  ;;  %v3554_v60 = vpop.f32.mrb[57].mxu1  ;;  %4685 = vperm.xlu0 %6208, %v6542_v27   ;;  %4600 = vperm.xlu1 %6207, %v6540_v14   ;;  %v6544_v23 = vpop.eup %6543  ;;  %v2879_v6 = vmul.f32 %v10059_v16, %v2815_v3  ;;  %v4019_v21 = vmul.f32 %v9161_v18, %v3635_v12  ;;  %v10060_v18 = vld [vmem:[#allocation21_spill] sm:$0xff] }
 0x3dc   : > { %2990 = vst.msk [vmem:[#allocation3 + $0x148] sm:$0xff] %vm311_vm3, %v2925_v63  ;;  %v4097_v19 = vadd.f32 %v4033_v5, %v3554_v60  ;;  %6553 = vrcp.f32 %v4275_v30  ;;  %v4036_v63 = vmul.f32 %v9140_v2, %v3652_v7  ;;  %v2865_v28 = vmul.f32 %v10060_v18, %v2801_v55  ;;  %v4292_v30 = vld [vmem:[#allocation3 + $0x1c0] sm:$0xff]  ;;  %v2819_v48 = vld [vmem:[#allocation3 + $0x1f8] sm:$0xff] }
 0x3dd   : > { %3009 = vst.msk [vmem:[#allocation3 + $0x1e0] sm:$0xff] %vm311_vm3, %v2944_v17  ;;  %v2743_v42 = vpop.xlane.xlu1 %2742  ;;  %6555 = vrcp.f32 %v4274_v0  ;;  %v4035_v27 = vmul.f32 %v9170_v29, %v3651_v51  ;;  %v10061_v29 = vld [vmem:[#allocation89_spill] sm:$0xff] }
 0x3de   : > { %4162 = vst.msk [vmem:[#allocation4 + $0x1c8] sm:$0xff] %vm440_vm0, %v4098_v31  ;;  %v2721_v13 = vpop.xlane.xlu0 %2720  ;;  %4161 = vst.msk [vmem:[#allocation4 + $0x1c0] sm:$0xff] %vm440_vm0, %v4097_v19  ;;  %v2941_v8 = vadd.f32 %v2877_v11, %v2743_v42  ;;  %v6546_v10 = vpop.eup %6545  ;;  %v2817_v19 = vld [vmem:[#allocation3 + $0x1e8] sm:$0xff] }
 0x3df   : > { %v2930_v4 = vadd.f32 %v2866_v59, %v2721_v13  ;;  %v4291_v32 = vld [vmem:[#allocation3 + $0x1b8] sm:$0xff]  ;;  %4615 = vperm.xlu0 %6208, %v6546_v10   ;;  %4680 = vperm.xlu1 %6207, %v6544_v23   ;;  %v6548_v15 = vpop.eup %6547  ;;  %v2881_v42 = vmul.f32 %v10061_v29, %v2817_v19 }
 0x3e0   : > { %3006 = vst.msk [vmem:[#allocation3 + $0x1c8] sm:$0xff] %vm311_vm3, %v2941_v8  ;;  %6557 = vrcp.f32 %v4291_v32 }
 0x3e1   : > { %2995 = vst.msk [vmem:[#allocation3 + $0x170] sm:$0xff] %vm311_vm3, %v2930_v4  ;;  %v2715_v50 = vpop.xlane.xlu1 %2714  ;;  %6559 = vrcp.f32 %v4290_v22  ;;  %v4278_v4 = vld [vmem:[#allocation3 + $0x150] sm:$0xff] }
 0x3e2   : > { %v2753_v38 = vpop.xlane.xlu0 %2752  ;;  %v2927_v52 = vadd.f32 %v2863_v54, %v2715_v50  ;;  %v6550_v61 = vpop.eup %6549  ;;  %v4294_v50 = vld [vmem:[#allocation3 + $0x1d0] sm:$0xff] }
 0x3e3   : > { %v2946_v53 = vadd.f32 %v2882_v57, %v2753_v38  ;;  %v4277_v44 = vld [vmem:[#allocation3 + $0x148] sm:$0xff]  ;;  %4695 = vperm.xlu0 %6208, %v6550_v61   ;;  %4610 = vperm.xlu1 %6207, %v6548_v15   ;;  %v6552_v25 = vpop.eup %6551  ;;  %v2867_v57 = vmul.f32 %v10062_v37, %v2803_v39  ;;  %v3637_v38 = vld [vmem:[#allocation4 + $0x160] sm:$0xff]  ;;  %v3655_v39 = vld [vmem:[#allocation4 + $0x1f0] sm:$0xff] }
 0x3e4   : > { %2992 = vst.msk [vmem:[#allocation3 + $0x158] sm:$0xff] %vm311_vm3, %v2927_v52  ;;  %6561 = vrcp.f32 %v4277_v44  ;;  %v10063_v52 = vld [vmem:[#allocation103_spill] sm:$0xff]  ;;  %v3654_v44 = vld [vmem:[#allocation4 + $0x1e8] sm:$0xff] }
 0x3e5   : > { %3011 = vst.msk [vmem:[#allocation3 + $0x1f0] sm:$0xff] %vm311_vm3, %v2946_v53  ;;  %v5797_v47 = vpop.f32.mrb[58].mxu0  ;;  %v2747_v62 = vpop.xlane.xlu1 %2746  ;;  %6563 = vrcp.f32 %v4276_v33  ;;  %v4022_v53 = vmul.f32 %v9149_v58, %v3638_v56  ;;  %v2883_v61 = vmul.f32 %v10063_v52, %v2819_v48  ;;  %v4280_v33 = vld [vmem:[#allocation3 + $0x160] sm:$0xff]  ;;  %v4367_v52 = vld [vmem:[#allocation4 + $0x18] sm:$0xff] }
 0x3e6   : > { %v4084_v46 = vadd.f32 %v5797_v47, %v4020_v9  ;;  %v2943_v49 = vadd.f32 %v2879_v6, %v2747_v62  ;;  %v3419_v35 = vpop.f32.mrb[59].mxu0  ;;  %v6554_v14 = vpop.eup %6553  ;;  %v4021_v9 = vmul.f32 %v9178_v26, %v3637_v38 }
 0x3e7   : > { %v4293_v5 = vld [vmem:[#allocation3 + $0x1c8] sm:$0xff]  ;;  %v4083_v17 = vadd.f32 %v4019_v21, %v3419_v35  ;;  %4625 = vperm.xlu0 %6208, %v6554_v14   ;;  %4690 = vperm.xlu1 %6207, %v6552_v25   ;;  %v6556_v41 = vpop.eup %6555  ;;  %v3653_v21 = vld [vmem:[#allocation4 + $0x1e0] sm:$0xff] }
 0x3e8   : > { %4148 = vst.msk [vmem:[#allocation4 + $0x158] sm:$0xff] %vm440_vm0, %v4084_v46  ;;  %6565 = vrcp.f32 %v4293_v5  ;;  %v4038_v46 = vmul.f32 %v9159_v1, %v3654_v44  ;;  %v4037_v26 = vmul.f32 %v9185_v20, %v3653_v21  ;;  %v4296_v14 = vld [vmem:[#allocation3 + $0x1e0] sm:$0xff]  ;;  %v4365_v1 = vld [vmem:[#allocation4 + $0x8] sm:$0xff] }
 0x3e9   : > { %3008 = vst.msk [vmem:[#allocation3 + $0x1d8] sm:$0xff] %vm311_vm3, %v2943_v49  ;;  %v5853_v31 = vpop.f32.mrb[58].mxu1  ;;  %v2719_v60 = vpop.xlane.xlu1 %2718  ;;  %6567 = vrcp.f32 %v4292_v30 }
 0x3ea   : > { %4147 = vst.msk [vmem:[#allocation4 + $0x150] sm:$0xff] %vm440_vm0, %v4083_v17  ;;  %v4100_v2 = vadd.f32 %v5853_v31, %v4036_v63  ;;  %v2929_v59 = vadd.f32 %v2865_v28, %v2719_v60  ;;  %v3564_v43 = vpop.f32.mrb[59].mxu1  ;;  %v6558_v11 = vpop.eup %6557  ;;  %v4282_v31 = vld [vmem:[#allocation3 + $0x170] sm:$0xff] }
 0x3eb   : > { %v4279_v0 = vld [vmem:[#allocation3 + $0x158] sm:$0xff]  ;;  %v4099_v13 = vadd.f32 %v4035_v27, %v3564_v43  ;;  %4705 = vperm.xlu0 %6208, %v6558_v11   ;;  %4620 = vperm.xlu1 %6207, %v6556_v41   ;;  %v6560_v23 = vpop.eup %6559 }
 0x3ec   : > { %4164 = vst.msk [vmem:[#allocation4 + $0x1d8] sm:$0xff] %vm440_vm0, %v4100_v2  ;;  %6569 = vrcp.f32 %v4279_v0  ;;  %v3640_v41 = vld [vmem:[#allocation4 + $0x178] sm:$0xff]  ;;  %v4298_v43 = vld [vmem:[#allocation3 + $0x1f0] sm:$0xff] }
 0x3ed   : > { %2994 = vst.msk [vmem:[#allocation3 + $0x168] sm:$0xff] %vm311_vm3, %v2929_v59  ;;  %v2751_v36 = vpop.xlane.xlu1 %2750  ;;  %v3639_v59 = vld [vmem:[#allocation4 + $0x170] sm:$0xff]  ;;  %v4024_v0 = vmul.f32 %v9168_v24, %v3640_v41  ;;  %v4039_v24 = vmul.f32 %v9202_v34, %v3655_v39  ;;  %v4389_v39 = vld [vmem:[#allocation4 + $0xc8] sm:$0xff] }
 0x3ee   : > { %4163 = vst.msk [vmem:[#allocation4 + $0x1d0] sm:$0xff] %vm440_vm0, %v4099_v13  ;;  %v2945_v8 = vadd.f32 %v2881_v42, %v2751_v36  ;;  %v6562_v10 = vpop.eup %6561  ;;  %v3656_v13 = vld [vmem:[#allocation4 + $0x1f8] sm:$0xff]  ;;  %v4023_v29 = vmul.f32 %v9197_v45, %v3639_v59  ;;  %v4386_v59 = vld [vmem:[#allocation4 + $0xb0] sm:$0xff] }
 0x3ef   : > { %4635 = vperm.xlu0 %6208, %v6562_v10   ;;  %4700 = vperm.xlu1 %6207, %v6560_v23   ;;  %v6564_v22 = vpop.eup %6563 }
 0x3f0   : > { %v4295_v32 = vld [vmem:[#allocation3 + $0x1d8] sm:$0xff]  ;;  %3010 = vst.msk [vmem:[#allocation3 + $0x1e8] sm:$0xff] %vm311_vm3, %v2945_v8 }
 0x3f1   : > { %6571 = vrcp.f32 %v4295_v32  ;;  %v2723_v54 = vpop.xlane.xlu1 %2722  ;;  %v4040_v32 = vmul.f32 %v9176_v40, %v3656_v13 }
 0x3f2   : > { %6573 = vrcp.f32 %v4278_v4  ;;  %v2931_v3 = vadd.f32 %v2867_v57, %v2723_v54  ;;  %v6566_v15 = vpop.eup %6565 }
 0x3f3   : > { %4715 = vperm.xlu0 %6208, %v6566_v15   ;;  %4630 = vperm.xlu1 %6207, %v6564_v22   ;;  %v6568_v7 = vpop.eup %6567  ;;  %v4381_v22 = vld [vmem:[#allocation4 + $0x88] sm:$0xff] }
 0x3f4   : > { %v4281_v12 = vld [vmem:[#allocation3 + $0x168] sm:$0xff]  ;;  %2996 = vst.msk [vmem:[#allocation3 + $0x178] sm:$0xff] %vm311_vm3, %v2931_v3 }
 0x3f5   : > { %6575 = vrcp.f32 %v4281_v12  ;;  %v5800_v16 = vpop.f32.mrb[60].mxu0  ;;  %v2755_v6 = vpop.xlane.xlu1 %2754  ;;  %v4380_v12 = vld [vmem:[#allocation4 + $0x80] sm:$0xff] }
 0x3f6   : > { %6577 = vrcp.f32 %v4294_v50  ;;  %v4086_v47 = vadd.f32 %v5800_v16, %v4022_v53  ;;  %v2947_v62 = vadd.f32 %v2883_v61, %v2755_v6  ;;  %v3429_v55 = vpop.f32.mrb[61].mxu0  ;;  %v6570_v58 = vpop.eup %6569  ;;  %v4364_v50 = vld [vmem:[#allocation4] sm:$0xff]  ;;  %v4366_v16 = vld [vmem:[#allocation4 + $0x10] sm:$0xff] }
 0x3f7   : > { %v4297_v25 = vld [vmem:[#allocation3 + $0x1e8] sm:$0xff]  ;;  %v4085_v51 = vadd.f32 %v4021_v9, %v3429_v55  ;;  %4645 = vperm.xlu0 %6208, %v6570_v58   ;;  %4710 = vperm.xlu1 %6207, %v6568_v7   ;;  %v4383_v7 = vld [vmem:[#allocation4 + $0x98] sm:$0xff] }
 0x3f8   : > { %6579 = vrcp.f32 %v4297_v25  ;;  %4150 = vst.msk [vmem:[#allocation4 + $0x168] sm:$0xff] %vm440_vm0, %v4086_v47  ;;  %v4369_v58 = vld [vmem:[#allocation4 + $0x28] sm:$0xff] }
 0x3f9   : > { %3012 = vst.msk [vmem:[#allocation3 + $0x1f8] sm:$0xff] %vm311_vm3, %v2947_v62  ;;  %6581 = vrcp.f32 %v4280_v33  ;;  %v5856_v49 = vpop.f32.mrb[60].mxu1  ;;  %v4382_v62 = vld [vmem:[#allocation4 + $0x90] sm:$0xff] }
 0x3fa   : > { %4149 = vst.msk [vmem:[#allocation4 + $0x160] sm:$0xff] %vm440_vm0, %v4085_v51  ;;  %v4102_v5 = vadd.f32 %v5856_v49, %v4038_v46  ;;  %v3574_v63 = vpop.f32.mrb[61].mxu1 }
 0x3fb   : > { %v6572_v35 = vpop.eup %6571  ;;  %v4436_v17 = vpop.permute.xlu0 %4435  ;;  %v4283_v28 = vld [vmem:[#allocation3 + $0x178] sm:$0xff]  ;;  %v4101_v20 = vadd.f32 %v4037_v26, %v3574_v63  ;;  %v4368_v26 = vld [vmem:[#allocation4 + $0x20] sm:$0xff] }
 0x3fc   : > { %v6574_v18 = vpop.eup %6573  ;;  %v4749_v27 = vmul.f32 %v4436_v17, %v4365_v1  ;;  %6583 = vrcp.f32 %v4283_v28  ;;  %4166 = vst.msk [vmem:[#allocation4 + $0x1e8] sm:$0xff] %vm440_vm0, %v4102_v5  ;;  %4725 = vperm.xlu0 %6208, %v6572_v35   ;;  %v4385_v35 = vld [vmem:[#allocation4 + $0xa8] sm:$0xff]  ;;  %v4384_v17 = vld [vmem:[#allocation4 + $0xa0] sm:$0xff] }
 0x3fd   : > { %4640 = vperm.xlu1 %6207, %v6574_v18   ;;  %6585 = vrcp.f32 %v4296_v14  ;;  %4165 = vst.msk [vmem:[#allocation4 + $0x1e0] sm:$0xff] %vm440_vm0, %v4101_v20  ;;  %v4371_v18 = vld [vmem:[#allocation4 + $0x38] sm:$0xff] }
 0x3fe   : > { %4813 = vst.msk [vmem:[%s9398_s29 + $0x8] sm:$0xff] %vm440_vm0, %v4749_v27 }
 0x3ff   : > { %v6576_v30 = vpop.eup %6575 }
 0x400   : > { %v6578_v60 = vpop.eup %6577  ;;  %v4299_v19 = vld [vmem:[#allocation3 + $0x1f8] sm:$0xff]  ;;  %4655 = vperm.xlu0 %6208, %v6576_v30   ;;  %v4370_v30 = vld [vmem:[#allocation4 + $0x30] sm:$0xff] }
 0x401   : > { %6587 = vrcp.f32 %v4299_v19  ;;  %4720 = vperm.xlu1 %6207, %v6578_v60   ;;  %v4387_v60 = vld [vmem:[#allocation4 + $0xb8] sm:$0xff] }
 0x402   : > { %6589 = vrcp.f32 %v4282_v31  ;;  %v6580_v2 = vpop.eup %6579 }
 0x403   : > { %v6582_v11 = vpop.eup %6581  ;;  %6591 = vrcp.f32 %v4298_v43 }
 0x404   : > { %4735 = vperm.xlu0 %6208, %v6580_v2  }
 0x405   : > { %4650 = vperm.xlu1 %6207, %v6582_v11   ;;  %v5803_v42 = vpop.f32.mrb[62].mxu0  ;;  %v4373_v11 = vld [vmem:[#allocation4 + $0x48] sm:$0xff] }
 0x406   : > { %v6584_v36 = vpop.eup %6583  ;;  %v4088_v23 = vadd.f32 %v5803_v42, %v4024_v0  ;;  %v3439_v4 = vpop.f32.mrb[63].mxu0  ;;  %v4372_v42 = vld [vmem:[#allocation4 + $0x40] sm:$0xff] }
 0x407   : > { %v6586_v8 = vpop.eup %6585  ;;  %v4087_v10 = vadd.f32 %v4023_v29, %v3439_v4 }
 0x408   : > { %4152 = vst.msk [vmem:[#allocation4 + $0x178] sm:$0xff] %vm440_vm0, %v4088_v23  ;;  %4665 = vperm.xlu0 %6208, %v6584_v36  }
 0x409   : > { %4730 = vperm.xlu1 %6207, %v6586_v8   ;;  %4151 = vst.msk [vmem:[#allocation4 + $0x170] sm:$0xff] %vm440_vm0, %v4087_v10  ;;  %v5859_v45 = vpop.f32.mrb[62].mxu1  ;;  %v4388_v10 = vld [vmem:[#allocation4 + $0xc0] sm:$0xff] }
 0x40a   : > { %v4104_v57 = vadd.f32 %v5859_v45, %v4040_v32  ;;  %v3584_v56 = vpop.f32.mrb[63].mxu1 }
 0x40b   : > { %v6588_v37 = vpop.eup %6587  ;;  %v4103_v48 = vadd.f32 %v4039_v24, %v3584_v56  ;;  %v4375_v24 = vld [vmem:[#allocation4 + $0x58] sm:$0xff]  ;;  %v4374_v56 = vld [vmem:[#allocation4 + $0x50] sm:$0xff] }
 0x40c   : > { %v6590_v54 = vpop.eup %6589  ;;  %4168 = vst.msk [vmem:[#allocation4 + $0x1f8] sm:$0xff] %vm440_vm0, %v4104_v57  ;;  %4745 = vperm.xlu0 %6208, %v6588_v37  }
 0x40d   : > { %4660 = vperm.xlu1 %6207, %v6590_v54   ;;  %4167 = vst.msk [vmem:[#allocation4 + $0x1f0] sm:$0xff] %vm440_vm0, %v4103_v48  ;;  %v6592_v40 = vpop.eup %6591  ;;  %v4391_v48 = vld [vmem:[#allocation4 + $0xd8] sm:$0xff] }
 0x40e   : > { %v4516_v34 = vpop.permute.xlu0 %4515 }
 0x40f   : > { %v4765_v38 = vmul.f32 %v4516_v34, %v4381_v22 }
 0x411   : > { %4740 = vperm.xlu1 %6207, %v6592_v40   ;;  %4829 = vst.msk [vmem:[%s9398_s29 + $0x88] sm:$0xff] %vm440_vm0, %v4765_v38  ;;  %v4390_v38 = vld [vmem:[#allocation4 + $0xd0] sm:$0xff] }
 0x412   : > { %v4431_v3 = vpop.permute.xlu1 %4430 }
 0x413   : > { %v4748_v15 = vmul.f32 %v4431_v3, %v4364_v50  ;;  %v4377_v3 = vld [vmem:[#allocation4 + $0x68] sm:$0xff] }
 0x415   : > { %4812 = vst.msk [vmem:[%s9398_s29] sm:$0xff] %vm440_vm0, %v4748_v15 }
 0x416   : > { %v4511_v53 = vpop.permute.xlu1 %4510  ;;  %v4446_v61 = vpop.permute.xlu0 %4445 }
 0x417   : > { %v4764_v44 = vmul.f32 %v4511_v53, %v4380_v12  ;;  %v4751_v9 = vmul.f32 %v4446_v61, %v4367_v52  ;;  %v4376_v52 = vld [vmem:[#allocation4 + $0x60] sm:$0xff] }
 0x419   : > { %4828 = vst.msk [vmem:[%s9398_s29 + $0x80] sm:$0xff] %vm440_vm0, %v4764_v44  ;;  %4815 = vst.msk [vmem:[%s9398_s29 + $0x18] sm:$0xff] %vm440_vm0, %v4751_v9  ;;  %v4393_v44 = vld [vmem:[#allocation4 + $0xe8] sm:$0xff] }
 0x41a   : > { %v4441_v6 = vpop.permute.xlu1 %4440  ;;  %v4526_v21 = vpop.permute.xlu0 %4525 }
 0x41b   : > { %v4750_v33 = vmul.f32 %v4441_v6, %v4366_v16  ;;  %v4767_v47 = vmul.f32 %v4526_v21, %v4383_v7  ;;  %v4392_v7 = vld [vmem:[#allocation4 + $0xe0] sm:$0xff] }
 0x41d   : > { %4814 = vst.msk [vmem:[%s9398_s29 + $0x10] sm:$0xff] %vm440_vm0, %v4750_v33  ;;  %4831 = vst.msk [vmem:[%s9398_s29 + $0x98] sm:$0xff] %vm440_vm0, %v4767_v47  ;;  %v4379_v33 = vld [vmem:[#allocation4 + $0x78] sm:$0xff] }
 0x41e   : > { %v4521_v55 = vpop.permute.xlu1 %4520  ;;  %v4456_v25 = vpop.permute.xlu0 %4455 }
 0x41f   : > { %v4766_v51 = vmul.f32 %v4521_v55, %v4382_v62  ;;  %v4753_v46 = vmul.f32 %v4456_v25, %v4369_v58  ;;  %v4378_v58 = vld [vmem:[#allocation4 + $0x70] sm:$0xff] }
 0x421   : > { %4830 = vst.msk [vmem:[%s9398_s29 + $0x90] sm:$0xff] %vm440_vm0, %v4766_v51  ;;  %4817 = vst.msk [vmem:[%s9398_s29 + $0x28] sm:$0xff] %vm440_vm0, %v4753_v46  ;;  %v4395_v51 = vld [vmem:[#allocation4 + $0xf8] sm:$0xff] }
 0x422   : > { %v4451_v49 = vpop.permute.xlu1 %4450  ;;  %v4536_v14 = vpop.permute.xlu0 %4535 }
 0x423   : > { %v4752_v5 = vmul.f32 %v4451_v49, %v4368_v26  ;;  %v4769_v1 = vmul.f32 %v4536_v14, %v4385_v35  ;;  %v4394_v35 = vld [vmem:[#allocation4 + $0xf0] sm:$0xff] }
 0x425   : > { %4816 = vst.msk [vmem:[%s9398_s29 + $0x20] sm:$0xff] %vm440_vm0, %v4752_v5  ;;  %4833 = vst.msk [vmem:[%s9398_s29 + $0xa8] sm:$0xff] %vm440_vm0, %v4769_v1  ;;  %v4397_v5 = vld [vmem:[#allocation4 + $0x108] sm:$0xff] }
 0x426   : > { %v4531_v63 = vpop.permute.xlu1 %4530  ;;  %v4466_v28 = vpop.permute.xlu0 %4465 }
 0x427   : > { %v4768_v27 = vmul.f32 %v4531_v63, %v4384_v17  ;;  %v4755_v20 = vmul.f32 %v4466_v28, %v4371_v18  ;;  %v4396_v18 = vld [vmem:[#allocation4 + $0x100] sm:$0xff] }
 0x429   : > { %4832 = vst.msk [vmem:[%s9398_s29 + $0xa0] sm:$0xff] %vm440_vm0, %v4768_v27  ;;  %4819 = vst.msk [vmem:[%s9398_s29 + $0x38] sm:$0xff] %vm440_vm0, %v4755_v20  ;;  %v4413_v27 = vld [vmem:[#allocation4 + $0x188] sm:$0xff] }
 0x42a   : > { %v4461_v31 = vpop.permute.xlu1 %4460  ;;  %v4546_v19 = vpop.permute.xlu0 %4545 }
 0x42b   : > { %v4754_v41 = vmul.f32 %v4461_v31, %v4370_v30  ;;  %v4771_v2 = vmul.f32 %v4546_v19, %v4387_v60  ;;  %v4412_v60 = vld [vmem:[#allocation4 + $0x180] sm:$0xff] }
 0x42d   : > { %4818 = vst.msk [vmem:[%s9398_s29 + $0x30] sm:$0xff] %vm440_vm0, %v4754_v41  ;;  %4835 = vst.msk [vmem:[%s9398_s29 + $0xb8] sm:$0xff] %vm440_vm0, %v4771_v2  ;;  %v4399_v41 = vld [vmem:[#allocation4 + $0x118] sm:$0xff] }
 0x42e   : > { %v4541_v43 = vpop.permute.xlu1 %4540  ;;  %v4476_v0 = vpop.permute.xlu0 %4475 }
 0x42f   : > { %v4770_v13 = vmul.f32 %v4541_v43, %v4386_v59  ;;  %v4757_v29 = vmul.f32 %v4476_v0, %v4373_v11  ;;  %v4398_v11 = vld [vmem:[#allocation4 + $0x110] sm:$0xff] }
 0x431   : > { %4834 = vst.msk [vmem:[%s9398_s29 + $0xb0] sm:$0xff] %vm440_vm0, %v4770_v13  ;;  %4821 = vst.msk [vmem:[%s9398_s29 + $0x48] sm:$0xff] %vm440_vm0, %v4757_v29  ;;  %v4415_v13 = vld [vmem:[#allocation4 + $0x198] sm:$0xff] }
 0x432   : > { %v4471_v36 = vpop.permute.xlu1 %4470  ;;  %v4556_v23 = vpop.permute.xlu0 %4555 }
 0x433   : > { %v4756_v4 = vmul.f32 %v4471_v36, %v4372_v42  ;;  %v4773_v8 = vmul.f32 %v4556_v23, %v4389_v39  ;;  %v4414_v39 = vld [vmem:[#allocation4 + $0x190] sm:$0xff] }
 0x435   : > { %4820 = vst.msk [vmem:[%s9398_s29 + $0x40] sm:$0xff] %vm440_vm0, %v4756_v4  ;;  %4837 = vst.msk [vmem:[%s9398_s29 + $0xc8] sm:$0xff] %vm440_vm0, %v4773_v8  ;;  %v4401_v4 = vld [vmem:[#allocation4 + $0x128] sm:$0xff] }
 0x436   : > { %v4551_v32 = vpop.permute.xlu1 %4550  ;;  %v4486_v45 = vpop.permute.xlu0 %4485 }
 0x437   : > { %v4772_v37 = vmul.f32 %v4551_v32, %v4388_v10  ;;  %v4759_v57 = vmul.f32 %v4486_v45, %v4375_v24  ;;  %v4400_v24 = vld [vmem:[#allocation4 + $0x120] sm:$0xff] }
 0x439   : > { %4836 = vst.msk [vmem:[%s9398_s29 + $0xc0] sm:$0xff] %vm440_vm0, %v4772_v37  ;;  %4823 = vst.msk [vmem:[%s9398_s29 + $0x58] sm:$0xff] %vm440_vm0, %v4759_v57  ;;  %v4417_v37 = vld [vmem:[#allocation4 + $0x1a8] sm:$0xff] }
 0x43a   : > { %v4481_v54 = vpop.permute.xlu1 %4480  ;;  %v4566_v40 = vpop.permute.xlu0 %4565 }
 0x43b   : > { %v4758_v22 = vmul.f32 %v4481_v54, %v4374_v56  ;;  %v4775_v34 = vmul.f32 %v4566_v40, %v4391_v48  ;;  %v4416_v48 = vld [vmem:[#allocation4 + $0x1a0] sm:$0xff] }
 0x43d   : > { %4822 = vst.msk [vmem:[%s9398_s29 + $0x50] sm:$0xff] %vm440_vm0, %v4758_v22  ;;  %4839 = vst.msk [vmem:[%s9398_s29 + $0xd8] sm:$0xff] %vm440_vm0, %v4775_v34  ;;  %v4403_v22 = vld [vmem:[#allocation4 + $0x138] sm:$0xff] }
 0x43e   : > { %v4561_v50 = vpop.permute.xlu1 %4560  ;;  %v4496_v15 = vpop.permute.xlu0 %4495 }
 0x43f   : > { %v4774_v12 = vmul.f32 %v4561_v50, %v4390_v38  ;;  %v4761_v53 = vmul.f32 %v4496_v15, %v4377_v3  ;;  %v4402_v3 = vld [vmem:[#allocation4 + $0x130] sm:$0xff] }
 0x441   : > { %4838 = vst.msk [vmem:[%s9398_s29 + $0xd0] sm:$0xff] %vm440_vm0, %v4774_v12  ;;  %4825 = vst.msk [vmem:[%s9398_s29 + $0x68] sm:$0xff] %vm440_vm0, %v4761_v53  ;;  %v4419_v12 = vld [vmem:[#allocation4 + $0x1b8] sm:$0xff] }
 0x442   : > { %v4491_v61 = vpop.permute.xlu1 %4490  ;;  %v4576_v9 = vpop.permute.xlu0 %4575 }
 0x443   : > { %v4760_v16 = vmul.f32 %v4491_v61, %v4376_v52  ;;  %v4777_v6 = vmul.f32 %v4576_v9, %v4393_v44  ;;  %v4418_v44 = vld [vmem:[#allocation4 + $0x1b0] sm:$0xff] }
 0x445   : > { %4824 = vst.msk [vmem:[%s9398_s29 + $0x60] sm:$0xff] %vm440_vm0, %v4760_v16  ;;  %4841 = vst.msk [vmem:[%s9398_s29 + $0xe8] sm:$0xff] %vm440_vm0, %v4777_v6  ;;  %v4405_v16 = vld [vmem:[#allocation4 + $0x148] sm:$0xff] }
 0x446   : > { %v4571_v21 = vpop.permute.xlu1 %4570  ;;  %v4506_v47 = vpop.permute.xlu0 %4505 }
 0x447   : > { %v4776_v62 = vmul.f32 %v4571_v21, %v4392_v7  ;;  %v4763_v55 = vmul.f32 %v4506_v47, %v4379_v33  ;;  %v4404_v33 = vld [vmem:[#allocation4 + $0x140] sm:$0xff] }
 0x449   : > { %4840 = vst.msk [vmem:[%s9398_s29 + $0xe0] sm:$0xff] %vm440_vm0, %v4776_v62  ;;  %4827 = vst.msk [vmem:[%s9398_s29 + $0x78] sm:$0xff] %vm440_vm0, %v4763_v55  ;;  %v4421_v62 = vld [vmem:[#allocation4 + $0x1c8] sm:$0xff] }
 0x44a   : > { %v4501_v25 = vpop.permute.xlu1 %4500  ;;  %v4586_v46 = vpop.permute.xlu0 %4585 }
 0x44b   : > { %v4762_v26 = vmul.f32 %v4501_v25, %v4378_v58  ;;  %v4779_v49 = vmul.f32 %v4586_v46, %v4395_v51  ;;  %v4420_v51 = vld [vmem:[#allocation4 + $0x1c0] sm:$0xff] }
 0x44d   : > { %4826 = vst.msk [vmem:[%s9398_s29 + $0x70] sm:$0xff] %vm440_vm0, %v4762_v26  ;;  %4843 = vst.msk [vmem:[%s9398_s29 + $0xf8] sm:$0xff] %vm440_vm0, %v4779_v49  ;;  %v4407_v26 = vld [vmem:[#allocation4 + $0x158] sm:$0xff] }
 0x44e   : > { %v4581_v14 = vpop.permute.xlu1 %4580  ;;  %v4596_v1 = vpop.permute.xlu0 %4595 }
 0x44f   : > { %v4778_v17 = vmul.f32 %v4581_v14, %v4394_v35  ;;  %v4781_v63 = vmul.f32 %v4596_v1, %v4397_v5  ;;  %v4406_v5 = vld [vmem:[#allocation4 + $0x150] sm:$0xff] }
 0x451   : > { %4842 = vst.msk [vmem:[%s9398_s29 + $0xf0] sm:$0xff] %vm440_vm0, %v4778_v17  ;;  %4845 = vst.msk [vmem:[%s9398_s29 + $0x108] sm:$0xff] %vm440_vm0, %v4781_v63  ;;  %v4423_v17 = vld [vmem:[#allocation4 + $0x1d8] sm:$0xff] }
 0x452   : > { %v4591_v28 = vpop.permute.xlu1 %4590  ;;  %v4676_v20 = vpop.permute.xlu0 %4675 }
 0x453   : > { %v4780_v30 = vmul.f32 %v4591_v28, %v4396_v18  ;;  %v4797_v31 = vmul.f32 %v4676_v20, %v4413_v27  ;;  %v4422_v27 = vld [vmem:[#allocation4 + $0x1d0] sm:$0xff] }
 0x455   : > { %4844 = vst.msk [vmem:[%s9398_s29 + $0x100] sm:$0xff] %vm440_vm0, %v4780_v30  ;;  %4861 = vst.msk [vmem:[%s9398_s29 + $0x188] sm:$0xff] %vm440_vm0, %v4797_v31  ;;  %v4409_v30 = vld [vmem:[#allocation4 + $0x168] sm:$0xff] }
 0x456   : > { %v4671_v19 = vpop.permute.xlu1 %4670  ;;  %v4606_v2 = vpop.permute.xlu0 %4605 }
 0x457   : > { %v4796_v59 = vmul.f32 %v4671_v19, %v4412_v60  ;;  %v4783_v43 = vmul.f32 %v4606_v2, %v4399_v41  ;;  %v4408_v41 = vld [vmem:[#allocation4 + $0x160] sm:$0xff] }
 0x459   : > { %4860 = vst.msk [vmem:[%s9398_s29 + $0x180] sm:$0xff] %vm440_vm0, %v4796_v59  ;;  %4847 = vst.msk [vmem:[%s9398_s29 + $0x118] sm:$0xff] %vm440_vm0, %v4783_v43  ;;  %v4425_v59 = vld [vmem:[#allocation4 + $0x1e8] sm:$0xff] }
 0x45a   : > { %v4601_v0 = vpop.permute.xlu1 %4600  ;;  %v4686_v29 = vpop.permute.xlu0 %4685 }
 0x45b   : > { %v4782_v42 = vmul.f32 %v4601_v0, %v4398_v11  ;;  %v4799_v36 = vmul.f32 %v4686_v29, %v4415_v13  ;;  %v4424_v13 = vld [vmem:[#allocation4 + $0x1e0] sm:$0xff] }
 0x45d   : > { %4846 = vst.msk [vmem:[%s9398_s29 + $0x110] sm:$0xff] %vm440_vm0, %v4782_v42  ;;  %4863 = vst.msk [vmem:[%s9398_s29 + $0x198] sm:$0xff] %vm440_vm0, %v4799_v36  ;;  %v4411_v42 = vld [vmem:[#allocation4 + $0x178] sm:$0xff] }
 0x45e   : > { %v4681_v23 = vpop.permute.xlu1 %4680  ;;  %v4616_v8 = vpop.permute.xlu0 %4615 }
 0x45f   : > { %v4798_v10 = vmul.f32 %v4681_v23, %v4414_v39  ;;  %v4785_v32 = vmul.f32 %v4616_v8, %v4401_v4  ;;  %v4410_v4 = vld [vmem:[#allocation4 + $0x170] sm:$0xff] }
 0x461   : > { %4862 = vst.msk [vmem:[%s9398_s29 + $0x190] sm:$0xff] %vm440_vm0, %v4798_v10  ;;  %4849 = vst.msk [vmem:[%s9398_s29 + $0x128] sm:$0xff] %vm440_vm0, %v4785_v32  ;;  %v4427_v10 = vld [vmem:[#allocation4 + $0x1f8] sm:$0xff] }
 0x462   : > { %v4611_v45 = vpop.permute.xlu1 %4610  ;;  %v4696_v57 = vpop.permute.xlu0 %4695 }
 0x463   : > { %v4784_v56 = vmul.f32 %v4611_v45, %v4400_v24  ;;  %v4801_v54 = vmul.f32 %v4696_v57, %v4417_v37  ;;  %v4426_v37 = vld [vmem:[#allocation4 + $0x1f0] sm:$0xff] }
 0x465   : > { %4848 = vst.msk [vmem:[%s9398_s29 + $0x120] sm:$0xff] %vm440_vm0, %v4784_v56  ;;  %4865 = vst.msk [vmem:[%s9398_s29 + $0x1a8] sm:$0xff] %vm440_vm0, %v4801_v54 }
 0x466   : > { %v4691_v40 = vpop.permute.xlu1 %4690  ;;  %v4626_v34 = vpop.permute.xlu0 %4625 }
 0x467   : > { %v4800_v38 = vmul.f32 %v4691_v40, %v4416_v48  ;;  %v4787_v50 = vmul.f32 %v4626_v34, %v4403_v22 }
 0x469   : > { %4864 = vst.msk [vmem:[%s9398_s29 + $0x1a0] sm:$0xff] %vm440_vm0, %v4800_v38  ;;  %4851 = vst.msk [vmem:[%s9398_s29 + $0x138] sm:$0xff] %vm440_vm0, %v4787_v50 }
 0x46a   : > { %v4621_v15 = vpop.permute.xlu1 %4620  ;;  %v4706_v53 = vpop.permute.xlu0 %4705 }
 0x46b   : > { %v4786_v52 = vmul.f32 %v4621_v15, %v4402_v3  ;;  %v4803_v61 = vmul.f32 %v4706_v53, %v4419_v12 }
 0x46d   : > { %4850 = vst.msk [vmem:[%s9398_s29 + $0x130] sm:$0xff] %vm440_vm0, %v4786_v52  ;;  %4867 = vst.msk [vmem:[%s9398_s29 + $0x1b8] sm:$0xff] %vm440_vm0, %v4803_v61 }
 0x46e   : > { %v4701_v9 = vpop.permute.xlu1 %4700  ;;  %v4636_v6 = vpop.permute.xlu0 %4635 }
 0x46f   : > { %v4802_v7 = vmul.f32 %v4701_v9, %v4418_v44  ;;  %v4789_v21 = vmul.f32 %v4636_v6, %v4405_v16 }
 0x471   : > { %4866 = vst.msk [vmem:[%s9398_s29 + $0x1b0] sm:$0xff] %vm440_vm0, %v4802_v7  ;;  %4853 = vst.msk [vmem:[%s9398_s29 + $0x148] sm:$0xff] %vm440_vm0, %v4789_v21 }
 0x472   : > { %v4631_v47 = vpop.permute.xlu1 %4630  ;;  %v4716_v55 = vpop.permute.xlu0 %4715 }
 0x473   : > { %v4788_v58 = vmul.f32 %v4631_v47, %v4404_v33  ;;  %v4805_v25 = vmul.f32 %v4716_v55, %v4421_v62 }
 0x475   : > { %4852 = vst.msk [vmem:[%s9398_s29 + $0x140] sm:$0xff] %vm440_vm0, %v4788_v58  ;;  %4869 = vst.msk [vmem:[%s9398_s29 + $0x1c8] sm:$0xff] %vm440_vm0, %v4805_v25 }
 0x476   : > { %v4711_v46 = vpop.permute.xlu1 %4710  ;;  %v4646_v49 = vpop.permute.xlu0 %4645 }
 0x477   : > { %v4804_v35 = vmul.f32 %v4711_v46, %v4420_v51  ;;  %v4791_v14 = vmul.f32 %v4646_v49, %v4407_v26 }
 0x479   : > { %4868 = vst.msk [vmem:[%s9398_s29 + $0x1c0] sm:$0xff] %vm440_vm0, %v4804_v35  ;;  %4855 = vst.msk [vmem:[%s9398_s29 + $0x158] sm:$0xff] %vm440_vm0, %v4791_v14 }
 0x47b   : > { %v4726_v63 = vpop.permute.xlu0 %4725 }
 0x47c   : > { %v4641_v1 = vpop.permute.xlu1 %4640  ;;  %v4807_v28 = vmul.f32 %v4726_v63, %v4423_v17 }
 0x47d   : > { %v4790_v18 = vmul.f32 %v4641_v1, %v4406_v5 }
 0x47e   : > { %4871 = vst.msk [vmem:[%s9398_s29 + $0x1d8] sm:$0xff] %vm440_vm0, %v4807_v28 }
 0x47f   : > { %4854 = vst.msk [vmem:[%s9398_s29 + $0x150] sm:$0xff] %vm440_vm0, %v4790_v18  ;;  %v4656_v31 = vpop.permute.xlu0 %4655 }
 0x480   : > { %v4721_v20 = vpop.permute.xlu1 %4720  ;;  %v4793_v19 = vmul.f32 %v4656_v31, %v4409_v30 }
 0x481   : > { %v4806_v60 = vmul.f32 %v4721_v20, %v4422_v27 }
 0x482   : > { %4857 = vst.msk [vmem:[%s9398_s29 + $0x168] sm:$0xff] %vm440_vm0, %v4793_v19 }
 0x483   : > { %4870 = vst.msk [vmem:[%s9398_s29 + $0x1d0] sm:$0xff] %vm440_vm0, %v4806_v60  ;;  %v4736_v43 = vpop.permute.xlu0 %4735 }
 0x484   : > { %v4651_v2 = vpop.permute.xlu1 %4650  ;;  %v4809_v0 = vmul.f32 %v4736_v43, %v4425_v59 }
 0x485   : > { %v4792_v11 = vmul.f32 %v4651_v2, %v4408_v41 }
 0x486   : > { %4873 = vst.msk [vmem:[%s9398_s29 + $0x1e8] sm:$0xff] %vm440_vm0, %v4809_v0 }
 0x487   : > { %4856 = vst.msk [vmem:[%s9398_s29 + $0x160] sm:$0xff] %vm440_vm0, %v4792_v11  ;;  %v4666_v36 = vpop.permute.xlu0 %4665 }
 0x488   : > { %v4731_v29 = vpop.permute.xlu1 %4730  ;;  %v4795_v23 = vmul.f32 %v4666_v36, %v4411_v42 }
 0x489   : > { %v4808_v39 = vmul.f32 %v4731_v29, %v4424_v13 }
 0x48a   : > { %4859 = vst.msk [vmem:[%s9398_s29 + $0x178] sm:$0xff] %vm440_vm0, %v4795_v23 }
 0x48b   : > { %4872 = vst.msk [vmem:[%s9398_s29 + $0x1e0] sm:$0xff] %vm440_vm0, %v4808_v39  ;;  %v4746_v32 = vpop.permute.xlu0 %4745 }
 0x48c   : > { %v4661_v8 = vpop.permute.xlu1 %4660  ;;  %v4811_v45 = vmul.f32 %v4746_v32, %v4427_v10 }
 0x48d   : > { %v4794_v24 = vmul.f32 %v4661_v8, %v4410_v4 }
 0x48e   : > { %4875 = vst.msk [vmem:[%s9398_s29 + $0x1f8] sm:$0xff] %vm440_vm0, %v4811_v45 }
 0x48f   : > { %4858 = vst.msk [vmem:[%s9398_s29 + $0x170] sm:$0xff] %vm440_vm0, %v4794_v24 }
 0x490   : > { %v4741_v57 = vpop.permute.xlu1 %4740 }
 0x491   : > { %v4810_v56 = vmul.f32 %v4741_v57, %v4426_v37 }
 0x493   : > { %4874 = vst.msk [vmem:[%s9398_s29 + $0x1f0] sm:$0xff] %vm440_vm0, %v4810_v56 }
 0x494 PF: > { %s13_s14 = sadd.s32 1, %s6615_s14   ;;  %s10064_s12 = smov %s6611_s13 }
 0x495   : > { %p10_p5 = scmp.ge.s32.totalorder %s13_s14, 4   ;;  %s10065_s13 = smov %s10067_s15 }
 0x497   :  { %12 = sbr.rel (!%p10_p5) target bundleno = 2 (0x2), region = 76 }

</bundles_post_ra>
